<compile_context>
chip_gen: v7x
topology: tpu7x:2x2x1
jax: 0.10.0
libtpu: 0.0.40
codegen_flags: <defaults>
</compile_context>

<pallas_src>
import jax
import jax.numpy as jnp
from jax.experimental import pallas as pl
from jax.experimental.pallas import tpu as pltpu


# ---------------------------------------------------------------------------
# Logical model sizes (same small config as before) and padded, lane-dense
# layouts used for the MXU matmuls.
# ---------------------------------------------------------------------------
CIN = 1
KK = 9                 # 3x3 conv taps
COUT = 8               # conv-frontend channels
D_LOGICAL = 32         # encoder model dim
DFF_LOGICAL = 64       # FFN hidden dim

DP = 128               # padded model dim (lane-dense)
FP = 128               # padded FFN dim

LN_EPS = 1e-12
ATTN_SCALE = 1.0 / (D_LOGICAL ** 0.5)
MXU_DTYPE = jnp.bfloat16   # matmul operands; accumulation stays f32


# ---------------------------------------------------------------------------
# Host-side helpers
# ---------------------------------------------------------------------------
def _pad2(x, rows, cols):
    return jnp.pad(x, ((0, rows - x.shape[0]), (0, cols - x.shape[1])))


def make_taps(frames):
    """im2col at *logical* width, lane-dense layout: (KK*Cin, T, H*W).

    No 128-column zero padding -> no 14x HBM blowup; the (T, H*W) trailing
    dims are lane-dense so the in-kernel VPU FMAs and reductions are dense.
    """
    t, h, w, c = frames.shape
    padded = jnp.pad(frames, ((0, 0), (1, 1), (1, 1), (0, 0)))   # 'same' conv
    taps = []
    for dy in range(3):
        for dx in range(3):
            for ci in range(c):
                taps.append(padded[:, dy:dy + h, dx:dx + w, ci].reshape(t, h * w))
    return jnp.stack(taps, axis=0).astype(jnp.float32)           # (KK*Cin, T, H*W)


# ---------------------------------------------------------------------------
# Fused kernel: conv frontend + full encoder stack in one invocation.
# ---------------------------------------------------------------------------
def _masked_layer_norm(h, gamma, beta, mask):
    # LayerNorm over the D_LOGICAL real columns of the padded (T, DP) tensor.
    hm = h * mask
    mu = jnp.sum(hm, axis=-1, keepdims=True) / D_LOGICAL
    diff = (h - mu) * mask
    var = jnp.sum(diff * diff, axis=-1, keepdims=True) / D_LOGICAL
    # gamma/beta are zero in padded columns, so padded activations stay zero.
    return (h - mu) * jax.lax.rsqrt(var + LN_EPS) * gamma + beta


def avsr_encode_kernel(wconv_s, bconv_s,                       # SMEM scalars
                       taps_ref, wproj_ref, bproj_ref, mask_ref,
                       wqkv_ref, bqkv_ref, wo_ref, bo_ref,
                       g1_ref, be1_ref, w1_ref, b1_ref,
                       w2_ref, b2_ref, g2_ref, be2_ref,
                       out_ref):
    ntaps, t, hw = taps_ref.shape
    inv_hw = 1.0 / hw

    # ---------------- conv frontend -----------------------------------------
    # conv3x3 (9 scalar-weight VPU FMAs per channel) + bias + ReLU
    # + per-frame global average pool (lane reduction)
    # + channel->D projection as COUT rank-1 FMAs (padded cols stay zero).
    taps = [taps_ref[k] for k in range(ntaps)]                  # each (T, HW) f32
    feat = jnp.zeros((t, DP), jnp.float32) + bproj_ref[...]     # (T, DP)
    for c in range(COUT):
        acc = taps[0] * wconv_s[c]
        for k in range(1, ntaps):
            acc = acc + taps[k] * wconv_s[k * COUT + c]
        acc = jnp.maximum(acc + bconv_s[c], 0.0)                # (T, HW)
        pooled_c = jnp.sum(acc, axis=1, keepdims=True) * inv_hw  # (T, 1)
        feat = feat + pooled_c * wproj_ref[c:c + 1, :]           # (T, DP)

    # ---------------- transformer encoder stack (post-LN), unrolled ---------
    mask = mask_ref[...]                                        # (1, DP) f32
    n_layers = wqkv_ref.shape[0]
    h = feat
    for l in range(n_layers):
        wqkv, bqkv = wqkv_ref[l], bqkv_ref[l]                   # (DP,3DP) bf16 / (1,3DP) f32
        wo, bo = wo_ref[l], bo_ref[l]
        g1, be1 = g1_ref[l], be1_ref[l]
        w1, b1 = w1_ref[l], b1_ref[l]
        w2, b2 = w2_ref[l], b2_ref[l]
        g2, be2 = g2_ref[l], be2_ref[l]

        xb = h.astype(MXU_DTYPE)
        # Fused QKV projection, then a single bf16 cast shared by q/k/v.
        qkv = jnp.dot(xb, wqkv, preferred_element_type=jnp.float32) + bqkv
        qkv_b = qkv.astype(MXU_DTYPE)
        q_b = qkv_b[:, :DP]
        k_b = qkv_b[:, DP:2 * DP]
        v_b = qkv_b[:, 2 * DP:]

        # Scores: contract the feature dim directly (no explicit transpose).
        s = jax.lax.dot_general(q_b, k_b, (((1,), (1,)), ((), ())),
                                preferred_element_type=jnp.float32) * ATTN_SCALE
        s = s - jnp.max(s, axis=-1, keepdims=True)
        p = jnp.exp(s)
        p = p * pl.reciprocal(jnp.sum(p, axis=-1, keepdims=True), approx=True)

        ctx = jnp.dot(p.astype(MXU_DTYPE), v_b,
                      preferred_element_type=jnp.float32)       # (T, DP)
        attn = jnp.dot(ctx.astype(MXU_DTYPE), wo,
                       preferred_element_type=jnp.float32) + bo

        h1 = _masked_layer_norm(h + attn, g1, be1, mask)

        f = jnp.dot(h1.astype(MXU_DTYPE), w1,
                    preferred_element_type=jnp.float32) + b1
        f = jnp.maximum(f, 0.0)
        f = jnp.dot(f.astype(MXU_DTYPE), w2,
                    preferred_element_type=jnp.float32) + b2

        h = _masked_layer_norm(h1 + f, g2, be2, mask)

    out_ref[...] = h


def encode(frames, params):
    """Equivalent of InferencePipeline.extract_features' encoder path."""
    taps = make_taps(frames)                                    # (KK*Cin, T, H*W)
    t = frames.shape[0]
    wconv_flat, bconv, wproj, bproj = params["frontend"]
    layers = params["layers"]
    mask = params["mask"]

    def smem():
        return pl.BlockSpec(memory_space=pltpu.MemorySpace.SMEM)

    def vmem():
        return pl.BlockSpec(memory_space=pltpu.MemorySpace.VMEM)

    in_specs = [smem(), smem()] + [vmem() for _ in range(4 + len(layers))]

    out = pl.pallas_call(
        avsr_encode_kernel,
        out_shape=jax.ShapeDtypeStruct((t, DP), jnp.float32),
        in_specs=in_specs,
        out_specs=vmem(),
    )(wconv_flat, bconv, taps, wproj, bproj, mask, *layers)
    return out[:, :D_LOGICAL]                                   # drop zero padding


# ---------------------------------------------------------------------------
# Deterministic parameter init (synthetic; __init__ would load a checkpoint).
# Encoder weights are zero-padded ONCE to lane-dense shapes and stacked along
# a leading layer axis; conv weights stay logical-size scalars (SMEM).
# ---------------------------------------------------------------------------
def init_params(key, cin=CIN, cout=COUT, d=D_LOGICAL, dff=DFF_LOGICAL,
                n_layers=2):
    ks = iter(jax.random.split(key, 8 + 16 * n_layers))
    scale = 0.1

    def rnd(shape):
        return scale * jax.random.normal(next(ks), shape, dtype=jnp.float32)

    # Conv frontend: scalar conv weights flat [tap*COUT + cout], SMEM resident.
    wconv_flat = rnd((KK * cin, cout)).reshape(-1)              # (KK*Cin*COUT,)
    bconv = rnd((cout,))                                        # (COUT,)
    wproj = _pad2(rnd((cout, d)), cout, DP)                     # (COUT, DP) f32
    bproj = _pad2(rnd((1, d)), 1, DP)                           # (1, DP)  f32
    frontend = (wconv_flat, bconv, wproj, bproj)

    names = ("wqkv", "bqkv", "wo", "bo", "g1", "be1",
             "w1", "b1", "w2", "b2", "g2", "be2")
    stacks = {n: [] for n in names}
    for _ in range(n_layers):
        wq, wk, wv, wo_ = rnd((d, d)), rnd((d, d)), rnd((d, d)), rnd((d, d))
        bq, bk, bv, bo_ = rnd((1, d)), rnd((1, d)), rnd((1, d)), rnd((1, d))
        stacks["wqkv"].append(jnp.concatenate(
            [_pad2(wq, DP, DP), _pad2(wk, DP, DP), _pad2(wv, DP, DP)], axis=1))
        stacks["bqkv"].append(jnp.concatenate(
            [_pad2(bq, 1, DP), _pad2(bk, 1, DP), _pad2(bv, 1, DP)], axis=1))
        stacks["wo"].append(_pad2(wo_, DP, DP))
        stacks["bo"].append(_pad2(bo_, 1, DP))
        stacks["g1"].append(_pad2(jnp.ones((1, d), jnp.float32), 1, DP))
        stacks["be1"].append(_pad2(jnp.zeros((1, d), jnp.float32), 1, DP))
        stacks["w1"].append(_pad2(rnd((d, dff)), DP, FP))
        stacks["b1"].append(_pad2(rnd((1, dff)), 1, FP))
        stacks["w2"].append(_pad2(rnd((dff, d)), FP, DP))
        stacks["b2"].append(_pad2(rnd((1, d)), 1, DP))
        stacks["g2"].append(_pad2(jnp.ones((1, d), jnp.float32), 1, DP))
        stacks["be2"].append(_pad2(jnp.zeros((1, d), jnp.float32), 1, DP))

    mxu = {"wqkv", "wo", "w1", "w2"}
    layers = tuple(
        jnp.stack(stacks[n]).astype(MXU_DTYPE if n in mxu else jnp.float32)
        for n in names)

    mask = (jnp.arange(DP) < d).astype(jnp.float32).reshape(1, DP)
    return {"frontend": frontend, "layers": layers, "mask": mask}


if __name__ == "__main__":
    key = jax.random.PRNGKey(0)
    k_data, k_param = jax.random.split(key)

    # Synthetic "video" input: T=8 grayscale mouth-ROI frames, 16x16, 1 channel.
    T, H, W = 8, 16, 16
    frames = jax.random.normal(k_data, (T, H, W, CIN), dtype=jnp.float32)

    params = init_params(k_param, n_layers=2)

    enc_feats = jax.block_until_ready(encode(frames, params))
    assert enc_feats.shape == (T, D_LOGICAL)
    assert bool(jnp.all(jnp.isfinite(enc_feats)))
    print("KERNEL_OK")
</pallas_src>

<mosaic_0001>
module attributes {stable_mosaic.version = 11 : i64} {
  func.func @avsr_encode_kernel(%arg0: memref<72xf32, #tpu.memory_space<smem>>, %arg1: memref<8xf32, #tpu.memory_space<smem>>, %arg2: memref<9x8x256xf32, #tpu.memory_space<vmem>>, %arg3: memref<8x128xf32, #tpu.memory_space<vmem>>, %arg4: memref<1x128xf32, #tpu.memory_space<vmem>>, %arg5: memref<1x128xf32, #tpu.memory_space<vmem>>, %arg6: memref<2x128x384xbf16, #tpu.memory_space<vmem>>, %arg7: memref<2x1x384xf32, #tpu.memory_space<vmem>>, %arg8: memref<2x128x128xbf16, #tpu.memory_space<vmem>>, %arg9: memref<2x1x128xf32, #tpu.memory_space<vmem>>, %arg10: memref<2x1x128xf32, #tpu.memory_space<vmem>>, %arg11: memref<2x1x128xf32, #tpu.memory_space<vmem>>, %arg12: memref<2x128x128xbf16, #tpu.memory_space<vmem>>, %arg13: memref<2x1x128xf32, #tpu.memory_space<vmem>>, %arg14: memref<2x128x128xbf16, #tpu.memory_space<vmem>>, %arg15: memref<2x1x128xf32, #tpu.memory_space<vmem>>, %arg16: memref<2x1x128xf32, #tpu.memory_space<vmem>>, %arg17: memref<2x1x128xf32, #tpu.memory_space<vmem>>, %arg18: memref<8x128xf32, #tpu.memory_space<vmem>>) attributes {dimension_semantics = [], scalar_prefetch = 0 : i64, scratch_operands = 0 : i64, tpu.core_type = #tpu.core_type<tc>} {
    %c0 = arith.constant 0 : index
    %c0_0 = arith.constant 0 : index
    %c0_1 = arith.constant 0 : index
    %0 = vector.load %arg2[%c0, %c0_0, %c0_1] : memref<9x8x256xf32, #tpu.memory_space<vmem>>, vector<1x8x256xf32>
    %1 = vector.shape_cast %0 : vector<1x8x256xf32> to vector<8x256xf32>
    %c1 = arith.constant 1 : index
    %c0_2 = arith.constant 0 : index
    %c0_3 = arith.constant 0 : index
    %2 = vector.load %arg2[%c1, %c0_2, %c0_3] : memref<9x8x256xf32, #tpu.memory_space<vmem>>, vector<1x8x256xf32>
    %3 = vector.shape_cast %2 : vector<1x8x256xf32> to vector<8x256xf32>
    %c2 = arith.constant 2 : index
    %c0_4 = arith.constant 0 : index
    %c0_5 = arith.constant 0 : index
    %4 = vector.load %arg2[%c2, %c0_4, %c0_5] : memref<9x8x256xf32, #tpu.memory_space<vmem>>, vector<1x8x256xf32>
    %5 = vector.shape_cast %4 : vector<1x8x256xf32> to vector<8x256xf32>
    %c3 = arith.constant 3 : index
    %c0_6 = arith.constant 0 : index
    %c0_7 = arith.constant 0 : index
    %6 = vector.load %arg2[%c3, %c0_6, %c0_7] : memref<9x8x256xf32, #tpu.memory_space<vmem>>, vector<1x8x256xf32>
    %7 = vector.shape_cast %6 : vector<1x8x256xf32> to vector<8x256xf32>
    %c4 = arith.constant 4 : index
    %c0_8 = arith.constant 0 : index
    %c0_9 = arith.constant 0 : index
    %8 = vector.load %arg2[%c4, %c0_8, %c0_9] : memref<9x8x256xf32, #tpu.memory_space<vmem>>, vector<1x8x256xf32>
    %9 = vector.shape_cast %8 : vector<1x8x256xf32> to vector<8x256xf32>
    %c5 = arith.constant 5 : index
    %c0_10 = arith.constant 0 : index
    %c0_11 = arith.constant 0 : index
    %10 = vector.load %arg2[%c5, %c0_10, %c0_11] : memref<9x8x256xf32, #tpu.memory_space<vmem>>, vector<1x8x256xf32>
    %11 = vector.shape_cast %10 : vector<1x8x256xf32> to vector<8x256xf32>
    %c6 = arith.constant 6 : index
    %c0_12 = arith.constant 0 : index
    %c0_13 = arith.constant 0 : index
    %12 = vector.load %arg2[%c6, %c0_12, %c0_13] : memref<9x8x256xf32, #tpu.memory_space<vmem>>, vector<1x8x256xf32>
    %13 = vector.shape_cast %12 : vector<1x8x256xf32> to vector<8x256xf32>
    %c7 = arith.constant 7 : index
    %c0_14 = arith.constant 0 : index
    %c0_15 = arith.constant 0 : index
    %14 = vector.load %arg2[%c7, %c0_14, %c0_15] : memref<9x8x256xf32, #tpu.memory_space<vmem>>, vector<1x8x256xf32>
    %15 = vector.shape_cast %14 : vector<1x8x256xf32> to vector<8x256xf32>
    %c8 = arith.constant 8 : index
    %c0_16 = arith.constant 0 : index
    %c0_17 = arith.constant 0 : index
    %16 = vector.load %arg2[%c8, %c0_16, %c0_17] : memref<9x8x256xf32, #tpu.memory_space<vmem>>, vector<1x8x256xf32>
    %17 = vector.shape_cast %16 : vector<1x8x256xf32> to vector<8x256xf32>
    %cst = arith.constant 0.000000e+00 : f32
    %18 = vector.broadcast %cst : f32 to vector<8x128xf32>
    %c0_18 = arith.constant 0 : index
    %c0_19 = arith.constant 0 : index
    %19 = vector.load %arg4[%c0_18, %c0_19] : memref<1x128xf32, #tpu.memory_space<vmem>>, vector<1x128xf32>
    %20 = vector.broadcast %19 : vector<1x128xf32> to vector<8x128xf32>
    %21 = arith.addf %18, %20 : vector<8x128xf32>
    %c0_20 = arith.constant 0 : index
    %22 = memref.load %arg0[%c0_20] : memref<72xf32, #tpu.memory_space<smem>>
    %23 = vector.broadcast %22 : f32 to vector<8x256xf32>
    %24 = arith.mulf %1, %23 : vector<8x256xf32>
    %c8_21 = arith.constant 8 : index
    %25 = memref.load %arg0[%c8_21] : memref<72xf32, #tpu.memory_space<smem>>
    %26 = vector.broadcast %25 : f32 to vector<8x256xf32>
    %27 = arith.mulf %3, %26 : vector<8x256xf32>
    %28 = arith.addf %24, %27 : vector<8x256xf32>
    %c16 = arith.constant 16 : index
    %29 = memref.load %arg0[%c16] : memref<72xf32, #tpu.memory_space<smem>>
    %30 = vector.broadcast %29 : f32 to vector<8x256xf32>
    %31 = arith.mulf %5, %30 : vector<8x256xf32>
    %32 = arith.addf %28, %31 : vector<8x256xf32>
    %c24 = arith.constant 24 : index
    %33 = memref.load %arg0[%c24] : memref<72xf32, #tpu.memory_space<smem>>
    %34 = vector.broadcast %33 : f32 to vector<8x256xf32>
    %35 = arith.mulf %7, %34 : vector<8x256xf32>
    %36 = arith.addf %32, %35 : vector<8x256xf32>
    %c32 = arith.constant 32 : index
    %37 = memref.load %arg0[%c32] : memref<72xf32, #tpu.memory_space<smem>>
    %38 = vector.broadcast %37 : f32 to vector<8x256xf32>
    %39 = arith.mulf %9, %38 : vector<8x256xf32>
    %40 = arith.addf %36, %39 : vector<8x256xf32>
    %c40 = arith.constant 40 : index
    %41 = memref.load %arg0[%c40] : memref<72xf32, #tpu.memory_space<smem>>
    %42 = vector.broadcast %41 : f32 to vector<8x256xf32>
    %43 = arith.mulf %11, %42 : vector<8x256xf32>
    %44 = arith.addf %40, %43 : vector<8x256xf32>
    %c48 = arith.constant 48 : index
    %45 = memref.load %arg0[%c48] : memref<72xf32, #tpu.memory_space<smem>>
    %46 = vector.broadcast %45 : f32 to vector<8x256xf32>
    %47 = arith.mulf %13, %46 : vector<8x256xf32>
    %48 = arith.addf %44, %47 : vector<8x256xf32>
    %c56 = arith.constant 56 : index
    %49 = memref.load %arg0[%c56] : memref<72xf32, #tpu.memory_space<smem>>
    %50 = vector.broadcast %49 : f32 to vector<8x256xf32>
    %51 = arith.mulf %15, %50 : vector<8x256xf32>
    %52 = arith.addf %48, %51 : vector<8x256xf32>
    %c64 = arith.constant 64 : index
    %53 = memref.load %arg0[%c64] : memref<72xf32, #tpu.memory_space<smem>>
    %54 = vector.broadcast %53 : f32 to vector<8x256xf32>
    %55 = arith.mulf %17, %54 : vector<8x256xf32>
    %56 = arith.addf %52, %55 : vector<8x256xf32>
    %c0_22 = arith.constant 0 : index
    %57 = memref.load %arg1[%c0_22] : memref<8xf32, #tpu.memory_space<smem>>
    %58 = vector.broadcast %57 : f32 to vector<8x256xf32>
    %59 = arith.addf %56, %58 : vector<8x256xf32>
    %cst_23 = arith.constant 0.000000e+00 : f32
    %60 = vector.broadcast %cst_23 : f32 to vector<8x256xf32>
    %61 = arith.maximumf %59, %60 : vector<8x256xf32>
    %cst_24 = arith.constant dense<0.000000e+00> : vector<8xf32>
    %62 = vector.multi_reduction <add>, %61, %cst_24 [1] : vector<8x256xf32> to vector<8xf32>
    %63 = vector.shape_cast %62 : vector<8xf32> to vector<8x1xf32>
    %cst_25 = arith.constant 3.906250e-03 : f32
    %64 = vector.broadcast %cst_25 : f32 to vector<8x1xf32>
    %65 = arith.mulf %63, %64 : vector<8x1xf32>
    %c0_26 = arith.constant 0 : index
    %c0_27 = arith.constant 0 : index
    %66 = vector.load %arg3[%c0_26, %c0_27] : memref<8x128xf32, #tpu.memory_space<vmem>>, vector<1x128xf32>
    %67 = vector.broadcast %65 : vector<8x1xf32> to vector<8x128xf32>
    %68 = vector.broadcast %66 : vector<1x128xf32> to vector<8x128xf32>
    %69 = arith.mulf %67, %68 : vector<8x128xf32>
    %70 = arith.addf %21, %69 : vector<8x128xf32>
    %c1_28 = arith.constant 1 : index
    %71 = memref.load %arg0[%c1_28] : memref<72xf32, #tpu.memory_space<smem>>
    %72 = vector.broadcast %71 : f32 to vector<8x256xf32>
    %73 = arith.mulf %1, %72 : vector<8x256xf32>
    %c9 = arith.constant 9 : index
    %74 = memref.load %arg0[%c9] : memref<72xf32, #tpu.memory_space<smem>>
    %75 = vector.broadcast %74 : f32 to vector<8x256xf32>
    %76 = arith.mulf %3, %75 : vector<8x256xf32>
    %77 = arith.addf %73, %76 : vector<8x256xf32>
    %c17 = arith.constant 17 : index
    %78 = memref.load %arg0[%c17] : memref<72xf32, #tpu.memory_space<smem>>
    %79 = vector.broadcast %78 : f32 to vector<8x256xf32>
    %80 = arith.mulf %5, %79 : vector<8x256xf32>
    %81 = arith.addf %77, %80 : vector<8x256xf32>
    %c25 = arith.constant 25 : index
    %82 = memref.load %arg0[%c25] : memref<72xf32, #tpu.memory_space<smem>>
    %83 = vector.broadcast %82 : f32 to vector<8x256xf32>
    %84 = arith.mulf %7, %83 : vector<8x256xf32>
    %85 = arith.addf %81, %84 : vector<8x256xf32>
    %c33 = arith.constant 33 : index
    %86 = memref.load %arg0[%c33] : memref<72xf32, #tpu.memory_space<smem>>
    %87 = vector.broadcast %86 : f32 to vector<8x256xf32>
    %88 = arith.mulf %9, %87 : vector<8x256xf32>
    %89 = arith.addf %85, %88 : vector<8x256xf32>
    %c41 = arith.constant 41 : index
    %90 = memref.load %arg0[%c41] : memref<72xf32, #tpu.memory_space<smem>>
    %91 = vector.broadcast %90 : f32 to vector<8x256xf32>
    %92 = arith.mulf %11, %91 : vector<8x256xf32>
    %93 = arith.addf %89, %92 : vector<8x256xf32>
    %c49 = arith.constant 49 : index
    %94 = memref.load %arg0[%c49] : memref<72xf32, #tpu.memory_space<smem>>
    %95 = vector.broadcast %94 : f32 to vector<8x256xf32>
    %96 = arith.mulf %13, %95 : vector<8x256xf32>
    %97 = arith.addf %93, %96 : vector<8x256xf32>
    %c57 = arith.constant 57 : index
    %98 = memref.load %arg0[%c57] : memref<72xf32, #tpu.memory_space<smem>>
    %99 = vector.broadcast %98 : f32 to vector<8x256xf32>
    %100 = arith.mulf %15, %99 : vector<8x256xf32>
    %101 = arith.addf %97, %100 : vector<8x256xf32>
    %c65 = arith.constant 65 : index
    %102 = memref.load %arg0[%c65] : memref<72xf32, #tpu.memory_space<smem>>
    %103 = vector.broadcast %102 : f32 to vector<8x256xf32>
    %104 = arith.mulf %17, %103 : vector<8x256xf32>
    %105 = arith.addf %101, %104 : vector<8x256xf32>
    %c1_29 = arith.constant 1 : index
    %106 = memref.load %arg1[%c1_29] : memref<8xf32, #tpu.memory_space<smem>>
    %107 = vector.broadcast %106 : f32 to vector<8x256xf32>
    %108 = arith.addf %105, %107 : vector<8x256xf32>
    %cst_30 = arith.constant 0.000000e+00 : f32
    %109 = vector.broadcast %cst_30 : f32 to vector<8x256xf32>
    %110 = arith.maximumf %108, %109 : vector<8x256xf32>
    %cst_31 = arith.constant dense<0.000000e+00> : vector<8xf32>
    %111 = vector.multi_reduction <add>, %110, %cst_31 [1] : vector<8x256xf32> to vector<8xf32>
    %112 = vector.shape_cast %111 : vector<8xf32> to vector<8x1xf32>
    %cst_32 = arith.constant 3.906250e-03 : f32
    %113 = vector.broadcast %cst_32 : f32 to vector<8x1xf32>
    %114 = arith.mulf %112, %113 : vector<8x1xf32>
    %c1_33 = arith.constant 1 : index
    %c0_34 = arith.constant 0 : index
    %115 = vector.load %arg3[%c1_33, %c0_34] : memref<8x128xf32, #tpu.memory_space<vmem>>, vector<1x128xf32>
    %116 = vector.broadcast %114 : vector<8x1xf32> to vector<8x128xf32>
    %117 = vector.broadcast %115 : vector<1x128xf32> to vector<8x128xf32>
    %118 = arith.mulf %116, %117 : vector<8x128xf32>
    %119 = arith.addf %70, %118 : vector<8x128xf32>
    %c2_35 = arith.constant 2 : index
    %120 = memref.load %arg0[%c2_35] : memref<72xf32, #tpu.memory_space<smem>>
    %121 = vector.broadcast %120 : f32 to vector<8x256xf32>
    %122 = arith.mulf %1, %121 : vector<8x256xf32>
    %c10 = arith.constant 10 : index
    %123 = memref.load %arg0[%c10] : memref<72xf32, #tpu.memory_space<smem>>
    %124 = vector.broadcast %123 : f32 to vector<8x256xf32>
    %125 = arith.mulf %3, %124 : vector<8x256xf32>
    %126 = arith.addf %122, %125 : vector<8x256xf32>
    %c18 = arith.constant 18 : index
    %127 = memref.load %arg0[%c18] : memref<72xf32, #tpu.memory_space<smem>>
    %128 = vector.broadcast %127 : f32 to vector<8x256xf32>
    %129 = arith.mulf %5, %128 : vector<8x256xf32>
    %130 = arith.addf %126, %129 : vector<8x256xf32>
    %c26 = arith.constant 26 : index
    %131 = memref.load %arg0[%c26] : memref<72xf32, #tpu.memory_space<smem>>
    %132 = vector.broadcast %131 : f32 to vector<8x256xf32>
    %133 = arith.mulf %7, %132 : vector<8x256xf32>
    %134 = arith.addf %130, %133 : vector<8x256xf32>
    %c34 = arith.constant 34 : index
    %135 = memref.load %arg0[%c34] : memref<72xf32, #tpu.memory_space<smem>>
    %136 = vector.broadcast %135 : f32 to vector<8x256xf32>
    %137 = arith.mulf %9, %136 : vector<8x256xf32>
    %138 = arith.addf %134, %137 : vector<8x256xf32>
    %c42 = arith.constant 42 : index
    %139 = memref.load %arg0[%c42] : memref<72xf32, #tpu.memory_space<smem>>
    %140 = vector.broadcast %139 : f32 to vector<8x256xf32>
    %141 = arith.mulf %11, %140 : vector<8x256xf32>
    %142 = arith.addf %138, %141 : vector<8x256xf32>
    %c50 = arith.constant 50 : index
    %143 = memref.load %arg0[%c50] : memref<72xf32, #tpu.memory_space<smem>>
    %144 = vector.broadcast %143 : f32 to vector<8x256xf32>
    %145 = arith.mulf %13, %144 : vector<8x256xf32>
    %146 = arith.addf %142, %145 : vector<8x256xf32>
    %c58 = arith.constant 58 : index
    %147 = memref.load %arg0[%c58] : memref<72xf32, #tpu.memory_space<smem>>
    %148 = vector.broadcast %147 : f32 to vector<8x256xf32>
    %149 = arith.mulf %15, %148 : vector<8x256xf32>
    %150 = arith.addf %146, %149 : vector<8x256xf32>
    %c66 = arith.constant 66 : index
    %151 = memref.load %arg0[%c66] : memref<72xf32, #tpu.memory_space<smem>>
    %152 = vector.broadcast %151 : f32 to vector<8x256xf32>
    %153 = arith.mulf %17, %152 : vector<8x256xf32>
    %154 = arith.addf %150, %153 : vector<8x256xf32>
    %c2_36 = arith.constant 2 : index
    %155 = memref.load %arg1[%c2_36] : memref<8xf32, #tpu.memory_space<smem>>
    %156 = vector.broadcast %155 : f32 to vector<8x256xf32>
    %157 = arith.addf %154, %156 : vector<8x256xf32>
    %cst_37 = arith.constant 0.000000e+00 : f32
    %158 = vector.broadcast %cst_37 : f32 to vector<8x256xf32>
    %159 = arith.maximumf %157, %158 : vector<8x256xf32>
    %cst_38 = arith.constant dense<0.000000e+00> : vector<8xf32>
    %160 = vector.multi_reduction <add>, %159, %cst_38 [1] : vector<8x256xf32> to vector<8xf32>
    %161 = vector.shape_cast %160 : vector<8xf32> to vector<8x1xf32>
    %cst_39 = arith.constant 3.906250e-03 : f32
    %162 = vector.broadcast %cst_39 : f32 to vector<8x1xf32>
    %163 = arith.mulf %161, %162 : vector<8x1xf32>
    %c2_40 = arith.constant 2 : index
    %c0_41 = arith.constant 0 : index
    %164 = vector.load %arg3[%c2_40, %c0_41] : memref<8x128xf32, #tpu.memory_space<vmem>>, vector<1x128xf32>
    %165 = vector.broadcast %163 : vector<8x1xf32> to vector<8x128xf32>
    %166 = vector.broadcast %164 : vector<1x128xf32> to vector<8x128xf32>
    %167 = arith.mulf %165, %166 : vector<8x128xf32>
    %168 = arith.addf %119, %167 : vector<8x128xf32>
    %c3_42 = arith.constant 3 : index
    %169 = memref.load %arg0[%c3_42] : memref<72xf32, #tpu.memory_space<smem>>
    %170 = vector.broadcast %169 : f32 to vector<8x256xf32>
    %171 = arith.mulf %1, %170 : vector<8x256xf32>
    %c11 = arith.constant 11 : index
    %172 = memref.load %arg0[%c11] : memref<72xf32, #tpu.memory_space<smem>>
    %173 = vector.broadcast %172 : f32 to vector<8x256xf32>
    %174 = arith.mulf %3, %173 : vector<8x256xf32>
    %175 = arith.addf %171, %174 : vector<8x256xf32>
    %c19 = arith.constant 19 : index
    %176 = memref.load %arg0[%c19] : memref<72xf32, #tpu.memory_space<smem>>
    %177 = vector.broadcast %176 : f32 to vector<8x256xf32>
    %178 = arith.mulf %5, %177 : vector<8x256xf32>
    %179 = arith.addf %175, %178 : vector<8x256xf32>
    %c27 = arith.constant 27 : index
    %180 = memref.load %arg0[%c27] : memref<72xf32, #tpu.memory_space<smem>>
    %181 = vector.broadcast %180 : f32 to vector<8x256xf32>
    %182 = arith.mulf %7, %181 : vector<8x256xf32>
    %183 = arith.addf %179, %182 : vector<8x256xf32>
    %c35 = arith.constant 35 : index
    %184 = memref.load %arg0[%c35] : memref<72xf32, #tpu.memory_space<smem>>
    %185 = vector.broadcast %184 : f32 to vector<8x256xf32>
    %186 = arith.mulf %9, %185 : vector<8x256xf32>
    %187 = arith.addf %183, %186 : vector<8x256xf32>
    %c43 = arith.constant 43 : index
    %188 = memref.load %arg0[%c43] : memref<72xf32, #tpu.memory_space<smem>>
    %189 = vector.broadcast %188 : f32 to vector<8x256xf32>
    %190 = arith.mulf %11, %189 : vector<8x256xf32>
    %191 = arith.addf %187, %190 : vector<8x256xf32>
    %c51 = arith.constant 51 : index
    %192 = memref.load %arg0[%c51] : memref<72xf32, #tpu.memory_space<smem>>
    %193 = vector.broadcast %192 : f32 to vector<8x256xf32>
    %194 = arith.mulf %13, %193 : vector<8x256xf32>
    %195 = arith.addf %191, %194 : vector<8x256xf32>
    %c59 = arith.constant 59 : index
    %196 = memref.load %arg0[%c59] : memref<72xf32, #tpu.memory_space<smem>>
    %197 = vector.broadcast %196 : f32 to vector<8x256xf32>
    %198 = arith.mulf %15, %197 : vector<8x256xf32>
    %199 = arith.addf %195, %198 : vector<8x256xf32>
    %c67 = arith.constant 67 : index
    %200 = memref.load %arg0[%c67] : memref<72xf32, #tpu.memory_space<smem>>
    %201 = vector.broadcast %200 : f32 to vector<8x256xf32>
    %202 = arith.mulf %17, %201 : vector<8x256xf32>
    %203 = arith.addf %199, %202 : vector<8x256xf32>
    %c3_43 = arith.constant 3 : index
    %204 = memref.load %arg1[%c3_43] : memref<8xf32, #tpu.memory_space<smem>>
    %205 = vector.broadcast %204 : f32 to vector<8x256xf32>
    %206 = arith.addf %203, %205 : vector<8x256xf32>
    %cst_44 = arith.constant 0.000000e+00 : f32
    %207 = vector.broadcast %cst_44 : f32 to vector<8x256xf32>
    %208 = arith.maximumf %206, %207 : vector<8x256xf32>
    %cst_45 = arith.constant dense<0.000000e+00> : vector<8xf32>
    %209 = vector.multi_reduction <add>, %208, %cst_45 [1] : vector<8x256xf32> to vector<8xf32>
    %210 = vector.shape_cast %209 : vector<8xf32> to vector<8x1xf32>
    %cst_46 = arith.constant 3.906250e-03 : f32
    %211 = vector.broadcast %cst_46 : f32 to vector<8x1xf32>
    %212 = arith.mulf %210, %211 : vector<8x1xf32>
    %c3_47 = arith.constant 3 : index
    %c0_48 = arith.constant 0 : index
    %213 = vector.load %arg3[%c3_47, %c0_48] : memref<8x128xf32, #tpu.memory_space<vmem>>, vector<1x128xf32>
    %214 = vector.broadcast %212 : vector<8x1xf32> to vector<8x128xf32>
    %215 = vector.broadcast %213 : vector<1x128xf32> to vector<8x128xf32>
    %216 = arith.mulf %214, %215 : vector<8x128xf32>
    %217 = arith.addf %168, %216 : vector<8x128xf32>
    %c4_49 = arith.constant 4 : index
    %218 = memref.load %arg0[%c4_49] : memref<72xf32, #tpu.memory_space<smem>>
    %219 = vector.broadcast %218 : f32 to vector<8x256xf32>
    %220 = arith.mulf %1, %219 : vector<8x256xf32>
    %c12 = arith.constant 12 : index
    %221 = memref.load %arg0[%c12] : memref<72xf32, #tpu.memory_space<smem>>
    %222 = vector.broadcast %221 : f32 to vector<8x256xf32>
    %223 = arith.mulf %3, %222 : vector<8x256xf32>
    %224 = arith.addf %220, %223 : vector<8x256xf32>
    %c20 = arith.constant 20 : index
    %225 = memref.load %arg0[%c20] : memref<72xf32, #tpu.memory_space<smem>>
    %226 = vector.broadcast %225 : f32 to vector<8x256xf32>
    %227 = arith.mulf %5, %226 : vector<8x256xf32>
    %228 = arith.addf %224, %227 : vector<8x256xf32>
    %c28 = arith.constant 28 : index
    %229 = memref.load %arg0[%c28] : memref<72xf32, #tpu.memory_space<smem>>
    %230 = vector.broadcast %229 : f32 to vector<8x256xf32>
    %231 = arith.mulf %7, %230 : vector<8x256xf32>
    %232 = arith.addf %228, %231 : vector<8x256xf32>
    %c36 = arith.constant 36 : index
    %233 = memref.load %arg0[%c36] : memref<72xf32, #tpu.memory_space<smem>>
    %234 = vector.broadcast %233 : f32 to vector<8x256xf32>
    %235 = arith.mulf %9, %234 : vector<8x256xf32>
    %236 = arith.addf %232, %235 : vector<8x256xf32>
    %c44 = arith.constant 44 : index
    %237 = memref.load %arg0[%c44] : memref<72xf32, #tpu.memory_space<smem>>
    %238 = vector.broadcast %237 : f32 to vector<8x256xf32>
    %239 = arith.mulf %11, %238 : vector<8x256xf32>
    %240 = arith.addf %236, %239 : vector<8x256xf32>
    %c52 = arith.constant 52 : index
    %241 = memref.load %arg0[%c52] : memref<72xf32, #tpu.memory_space<smem>>
    %242 = vector.broadcast %241 : f32 to vector<8x256xf32>
    %243 = arith.mulf %13, %242 : vector<8x256xf32>
    %244 = arith.addf %240, %243 : vector<8x256xf32>
    %c60 = arith.constant 60 : index
    %245 = memref.load %arg0[%c60] : memref<72xf32, #tpu.memory_space<smem>>
    %246 = vector.broadcast %245 : f32 to vector<8x256xf32>
    %247 = arith.mulf %15, %246 : vector<8x256xf32>
    %248 = arith.addf %244, %247 : vector<8x256xf32>
    %c68 = arith.constant 68 : index
    %249 = memref.load %arg0[%c68] : memref<72xf32, #tpu.memory_space<smem>>
    %250 = vector.broadcast %249 : f32 to vector<8x256xf32>
    %251 = arith.mulf %17, %250 : vector<8x256xf32>
    %252 = arith.addf %248, %251 : vector<8x256xf32>
    %c4_50 = arith.constant 4 : index
    %253 = memref.load %arg1[%c4_50] : memref<8xf32, #tpu.memory_space<smem>>
    %254 = vector.broadcast %253 : f32 to vector<8x256xf32>
    %255 = arith.addf %252, %254 : vector<8x256xf32>
    %cst_51 = arith.constant 0.000000e+00 : f32
    %256 = vector.broadcast %cst_51 : f32 to vector<8x256xf32>
    %257 = arith.maximumf %255, %256 : vector<8x256xf32>
    %cst_52 = arith.constant dense<0.000000e+00> : vector<8xf32>
    %258 = vector.multi_reduction <add>, %257, %cst_52 [1] : vector<8x256xf32> to vector<8xf32>
    %259 = vector.shape_cast %258 : vector<8xf32> to vector<8x1xf32>
    %cst_53 = arith.constant 3.906250e-03 : f32
    %260 = vector.broadcast %cst_53 : f32 to vector<8x1xf32>
    %261 = arith.mulf %259, %260 : vector<8x1xf32>
    %c4_54 = arith.constant 4 : index
    %c0_55 = arith.constant 0 : index
    %262 = vector.load %arg3[%c4_54, %c0_55] : memref<8x128xf32, #tpu.memory_space<vmem>>, vector<1x128xf32>
    %263 = vector.broadcast %261 : vector<8x1xf32> to vector<8x128xf32>
    %264 = vector.broadcast %262 : vector<1x128xf32> to vector<8x128xf32>
    %265 = arith.mulf %263, %264 : vector<8x128xf32>
    %266 = arith.addf %217, %265 : vector<8x128xf32>
    %c5_56 = arith.constant 5 : index
    %267 = memref.load %arg0[%c5_56] : memref<72xf32, #tpu.memory_space<smem>>
    %268 = vector.broadcast %267 : f32 to vector<8x256xf32>
    %269 = arith.mulf %1, %268 : vector<8x256xf32>
    %c13 = arith.constant 13 : index
    %270 = memref.load %arg0[%c13] : memref<72xf32, #tpu.memory_space<smem>>
    %271 = vector.broadcast %270 : f32 to vector<8x256xf32>
    %272 = arith.mulf %3, %271 : vector<8x256xf32>
    %273 = arith.addf %269, %272 : vector<8x256xf32>
    %c21 = arith.constant 21 : index
    %274 = memref.load %arg0[%c21] : memref<72xf32, #tpu.memory_space<smem>>
    %275 = vector.broadcast %274 : f32 to vector<8x256xf32>
    %276 = arith.mulf %5, %275 : vector<8x256xf32>
    %277 = arith.addf %273, %276 : vector<8x256xf32>
    %c29 = arith.constant 29 : index
    %278 = memref.load %arg0[%c29] : memref<72xf32, #tpu.memory_space<smem>>
    %279 = vector.broadcast %278 : f32 to vector<8x256xf32>
    %280 = arith.mulf %7, %279 : vector<8x256xf32>
    %281 = arith.addf %277, %280 : vector<8x256xf32>
    %c37 = arith.constant 37 : index
    %282 = memref.load %arg0[%c37] : memref<72xf32, #tpu.memory_space<smem>>
    %283 = vector.broadcast %282 : f32 to vector<8x256xf32>
    %284 = arith.mulf %9, %283 : vector<8x256xf32>
    %285 = arith.addf %281, %284 : vector<8x256xf32>
    %c45 = arith.constant 45 : index
    %286 = memref.load %arg0[%c45] : memref<72xf32, #tpu.memory_space<smem>>
    %287 = vector.broadcast %286 : f32 to vector<8x256xf32>
    %288 = arith.mulf %11, %287 : vector<8x256xf32>
    %289 = arith.addf %285, %288 : vector<8x256xf32>
    %c53 = arith.constant 53 : index
    %290 = memref.load %arg0[%c53] : memref<72xf32, #tpu.memory_space<smem>>
    %291 = vector.broadcast %290 : f32 to vector<8x256xf32>
    %292 = arith.mulf %13, %291 : vector<8x256xf32>
    %293 = arith.addf %289, %292 : vector<8x256xf32>
    %c61 = arith.constant 61 : index
    %294 = memref.load %arg0[%c61] : memref<72xf32, #tpu.memory_space<smem>>
    %295 = vector.broadcast %294 : f32 to vector<8x256xf32>
    %296 = arith.mulf %15, %295 : vector<8x256xf32>
    %297 = arith.addf %293, %296 : vector<8x256xf32>
    %c69 = arith.constant 69 : index
    %298 = memref.load %arg0[%c69] : memref<72xf32, #tpu.memory_space<smem>>
    %299 = vector.broadcast %298 : f32 to vector<8x256xf32>
    %300 = arith.mulf %17, %299 : vector<8x256xf32>
    %301 = arith.addf %297, %300 : vector<8x256xf32>
    %c5_57 = arith.constant 5 : index
    %302 = memref.load %arg1[%c5_57] : memref<8xf32, #tpu.memory_space<smem>>
    %303 = vector.broadcast %302 : f32 to vector<8x256xf32>
    %304 = arith.addf %301, %303 : vector<8x256xf32>
    %cst_58 = arith.constant 0.000000e+00 : f32
    %305 = vector.broadcast %cst_58 : f32 to vector<8x256xf32>
    %306 = arith.maximumf %304, %305 : vector<8x256xf32>
    %cst_59 = arith.constant dense<0.000000e+00> : vector<8xf32>
    %307 = vector.multi_reduction <add>, %306, %cst_59 [1] : vector<8x256xf32> to vector<8xf32>
    %308 = vector.shape_cast %307 : vector<8xf32> to vector<8x1xf32>
    %cst_60 = arith.constant 3.906250e-03 : f32
    %309 = vector.broadcast %cst_60 : f32 to vector<8x1xf32>
    %310 = arith.mulf %308, %309 : vector<8x1xf32>
    %c5_61 = arith.constant 5 : index
    %c0_62 = arith.constant 0 : index
    %311 = vector.load %arg3[%c5_61, %c0_62] : memref<8x128xf32, #tpu.memory_space<vmem>>, vector<1x128xf32>
    %312 = vector.broadcast %310 : vector<8x1xf32> to vector<8x128xf32>
    %313 = vector.broadcast %311 : vector<1x128xf32> to vector<8x128xf32>
    %314 = arith.mulf %312, %313 : vector<8x128xf32>
    %315 = arith.addf %266, %314 : vector<8x128xf32>
    %c6_63 = arith.constant 6 : index
    %316 = memref.load %arg0[%c6_63] : memref<72xf32, #tpu.memory_space<smem>>
    %317 = vector.broadcast %316 : f32 to vector<8x256xf32>
    %318 = arith.mulf %1, %317 : vector<8x256xf32>
    %c14 = arith.constant 14 : index
    %319 = memref.load %arg0[%c14] : memref<72xf32, #tpu.memory_space<smem>>
    %320 = vector.broadcast %319 : f32 to vector<8x256xf32>
    %321 = arith.mulf %3, %320 : vector<8x256xf32>
    %322 = arith.addf %318, %321 : vector<8x256xf32>
    %c22 = arith.constant 22 : index
    %323 = memref.load %arg0[%c22] : memref<72xf32, #tpu.memory_space<smem>>
    %324 = vector.broadcast %323 : f32 to vector<8x256xf32>
    %325 = arith.mulf %5, %324 : vector<8x256xf32>
    %326 = arith.addf %322, %325 : vector<8x256xf32>
    %c30 = arith.constant 30 : index
    %327 = memref.load %arg0[%c30] : memref<72xf32, #tpu.memory_space<smem>>
    %328 = vector.broadcast %327 : f32 to vector<8x256xf32>
    %329 = arith.mulf %7, %328 : vector<8x256xf32>
    %330 = arith.addf %326, %329 : vector<8x256xf32>
    %c38 = arith.constant 38 : index
    %331 = memref.load %arg0[%c38] : memref<72xf32, #tpu.memory_space<smem>>
    %332 = vector.broadcast %331 : f32 to vector<8x256xf32>
    %333 = arith.mulf %9, %332 : vector<8x256xf32>
    %334 = arith.addf %330, %333 : vector<8x256xf32>
    %c46 = arith.constant 46 : index
    %335 = memref.load %arg0[%c46] : memref<72xf32, #tpu.memory_space<smem>>
    %336 = vector.broadcast %335 : f32 to vector<8x256xf32>
    %337 = arith.mulf %11, %336 : vector<8x256xf32>
    %338 = arith.addf %334, %337 : vector<8x256xf32>
    %c54 = arith.constant 54 : index
    %339 = memref.load %arg0[%c54] : memref<72xf32, #tpu.memory_space<smem>>
    %340 = vector.broadcast %339 : f32 to vector<8x256xf32>
    %341 = arith.mulf %13, %340 : vector<8x256xf32>
    %342 = arith.addf %338, %341 : vector<8x256xf32>
    %c62 = arith.constant 62 : index
    %343 = memref.load %arg0[%c62] : memref<72xf32, #tpu.memory_space<smem>>
    %344 = vector.broadcast %343 : f32 to vector<8x256xf32>
    %345 = arith.mulf %15, %344 : vector<8x256xf32>
    %346 = arith.addf %342, %345 : vector<8x256xf32>
    %c70 = arith.constant 70 : index
    %347 = memref.load %arg0[%c70] : memref<72xf32, #tpu.memory_space<smem>>
    %348 = vector.broadcast %347 : f32 to vector<8x256xf32>
    %349 = arith.mulf %17, %348 : vector<8x256xf32>
    %350 = arith.addf %346, %349 : vector<8x256xf32>
    %c6_64 = arith.constant 6 : index
    %351 = memref.load %arg1[%c6_64] : memref<8xf32, #tpu.memory_space<smem>>
    %352 = vector.broadcast %351 : f32 to vector<8x256xf32>
    %353 = arith.addf %350, %352 : vector<8x256xf32>
    %cst_65 = arith.constant 0.000000e+00 : f32
    %354 = vector.broadcast %cst_65 : f32 to vector<8x256xf32>
    %355 = arith.maximumf %353, %354 : vector<8x256xf32>
    %cst_66 = arith.constant dense<0.000000e+00> : vector<8xf32>
    %356 = vector.multi_reduction <add>, %355, %cst_66 [1] : vector<8x256xf32> to vector<8xf32>
    %357 = vector.shape_cast %356 : vector<8xf32> to vector<8x1xf32>
    %cst_67 = arith.constant 3.906250e-03 : f32
    %358 = vector.broadcast %cst_67 : f32 to vector<8x1xf32>
    %359 = arith.mulf %357, %358 : vector<8x1xf32>
    %c6_68 = arith.constant 6 : index
    %c0_69 = arith.constant 0 : index
    %360 = vector.load %arg3[%c6_68, %c0_69] : memref<8x128xf32, #tpu.memory_space<vmem>>, vector<1x128xf32>
    %361 = vector.broadcast %359 : vector<8x1xf32> to vector<8x128xf32>
    %362 = vector.broadcast %360 : vector<1x128xf32> to vector<8x128xf32>
    %363 = arith.mulf %361, %362 : vector<8x128xf32>
    %364 = arith.addf %315, %363 : vector<8x128xf32>
    %c7_70 = arith.constant 7 : index
    %365 = memref.load %arg0[%c7_70] : memref<72xf32, #tpu.memory_space<smem>>
    %366 = vector.broadcast %365 : f32 to vector<8x256xf32>
    %367 = arith.mulf %1, %366 : vector<8x256xf32>
    %c15 = arith.constant 15 : index
    %368 = memref.load %arg0[%c15] : memref<72xf32, #tpu.memory_space<smem>>
    %369 = vector.broadcast %368 : f32 to vector<8x256xf32>
    %370 = arith.mulf %3, %369 : vector<8x256xf32>
    %371 = arith.addf %367, %370 : vector<8x256xf32>
    %c23 = arith.constant 23 : index
    %372 = memref.load %arg0[%c23] : memref<72xf32, #tpu.memory_space<smem>>
    %373 = vector.broadcast %372 : f32 to vector<8x256xf32>
    %374 = arith.mulf %5, %373 : vector<8x256xf32>
    %375 = arith.addf %371, %374 : vector<8x256xf32>
    %c31 = arith.constant 31 : index
    %376 = memref.load %arg0[%c31] : memref<72xf32, #tpu.memory_space<smem>>
    %377 = vector.broadcast %376 : f32 to vector<8x256xf32>
    %378 = arith.mulf %7, %377 : vector<8x256xf32>
    %379 = arith.addf %375, %378 : vector<8x256xf32>
    %c39 = arith.constant 39 : index
    %380 = memref.load %arg0[%c39] : memref<72xf32, #tpu.memory_space<smem>>
    %381 = vector.broadcast %380 : f32 to vector<8x256xf32>
    %382 = arith.mulf %9, %381 : vector<8x256xf32>
    %383 = arith.addf %379, %382 : vector<8x256xf32>
    %c47 = arith.constant 47 : index
    %384 = memref.load %arg0[%c47] : memref<72xf32, #tpu.memory_space<smem>>
    %385 = vector.broadcast %384 : f32 to vector<8x256xf32>
    %386 = arith.mulf %11, %385 : vector<8x256xf32>
    %387 = arith.addf %383, %386 : vector<8x256xf32>
    %c55 = arith.constant 55 : index
    %388 = memref.load %arg0[%c55] : memref<72xf32, #tpu.memory_space<smem>>
    %389 = vector.broadcast %388 : f32 to vector<8x256xf32>
    %390 = arith.mulf %13, %389 : vector<8x256xf32>
    %391 = arith.addf %387, %390 : vector<8x256xf32>
    %c63 = arith.constant 63 : index
    %392 = memref.load %arg0[%c63] : memref<72xf32, #tpu.memory_space<smem>>
    %393 = vector.broadcast %392 : f32 to vector<8x256xf32>
    %394 = arith.mulf %15, %393 : vector<8x256xf32>
    %395 = arith.addf %391, %394 : vector<8x256xf32>
    %c71 = arith.constant 71 : index
    %396 = memref.load %arg0[%c71] : memref<72xf32, #tpu.memory_space<smem>>
    %397 = vector.broadcast %396 : f32 to vector<8x256xf32>
    %398 = arith.mulf %17, %397 : vector<8x256xf32>
    %399 = arith.addf %395, %398 : vector<8x256xf32>
    %c7_71 = arith.constant 7 : index
    %400 = memref.load %arg1[%c7_71] : memref<8xf32, #tpu.memory_space<smem>>
    %401 = vector.broadcast %400 : f32 to vector<8x256xf32>
    %402 = arith.addf %399, %401 : vector<8x256xf32>
    %cst_72 = arith.constant 0.000000e+00 : f32
    %403 = vector.broadcast %cst_72 : f32 to vector<8x256xf32>
    %404 = arith.maximumf %402, %403 : vector<8x256xf32>
    %cst_73 = arith.constant dense<0.000000e+00> : vector<8xf32>
    %405 = vector.multi_reduction <add>, %404, %cst_73 [1] : vector<8x256xf32> to vector<8xf32>
    %406 = vector.shape_cast %405 : vector<8xf32> to vector<8x1xf32>
    %cst_74 = arith.constant 3.906250e-03 : f32
    %407 = vector.broadcast %cst_74 : f32 to vector<8x1xf32>
    %408 = arith.mulf %406, %407 : vector<8x1xf32>
    %c7_75 = arith.constant 7 : index
    %c0_76 = arith.constant 0 : index
    %409 = vector.load %arg3[%c7_75, %c0_76] : memref<8x128xf32, #tpu.memory_space<vmem>>, vector<1x128xf32>
    %410 = vector.broadcast %408 : vector<8x1xf32> to vector<8x128xf32>
    %411 = vector.broadcast %409 : vector<1x128xf32> to vector<8x128xf32>
    %412 = arith.mulf %410, %411 : vector<8x128xf32>
    %413 = arith.addf %364, %412 : vector<8x128xf32>
    %c0_77 = arith.constant 0 : index
    %c0_78 = arith.constant 0 : index
    %414 = vector.load %arg5[%c0_77, %c0_78] : memref<1x128xf32, #tpu.memory_space<vmem>>, vector<1x128xf32>
    %c0_79 = arith.constant 0 : index
    %c0_80 = arith.constant 0 : index
    %c0_81 = arith.constant 0 : index
    %415 = vector.load %arg6[%c0_79, %c0_80, %c0_81] : memref<2x128x384xbf16, #tpu.memory_space<vmem>>, vector<1x128x384xbf16>
    %416 = vector.shape_cast %415 : vector<1x128x384xbf16> to vector<128x384xbf16>
    %c0_82 = arith.constant 0 : index
    %c0_83 = arith.constant 0 : index
    %c0_84 = arith.constant 0 : index
    %417 = vector.load %arg7[%c0_82, %c0_83, %c0_84] : memref<2x1x384xf32, #tpu.memory_space<vmem>>, vector<1x1x384xf32>
    %418 = vector.shape_cast %417 : vector<1x1x384xf32> to vector<1x384xf32>
    %c0_85 = arith.constant 0 : index
    %c0_86 = arith.constant 0 : index
    %c0_87 = arith.constant 0 : index
    %419 = vector.load %arg8[%c0_85, %c0_86, %c0_87] : memref<2x128x128xbf16, #tpu.memory_space<vmem>>, vector<1x128x128xbf16>
    %420 = vector.shape_cast %419 : vector<1x128x128xbf16> to vector<128x128xbf16>
    %c0_88 = arith.constant 0 : index
    %c0_89 = arith.constant 0 : index
    %c0_90 = arith.constant 0 : index
    %421 = vector.load %arg9[%c0_88, %c0_89, %c0_90] : memref<2x1x128xf32, #tpu.memory_space<vmem>>, vector<1x1x128xf32>
    %422 = vector.shape_cast %421 : vector<1x1x128xf32> to vector<1x128xf32>
    %c0_91 = arith.constant 0 : index
    %c0_92 = arith.constant 0 : index
    %c0_93 = arith.constant 0 : index
    %423 = vector.load %arg10[%c0_91, %c0_92, %c0_93] : memref<2x1x128xf32, #tpu.memory_space<vmem>>, vector<1x1x128xf32>
    %424 = vector.shape_cast %423 : vector<1x1x128xf32> to vector<1x128xf32>
    %c0_94 = arith.constant 0 : index
    %c0_95 = arith.constant 0 : index
    %c0_96 = arith.constant 0 : index
    %425 = vector.load %arg11[%c0_94, %c0_95, %c0_96] : memref<2x1x128xf32, #tpu.memory_space<vmem>>, vector<1x1x128xf32>
    %426 = vector.shape_cast %425 : vector<1x1x128xf32> to vector<1x128xf32>
    %c0_97 = arith.constant 0 : index
    %c0_98 = arith.constant 0 : index
    %c0_99 = arith.constant 0 : index
    %427 = vector.load %arg12[%c0_97, %c0_98, %c0_99] : memref<2x128x128xbf16, #tpu.memory_space<vmem>>, vector<1x128x128xbf16>
    %428 = vector.shape_cast %427 : vector<1x128x128xbf16> to vector<128x128xbf16>
    %c0_100 = arith.constant 0 : index
    %c0_101 = arith.constant 0 : index
    %c0_102 = arith.constant 0 : index
    %429 = vector.load %arg13[%c0_100, %c0_101, %c0_102] : memref<2x1x128xf32, #tpu.memory_space<vmem>>, vector<1x1x128xf32>
    %430 = vector.shape_cast %429 : vector<1x1x128xf32> to vector<1x128xf32>
    %c0_103 = arith.constant 0 : index
    %c0_104 = arith.constant 0 : index
    %c0_105 = arith.constant 0 : index
    %431 = vector.load %arg14[%c0_103, %c0_104, %c0_105] : memref<2x128x128xbf16, #tpu.memory_space<vmem>>, vector<1x128x128xbf16>
    %432 = vector.shape_cast %431 : vector<1x128x128xbf16> to vector<128x128xbf16>
    %c0_106 = arith.constant 0 : index
    %c0_107 = arith.constant 0 : index
    %c0_108 = arith.constant 0 : index
    %433 = vector.load %arg15[%c0_106, %c0_107, %c0_108] : memref<2x1x128xf32, #tpu.memory_space<vmem>>, vector<1x1x128xf32>
    %434 = vector.shape_cast %433 : vector<1x1x128xf32> to vector<1x128xf32>
    %c0_109 = arith.constant 0 : index
    %c0_110 = arith.constant 0 : index
    %c0_111 = arith.constant 0 : index
    %435 = vector.load %arg16[%c0_109, %c0_110, %c0_111] : memref<2x1x128xf32, #tpu.memory_space<vmem>>, vector<1x1x128xf32>
    %436 = vector.shape_cast %435 : vector<1x1x128xf32> to vector<1x128xf32>
    %c0_112 = arith.constant 0 : index
    %c0_113 = arith.constant 0 : index
    %c0_114 = arith.constant 0 : index
    %437 = vector.load %arg17[%c0_112, %c0_113, %c0_114] : memref<2x1x128xf32, #tpu.memory_space<vmem>>, vector<1x1x128xf32>
    %438 = vector.shape_cast %437 : vector<1x1x128xf32> to vector<1x128xf32>
    %439 = arith.truncf %413 : vector<8x128xf32> to vector<8x128xbf16>
    %cst_115 = arith.constant dense<0.000000e+00> : vector<8x384xf32>
    %440 = tpu.matmul %439, %416, %cst_115 {dimension_numbers = #tpu.dot_dimension_numbers<[1], [0], [0], [1], [0, 0, 1, 1], [], []>} : vector<8x128xbf16>, vector<128x384xbf16>, vector<8x384xf32> -> vector<8x384xf32>
    %441 = vector.broadcast %418 : vector<1x384xf32> to vector<8x384xf32>
    %442 = arith.addf %440, %441 : vector<8x384xf32>
    %443 = arith.truncf %442 : vector<8x384xf32> to vector<8x384xbf16>
    %444 = vector.extract_strided_slice %443 {offsets = [0, 0], sizes = [8, 128], strides = [1, 1]} : vector<8x384xbf16> to vector<8x128xbf16>
    %445 = vector.extract_strided_slice %443 {offsets = [0, 128], sizes = [8, 128], strides = [1, 1]} : vector<8x384xbf16> to vector<8x128xbf16>
    %446 = vector.extract_strided_slice %443 {offsets = [0, 256], sizes = [8, 128], strides = [1, 1]} : vector<8x384xbf16> to vector<8x128xbf16>
    %cst_116 = arith.constant dense<0.000000e+00> : vector<8x8xf32>
    %447 = tpu.matmul %444, %445, %cst_116 {dimension_numbers = #tpu.dot_dimension_numbers<[1], [1], [0], [0], [0, 0, 1, 0], [], []>} : vector<8x128xbf16>, vector<8x128xbf16>, vector<8x8xf32> -> vector<8x8xf32>
    %cst_117 = arith.constant 0.176776692 : f32
    %448 = vector.broadcast %cst_117 : f32 to vector<8x8xf32>
    %449 = arith.mulf %447, %448 : vector<8x8xf32>
    %cst_118 = arith.constant dense<0xFF800000> : vector<8xf32>
    %450 = vector.multi_reduction <maximumf>, %449, %cst_118 [1] : vector<8x8xf32> to vector<8xf32>
    %451 = vector.shape_cast %450 : vector<8xf32> to vector<8x1xf32>
    %452 = vector.broadcast %451 : vector<8x1xf32> to vector<8x8xf32>
    %453 = arith.subf %449, %452 : vector<8x8xf32>
    %454 = math.exp %453 : vector<8x8xf32>
    %cst_119 = arith.constant dense<0.000000e+00> : vector<8xf32>
    %455 = vector.multi_reduction <add>, %454, %cst_119 [1] : vector<8x8xf32> to vector<8xf32>
    %456 = vector.shape_cast %455 : vector<8xf32> to vector<8x1xf32>
    %457 = tpu.reciprocal %456 {approx = true} : vector<8x1xf32> -> vector<8x1xf32>
    %458 = vector.broadcast %457 : vector<8x1xf32> to vector<8x8xf32>
    %459 = arith.mulf %454, %458 : vector<8x8xf32>
    %460 = arith.truncf %459 : vector<8x8xf32> to vector<8x8xbf16>
    %cst_120 = arith.constant dense<0.000000e+00> : vector<8x128xf32>
    %461 = tpu.matmul %460, %446, %cst_120 {dimension_numbers = #tpu.dot_dimension_numbers<[1], [0], [0], [1], [0, 0, 1, 1], [], []>} : vector<8x8xbf16>, vector<8x128xbf16>, vector<8x128xf32> -> vector<8x128xf32>
    %462 = arith.truncf %461 : vector<8x128xf32> to vector<8x128xbf16>
    %cst_121 = arith.constant dense<0.000000e+00> : vector<8x128xf32>
    %463 = tpu.matmul %462, %420, %cst_121 {dimension_numbers = #tpu.dot_dimension_numbers<[1], [0], [0], [1], [0, 0, 1, 1], [], []>} : vector<8x128xbf16>, vector<128x128xbf16>, vector<8x128xf32> -> vector<8x128xf32>
    %464 = vector.broadcast %422 : vector<1x128xf32> to vector<8x128xf32>
    %465 = arith.addf %463, %464 : vector<8x128xf32>
    %466 = arith.addf %413, %465 : vector<8x128xf32>
    %467 = vector.broadcast %414 : vector<1x128xf32> to vector<8x128xf32>
    %468 = arith.mulf %466, %467 : vector<8x128xf32>
    %cst_122 = arith.constant dense<0.000000e+00> : vector<8xf32>
    %469 = vector.multi_reduction <add>, %468, %cst_122 [1] : vector<8x128xf32> to vector<8xf32>
    %470 = vector.shape_cast %469 : vector<8xf32> to vector<8x1xf32>
    %cst_123 = arith.constant 3.200000e+01 : f32
    %471 = vector.broadcast %cst_123 : f32 to vector<8x1xf32>
    %472 = arith.divf %470, %471 : vector<8x1xf32>
    %473 = vector.broadcast %472 : vector<8x1xf32> to vector<8x128xf32>
    %474 = arith.subf %466, %473 : vector<8x128xf32>
    %475 = vector.broadcast %414 : vector<1x128xf32> to vector<8x128xf32>
    %476 = arith.mulf %474, %475 : vector<8x128xf32>
    %477 = arith.mulf %476, %476 : vector<8x128xf32>
    %cst_124 = arith.constant dense<0.000000e+00> : vector<8xf32>
    %478 = vector.multi_reduction <add>, %477, %cst_124 [1] : vector<8x128xf32> to vector<8xf32>
    %479 = vector.shape_cast %478 : vector<8xf32> to vector<8x1xf32>
    %cst_125 = arith.constant 3.200000e+01 : f32
    %480 = vector.broadcast %cst_125 : f32 to vector<8x1xf32>
    %481 = arith.divf %479, %480 : vector<8x1xf32>
    %482 = vector.broadcast %472 : vector<8x1xf32> to vector<8x128xf32>
    %483 = arith.subf %466, %482 : vector<8x128xf32>
    %cst_126 = arith.constant 9.99999996E-13 : f32
    %484 = vector.broadcast %cst_126 : f32 to vector<8x1xf32>
    %485 = arith.addf %481, %484 : vector<8x1xf32>
    %486 = math.rsqrt %485 : vector<8x1xf32>
    %487 = vector.broadcast %486 : vector<8x1xf32> to vector<8x128xf32>
    %488 = arith.mulf %483, %487 : vector<8x128xf32>
    %489 = vector.broadcast %424 : vector<1x128xf32> to vector<8x128xf32>
    %490 = arith.mulf %488, %489 : vector<8x128xf32>
    %491 = vector.broadcast %426 : vector<1x128xf32> to vector<8x128xf32>
    %492 = arith.addf %490, %491 : vector<8x128xf32>
    %493 = arith.truncf %492 : vector<8x128xf32> to vector<8x128xbf16>
    %cst_127 = arith.constant dense<0.000000e+00> : vector<8x128xf32>
    %494 = tpu.matmul %493, %428, %cst_127 {dimension_numbers = #tpu.dot_dimension_numbers<[1], [0], [0], [1], [0, 0, 1, 1], [], []>} : vector<8x128xbf16>, vector<128x128xbf16>, vector<8x128xf32> -> vector<8x128xf32>
    %495 = vector.broadcast %430 : vector<1x128xf32> to vector<8x128xf32>
    %496 = arith.addf %494, %495 : vector<8x128xf32>
    %cst_128 = arith.constant 0.000000e+00 : f32
    %497 = vector.broadcast %cst_128 : f32 to vector<8x128xf32>
    %498 = arith.maximumf %496, %497 : vector<8x128xf32>
    %499 = arith.truncf %498 : vector<8x128xf32> to vector<8x128xbf16>
    %cst_129 = arith.constant dense<0.000000e+00> : vector<8x128xf32>
    %500 = tpu.matmul %499, %432, %cst_129 {dimension_numbers = #tpu.dot_dimension_numbers<[1], [0], [0], [1], [0, 0, 1, 1], [], []>} : vector<8x128xbf16>, vector<128x128xbf16>, vector<8x128xf32> -> vector<8x128xf32>
    %501 = vector.broadcast %434 : vector<1x128xf32> to vector<8x128xf32>
    %502 = arith.addf %500, %501 : vector<8x128xf32>
    %503 = arith.addf %492, %502 : vector<8x128xf32>
    %504 = vector.broadcast %414 : vector<1x128xf32> to vector<8x128xf32>
    %505 = arith.mulf %503, %504 : vector<8x128xf32>
    %cst_130 = arith.constant dense<0.000000e+00> : vector<8xf32>
    %506 = vector.multi_reduction <add>, %505, %cst_130 [1] : vector<8x128xf32> to vector<8xf32>
    %507 = vector.shape_cast %506 : vector<8xf32> to vector<8x1xf32>
    %cst_131 = arith.constant 3.200000e+01 : f32
    %508 = vector.broadcast %cst_131 : f32 to vector<8x1xf32>
    %509 = arith.divf %507, %508 : vector<8x1xf32>
    %510 = vector.broadcast %509 : vector<8x1xf32> to vector<8x128xf32>
    %511 = arith.subf %503, %510 : vector<8x128xf32>
    %512 = vector.broadcast %414 : vector<1x128xf32> to vector<8x128xf32>
    %513 = arith.mulf %511, %512 : vector<8x128xf32>
    %514 = arith.mulf %513, %513 : vector<8x128xf32>
    %cst_132 = arith.constant dense<0.000000e+00> : vector<8xf32>
    %515 = vector.multi_reduction <add>, %514, %cst_132 [1] : vector<8x128xf32> to vector<8xf32>
    %516 = vector.shape_cast %515 : vector<8xf32> to vector<8x1xf32>
    %cst_133 = arith.constant 3.200000e+01 : f32
    %517 = vector.broadcast %cst_133 : f32 to vector<8x1xf32>
    %518 = arith.divf %516, %517 : vector<8x1xf32>
    %519 = vector.broadcast %509 : vector<8x1xf32> to vector<8x128xf32>
    %520 = arith.subf %503, %519 : vector<8x128xf32>
    %cst_134 = arith.constant 9.99999996E-13 : f32
    %521 = vector.broadcast %cst_134 : f32 to vector<8x1xf32>
    %522 = arith.addf %518, %521 : vector<8x1xf32>
    %523 = math.rsqrt %522 : vector<8x1xf32>
    %524 = vector.broadcast %523 : vector<8x1xf32> to vector<8x128xf32>
    %525 = arith.mulf %520, %524 : vector<8x128xf32>
    %526 = vector.broadcast %436 : vector<1x128xf32> to vector<8x128xf32>
    %527 = arith.mulf %525, %526 : vector<8x128xf32>
    %528 = vector.broadcast %438 : vector<1x128xf32> to vector<8x128xf32>
    %529 = arith.addf %527, %528 : vector<8x128xf32>
    %c1_135 = arith.constant 1 : index
    %c0_136 = arith.constant 0 : index
    %c0_137 = arith.constant 0 : index
    %530 = vector.load %arg6[%c1_135, %c0_136, %c0_137] : memref<2x128x384xbf16, #tpu.memory_space<vmem>>, vector<1x128x384xbf16>
    %531 = vector.shape_cast %530 : vector<1x128x384xbf16> to vector<128x384xbf16>
    %c1_138 = arith.constant 1 : index
    %c0_139 = arith.constant 0 : index
    %c0_140 = arith.constant 0 : index
    %532 = vector.load %arg7[%c1_138, %c0_139, %c0_140] : memref<2x1x384xf32, #tpu.memory_space<vmem>>, vector<1x1x384xf32>
    %533 = vector.shape_cast %532 : vector<1x1x384xf32> to vector<1x384xf32>
    %c1_141 = arith.constant 1 : index
    %c0_142 = arith.constant 0 : index
    %c0_143 = arith.constant 0 : index
    %534 = vector.load %arg8[%c1_141, %c0_142, %c0_143] : memref<2x128x128xbf16, #tpu.memory_space<vmem>>, vector<1x128x128xbf16>
    %535 = vector.shape_cast %534 : vector<1x128x128xbf16> to vector<128x128xbf16>
    %c1_144 = arith.constant 1 : index
    %c0_145 = arith.constant 0 : index
    %c0_146 = arith.constant 0 : index
    %536 = vector.load %arg9[%c1_144, %c0_145, %c0_146] : memref<2x1x128xf32, #tpu.memory_space<vmem>>, vector<1x1x128xf32>
    %537 = vector.shape_cast %536 : vector<1x1x128xf32> to vector<1x128xf32>
    %c1_147 = arith.constant 1 : index
    %c0_148 = arith.constant 0 : index
    %c0_149 = arith.constant 0 : index
    %538 = vector.load %arg10[%c1_147, %c0_148, %c0_149] : memref<2x1x128xf32, #tpu.memory_space<vmem>>, vector<1x1x128xf32>
    %539 = vector.shape_cast %538 : vector<1x1x128xf32> to vector<1x128xf32>
    %c1_150 = arith.constant 1 : index
    %c0_151 = arith.constant 0 : index
    %c0_152 = arith.constant 0 : index
    %540 = vector.load %arg11[%c1_150, %c0_151, %c0_152] : memref<2x1x128xf32, #tpu.memory_space<vmem>>, vector<1x1x128xf32>
    %541 = vector.shape_cast %540 : vector<1x1x128xf32> to vector<1x128xf32>
    %c1_153 = arith.constant 1 : index
    %c0_154 = arith.constant 0 : index
    %c0_155 = arith.constant 0 : index
    %542 = vector.load %arg12[%c1_153, %c0_154, %c0_155] : memref<2x128x128xbf16, #tpu.memory_space<vmem>>, vector<1x128x128xbf16>
    %543 = vector.shape_cast %542 : vector<1x128x128xbf16> to vector<128x128xbf16>
    %c1_156 = arith.constant 1 : index
    %c0_157 = arith.constant 0 : index
    %c0_158 = arith.constant 0 : index
    %544 = vector.load %arg13[%c1_156, %c0_157, %c0_158] : memref<2x1x128xf32, #tpu.memory_space<vmem>>, vector<1x1x128xf32>
    %545 = vector.shape_cast %544 : vector<1x1x128xf32> to vector<1x128xf32>
    %c1_159 = arith.constant 1 : index
    %c0_160 = arith.constant 0 : index
    %c0_161 = arith.constant 0 : index
    %546 = vector.load %arg14[%c1_159, %c0_160, %c0_161] : memref<2x128x128xbf16, #tpu.memory_space<vmem>>, vector<1x128x128xbf16>
    %547 = vector.shape_cast %546 : vector<1x128x128xbf16> to vector<128x128xbf16>
    %c1_162 = arith.constant 1 : index
    %c0_163 = arith.constant 0 : index
    %c0_164 = arith.constant 0 : index
    %548 = vector.load %arg15[%c1_162, %c0_163, %c0_164] : memref<2x1x128xf32, #tpu.memory_space<vmem>>, vector<1x1x128xf32>
    %549 = vector.shape_cast %548 : vector<1x1x128xf32> to vector<1x128xf32>
    %c1_165 = arith.constant 1 : index
    %c0_166 = arith.constant 0 : index
    %c0_167 = arith.constant 0 : index
    %550 = vector.load %arg16[%c1_165, %c0_166, %c0_167] : memref<2x1x128xf32, #tpu.memory_space<vmem>>, vector<1x1x128xf32>
    %551 = vector.shape_cast %550 : vector<1x1x128xf32> to vector<1x128xf32>
    %c1_168 = arith.constant 1 : index
    %c0_169 = arith.constant 0 : index
    %c0_170 = arith.constant 0 : index
    %552 = vector.load %arg17[%c1_168, %c0_169, %c0_170] : memref<2x1x128xf32, #tpu.memory_space<vmem>>, vector<1x1x128xf32>
    %553 = vector.shape_cast %552 : vector<1x1x128xf32> to vector<1x128xf32>
    %554 = arith.truncf %529 : vector<8x128xf32> to vector<8x128xbf16>
    %cst_171 = arith.constant dense<0.000000e+00> : vector<8x384xf32>
    %555 = tpu.matmul %554, %531, %cst_171 {dimension_numbers = #tpu.dot_dimension_numbers<[1], [0], [0], [1], [0, 0, 1, 1], [], []>} : vector<8x128xbf16>, vector<128x384xbf16>, vector<8x384xf32> -> vector<8x384xf32>
    %556 = vector.broadcast %533 : vector<1x384xf32> to vector<8x384xf32>
    %557 = arith.addf %555, %556 : vector<8x384xf32>
    %558 = arith.truncf %557 : vector<8x384xf32> to vector<8x384xbf16>
    %559 = vector.extract_strided_slice %558 {offsets = [0, 0], sizes = [8, 128], strides = [1, 1]} : vector<8x384xbf16> to vector<8x128xbf16>
    %560 = vector.extract_strided_slice %558 {offsets = [0, 128], sizes = [8, 128], strides = [1, 1]} : vector<8x384xbf16> to vector<8x128xbf16>
    %561 = vector.extract_strided_slice %558 {offsets = [0, 256], sizes = [8, 128], strides = [1, 1]} : vector<8x384xbf16> to vector<8x128xbf16>
    %cst_172 = arith.constant dense<0.000000e+00> : vector<8x8xf32>
    %562 = tpu.matmul %559, %560, %cst_172 {dimension_numbers = #tpu.dot_dimension_numbers<[1], [1], [0], [0], [0, 0, 1, 0], [], []>} : vector<8x128xbf16>, vector<8x128xbf16>, vector<8x8xf32> -> vector<8x8xf32>
    %cst_173 = arith.constant 0.176776692 : f32
    %563 = vector.broadcast %cst_173 : f32 to vector<8x8xf32>
    %564 = arith.mulf %562, %563 : vector<8x8xf32>
    %cst_174 = arith.constant dense<0xFF800000> : vector<8xf32>
    %565 = vector.multi_reduction <maximumf>, %564, %cst_174 [1] : vector<8x8xf32> to vector<8xf32>
    %566 = vector.shape_cast %565 : vector<8xf32> to vector<8x1xf32>
    %567 = vector.broadcast %566 : vector<8x1xf32> to vector<8x8xf32>
    %568 = arith.subf %564, %567 : vector<8x8xf32>
    %569 = math.exp %568 : vector<8x8xf32>
    %cst_175 = arith.constant dense<0.000000e+00> : vector<8xf32>
    %570 = vector.multi_reduction <add>, %569, %cst_175 [1] : vector<8x8xf32> to vector<8xf32>
    %571 = vector.shape_cast %570 : vector<8xf32> to vector<8x1xf32>
    %572 = tpu.reciprocal %571 {approx = true} : vector<8x1xf32> -> vector<8x1xf32>
    %573 = vector.broadcast %572 : vector<8x1xf32> to vector<8x8xf32>
    %574 = arith.mulf %569, %573 : vector<8x8xf32>
    %575 = arith.truncf %574 : vector<8x8xf32> to vector<8x8xbf16>
    %cst_176 = arith.constant dense<0.000000e+00> : vector<8x128xf32>
    %576 = tpu.matmul %575, %561, %cst_176 {dimension_numbers = #tpu.dot_dimension_numbers<[1], [0], [0], [1], [0, 0, 1, 1], [], []>} : vector<8x8xbf16>, vector<8x128xbf16>, vector<8x128xf32> -> vector<8x128xf32>
    %577 = arith.truncf %576 : vector<8x128xf32> to vector<8x128xbf16>
    %cst_177 = arith.constant dense<0.000000e+00> : vector<8x128xf32>
    %578 = tpu.matmul %577, %535, %cst_177 {dimension_numbers = #tpu.dot_dimension_numbers<[1], [0], [0], [1], [0, 0, 1, 1], [], []>} : vector<8x128xbf16>, vector<128x128xbf16>, vector<8x128xf32> -> vector<8x128xf32>
    %579 = vector.broadcast %537 : vector<1x128xf32> to vector<8x128xf32>
    %580 = arith.addf %578, %579 : vector<8x128xf32>
    %581 = arith.addf %529, %580 : vector<8x128xf32>
    %582 = vector.broadcast %414 : vector<1x128xf32> to vector<8x128xf32>
    %583 = arith.mulf %581, %582 : vector<8x128xf32>
    %cst_178 = arith.constant dense<0.000000e+00> : vector<8xf32>
    %584 = vector.multi_reduction <add>, %583, %cst_178 [1] : vector<8x128xf32> to vector<8xf32>
    %585 = vector.shape_cast %584 : vector<8xf32> to vector<8x1xf32>
    %cst_179 = arith.constant 3.200000e+01 : f32
    %586 = vector.broadcast %cst_179 : f32 to vector<8x1xf32>
    %587 = arith.divf %585, %586 : vector<8x1xf32>
    %588 = vector.broadcast %587 : vector<8x1xf32> to vector<8x128xf32>
    %589 = arith.subf %581, %588 : vector<8x128xf32>
    %590 = vector.broadcast %414 : vector<1x128xf32> to vector<8x128xf32>
    %591 = arith.mulf %589, %590 : vector<8x128xf32>
    %592 = arith.mulf %591, %591 : vector<8x128xf32>
    %cst_180 = arith.constant dense<0.000000e+00> : vector<8xf32>
    %593 = vector.multi_reduction <add>, %592, %cst_180 [1] : vector<8x128xf32> to vector<8xf32>
    %594 = vector.shape_cast %593 : vector<8xf32> to vector<8x1xf32>
    %cst_181 = arith.constant 3.200000e+01 : f32
    %595 = vector.broadcast %cst_181 : f32 to vector<8x1xf32>
    %596 = arith.divf %594, %595 : vector<8x1xf32>
    %597 = vector.broadcast %587 : vector<8x1xf32> to vector<8x128xf32>
    %598 = arith.subf %581, %597 : vector<8x128xf32>
    %cst_182 = arith.constant 9.99999996E-13 : f32
    %599 = vector.broadcast %cst_182 : f32 to vector<8x1xf32>
    %600 = arith.addf %596, %599 : vector<8x1xf32>
    %601 = math.rsqrt %600 : vector<8x1xf32>
    %602 = vector.broadcast %601 : vector<8x1xf32> to vector<8x128xf32>
    %603 = arith.mulf %598, %602 : vector<8x128xf32>
    %604 = vector.broadcast %539 : vector<1x128xf32> to vector<8x128xf32>
    %605 = arith.mulf %603, %604 : vector<8x128xf32>
    %606 = vector.broadcast %541 : vector<1x128xf32> to vector<8x128xf32>
    %607 = arith.addf %605, %606 : vector<8x128xf32>
    %608 = arith.truncf %607 : vector<8x128xf32> to vector<8x128xbf16>
    %cst_183 = arith.constant dense<0.000000e+00> : vector<8x128xf32>
    %609 = tpu.matmul %608, %543, %cst_183 {dimension_numbers = #tpu.dot_dimension_numbers<[1], [0], [0], [1], [0, 0, 1, 1], [], []>} : vector<8x128xbf16>, vector<128x128xbf16>, vector<8x128xf32> -> vector<8x128xf32>
    %610 = vector.broadcast %545 : vector<1x128xf32> to vector<8x128xf32>
    %611 = arith.addf %609, %610 : vector<8x128xf32>
    %cst_184 = arith.constant 0.000000e+00 : f32
    %612 = vector.broadcast %cst_184 : f32 to vector<8x128xf32>
    %613 = arith.maximumf %611, %612 : vector<8x128xf32>
    %614 = arith.truncf %613 : vector<8x128xf32> to vector<8x128xbf16>
    %cst_185 = arith.constant dense<0.000000e+00> : vector<8x128xf32>
    %615 = tpu.matmul %614, %547, %cst_185 {dimension_numbers = #tpu.dot_dimension_numbers<[1], [0], [0], [1], [0, 0, 1, 1], [], []>} : vector<8x128xbf16>, vector<128x128xbf16>, vector<8x128xf32> -> vector<8x128xf32>
    %616 = vector.broadcast %549 : vector<1x128xf32> to vector<8x128xf32>
    %617 = arith.addf %615, %616 : vector<8x128xf32>
    %618 = arith.addf %607, %617 : vector<8x128xf32>
    %619 = vector.broadcast %414 : vector<1x128xf32> to vector<8x128xf32>
    %620 = arith.mulf %618, %619 : vector<8x128xf32>
    %cst_186 = arith.constant dense<0.000000e+00> : vector<8xf32>
    %621 = vector.multi_reduction <add>, %620, %cst_186 [1] : vector<8x128xf32> to vector<8xf32>
    %622 = vector.shape_cast %621 : vector<8xf32> to vector<8x1xf32>
    %cst_187 = arith.constant 3.200000e+01 : f32
    %623 = vector.broadcast %cst_187 : f32 to vector<8x1xf32>
    %624 = arith.divf %622, %623 : vector<8x1xf32>
    %625 = vector.broadcast %624 : vector<8x1xf32> to vector<8x128xf32>
    %626 = arith.subf %618, %625 : vector<8x128xf32>
    %627 = vector.broadcast %414 : vector<1x128xf32> to vector<8x128xf32>
    %628 = arith.mulf %626, %627 : vector<8x128xf32>
    %629 = arith.mulf %628, %628 : vector<8x128xf32>
    %cst_188 = arith.constant dense<0.000000e+00> : vector<8xf32>
    %630 = vector.multi_reduction <add>, %629, %cst_188 [1] : vector<8x128xf32> to vector<8xf32>
    %631 = vector.shape_cast %630 : vector<8xf32> to vector<8x1xf32>
    %cst_189 = arith.constant 3.200000e+01 : f32
    %632 = vector.broadcast %cst_189 : f32 to vector<8x1xf32>
    %633 = arith.divf %631, %632 : vector<8x1xf32>
    %634 = vector.broadcast %624 : vector<8x1xf32> to vector<8x128xf32>
    %635 = arith.subf %618, %634 : vector<8x128xf32>
    %cst_190 = arith.constant 9.99999996E-13 : f32
    %636 = vector.broadcast %cst_190 : f32 to vector<8x1xf32>
    %637 = arith.addf %633, %636 : vector<8x1xf32>
    %638 = math.rsqrt %637 : vector<8x1xf32>
    %639 = vector.broadcast %638 : vector<8x1xf32> to vector<8x128xf32>
    %640 = arith.mulf %635, %639 : vector<8x128xf32>
    %641 = vector.broadcast %551 : vector<1x128xf32> to vector<8x128xf32>
    %642 = arith.mulf %640, %641 : vector<8x128xf32>
    %643 = vector.broadcast %553 : vector<1x128xf32> to vector<8x128xf32>
    %644 = arith.addf %642, %643 : vector<8x128xf32>
    %c0_191 = arith.constant 0 : index
    %c0_192 = arith.constant 0 : index
    %645 = vector.load %arg18[%c0_191, %c0_192] : memref<8x128xf32, #tpu.memory_space<vmem>>, vector<8x128xf32>
    tpu.vector_store %arg18[%c0_191, %c0_192], %644 {strides = array<i32>} : memref<8x128xf32, #tpu.memory_space<vmem>>, vector<8x128xf32>,
    return
  }
}

</mosaic_0001>

<bundles_post_ra>
// kernel: tpu_custom_call.1
= control target key start
LH: loop header
LB: loop body
LE: loop exit
PB: predicated region body
PF: predicated region fallthrough
CT: control target
= control target key end

     0   :  { %s4076_s0 = inlined_call_operand.hbm [shape: f32[72], index: 0, kind: input, shape index: {}]   ;;  %s4077_s1 = inlined_call_operand.hbm [shape: f32[8], index: 1, kind: input, shape index: {}]   ;;  %s4078_s2 = inlined_call_operand.hbm [shape: f32[9,8,256], index: 2, kind: input, shape index: {}]   ;;  %s4079_s3 = inlined_call_operand.vmem [shape: f32[8,128], index: 3, kind: input, shape index: {}]   ;;  %s4080_s4 = inlined_call_operand.hbm [shape: f32[1,128], index: 4, kind: input, shape index: {}]   ;;  %s4081_s5 = inlined_call_operand.hbm [shape: f32[1,128], index: 5, kind: input, shape index: {}]   ;;  %s4082_s6 = inlined_call_operand.hbm [shape: bf16[2,128,384], index: 6, kind: input, shape index: {}]   ;;  %s4083_s7 = inlined_call_operand.vmem [shape: f32[2,1,384], index: 7, kind: input, shape index: {}]   ;;  %s4084_s8 = inlined_call_operand.hbm [shape: bf16[2,128,128], index: 8, kind: input, shape index: {}]   ;;  %s4085_s9 = inlined_call_operand.vmem [shape: f32[2,1,128], index: 9, kind: input, shape index: {}]   ;;  %s4086_s10 = inlined_call_operand.vmem [shape: f32[2,1,128], index: 10, kind: input, shape index: {}]   ;;  %s4087_s11 = inlined_call_operand.vmem [shape: f32[2,1,128], index: 11, kind: input, shape index: {}]   ;;  %s4088_s12 = inlined_call_operand.hbm [shape: bf16[2,128,128], index: 12, kind: input, shape index: {}]   ;;  %s4089_s13 = inlined_call_operand.vmem [shape: f32[2,1,128], index: 13, kind: input, shape index: {}]   ;;  %s4090_s14 = inlined_call_operand.hbm [shape: bf16[2,128,128], index: 14, kind: input, shape index: {}]   ;;  %s4091_s15 = inlined_call_operand.vmem [shape: f32[2,1,128], index: 15, kind: input, shape index: {}]   ;;  %s4092_s16 = inlined_call_operand.vmem [shape: f32[2,1,128], index: 16, kind: input, shape index: {}]   ;;  %s4093_s17 = inlined_call_operand.vmem [shape: f32[2,1,128], index: 17, kind: input, shape index: {}]   ;;  %s4094_s18 = inlined_call_operand.hbm [shape: f32[8,128], index: 18, kind: output, shape index: {}]  }
   0x1   :  { %4110 = sst [smem:[#allocation32_spill]] %s4076_s0 }
   0x2   :  { %4111 = sst [smem:[#allocation33_spill]] %s4077_s1 }
   0x3   :  { %4112 = sst [smem:[#allocation34_spill]] %s4078_s2 }
   0x4   :  { %4113 = sst [smem:[#allocation35_spill]] %s4079_s3 }
   0x5   :  { %4114 = sst [smem:[#allocation36_spill]] %s4083_s7 }
   0x6   :  { %4115 = sst [smem:[#allocation37_spill]] %s4085_s9 }
   0x7   :  { %4116 = sst [smem:[#allocation38_spill]] %s4086_s10 }
   0x8   :  { %4117 = sst [smem:[#allocation39_spill]] %s4087_s11 }
   0x9   :  { %4118 = sst [smem:[#allocation40_spill]] %s4089_s13 }
   0xa   :  { %4119 = sst [smem:[#allocation41_spill]] %s4091_s15 }
   0xb   :  { %4120 = sst [smem:[#allocation42_spill]] %s4092_s16 }
   0xc   :  { %4121 = sst [smem:[#allocation43_spill]] %s4093_s17 }
   0xd   :  { %4122 = sst [smem:[#allocation44_spill]] %s4094_s18 }
   0xe   :  { %23 = vsyncpa [#allocation5], 0 }
   0xf   :  { %24 = vsyncpa [#allocation7], 0 }
  0x10   :  { %25 = vsyncpa [#allocation3], 0 }
  0x11   :  { %26 = vsyncpa [#allocation10], 0 }
  0x12   :  { %27 = vsyncpa [#allocation13], 0 }
  0x13   :  { %28 = vsyncpa [#allocation16], 0 }
  0x14   :  { %29 = vsyncpa [#allocation4], 0  ;;  %s3165_s27 = smov [#allocation9]   ;;  %s3166_s29 = smov [#allocation12]  }
  0x15   :  { %s66_s28 = sshll.u32 %s3165_s27, 4  ;;  %s85_s30 = sshll.u32 %s3166_s29, 4  ;;  %s67_s28 = int_to_ptr.vmem [resolvable:$true] %s66_s28  ;;  %s3279_s30 = int_to_ptr.vmem [resolvable:$true] %s85_s30 }
  0x16   :  { %s2955_s1 = scalar_lea.hbm %s4080_s4, 16 }
  0x17   :  { %p2956_p0 = scmp.ne.s32.totalorder %s4080_s4, %s2955_s1  ;;  %p2959_p1 = scmp.lt.u32.totalorder %s2955_s1, %s4080_s4 }
  0x19   :  { %p2961_p2 = pnand %p2959_p1, %p2956_p0 }
  0x1b   :  { %2964 = shalt.err (!%p2961_p2)
}
  0x1c   :  { %s2965_s23 = scalar_lea.vmem %s67_s28, 16  ;;  %s2969_s24 = scalar_lea.vmem %s67_s28, 32 }
  0x1d   :  { %p2966_p3 = scmp.ne.s32.totalorder %s67_s28, %s2965_s23  ;;  %p2970_p4 = scmp.lt.s32.totalorder %s67_s28, %s67_s28 }
  0x1e   :  { %p2971_p5 = scmp.lt.s32.totalorder %s2969_s24, %s2965_s23 }
  0x20   :  { %p2972_p6 = por %p2971_p5, %p2970_p4 }
  0x22   :  { %p2973_p7 = pnand %p2972_p6, %p2966_p3 }
  0x24   :  { %2976 = shalt.err (!%p2973_p7)
}
  0x25   :  { %69 = dma.hbm_to_vmem [thread:$0]  %s4080_s4, 16, %s67_s28, [#allocation10]  }
  0x26   :  { %s2977_s0 = scalar_lea.hbm %s4082_s6, 6144 }
  0x27   :  { %p2978_p8 = scmp.ne.s32.totalorder %s4082_s6, %s2977_s0  ;;  %p2981_p9 = scmp.lt.u32.totalorder %s2977_s0, %s4082_s6 }
  0x29   :  { %p2983_p10 = pnand %p2981_p9, %p2978_p8 }
  0x2b   :  { %2986 = shalt.err (!%p2983_p10)
}
  0x2c   :  { %s2987_s22 = scalar_lea.vmem %s3279_s30, 6144  ;;  %p2992_p12 = scmp.lt.s32.totalorder %s3279_s30, %s3279_s30 }
  0x2d   :  { %p2988_p11 = scmp.ne.s32.totalorder %s3279_s30, %s2987_s22  ;;  %p2993_p13 = scmp.lt.s32.totalorder %s2987_s22, %s2987_s22 }
  0x2f   :  { %p2994_p0 = por %p2993_p13, %p2992_p12 }
  0x31   :  { %p2995_p1 = pnand %p2994_p0, %p2988_p11 }
  0x33   :  { %2998 = shalt.err (!%p2995_p1)
}
  0x34   :  { %s3167_s4 = smov 192   ;;  %s3168_s28 = smov 12  }
  0x35   :  { %91 = dma.hbm_to_vmem [thread:$0]  %s4082_s6, 6144, %s3279_s30, [#allocation13], %s3167_s4, %s3167_s4, %s3168_s28  }
  0x36   :  { %s3169_s24 = smov [#allocation15]   ;;  %s2999_s29 = scalar_lea.hbm %s4088_s12, 2048 }
  0x37   :  { %s117_s25 = sshll.u32 %s3169_s24, 4  ;;  %p3000_p2 = scmp.ne.s32.totalorder %s4088_s12, %s2999_s29  ;;  %s118_s25 = int_to_ptr.vmem [resolvable:$true] %s117_s25 }
  0x38   :  { %p3003_p3 = scmp.lt.u32.totalorder %s2999_s29, %s4088_s12 }
  0x3a   :  { %p3005_p4 = pnand %p3003_p3, %p3000_p2 }
  0x3c   :  { %3008 = shalt.err (!%p3005_p4)
}
  0x3d   :  { %s3009_s21 = scalar_lea.vmem %s118_s25, 2048  ;;  %p3014_p6 = scmp.lt.s32.totalorder %s118_s25, %s118_s25 }
  0x3e   :  { %p3010_p5 = scmp.ne.s32.totalorder %s118_s25, %s3009_s21  ;;  %p3015_p7 = scmp.lt.s32.totalorder %s3009_s21, %s3009_s21 }
  0x40   :  { %p3016_p8 = por %p3015_p7, %p3014_p6 }
  0x42   :  { %p3017_p9 = pnand %p3016_p8, %p3010_p5 }
  0x44   :  { %3020 = shalt.err (!%p3017_p9)
}
  0x45   :  { %s4098_s6 = smov 64   ;;  %s3171_s30 = smov 4  }
  0x46   :  { %123 = dma.hbm_to_vmem [thread:$0]  %s4088_s12, 2048, %s118_s25, [#allocation16], %s4098_s6, %s4098_s6, %s3171_s30  }
  0x47   :  { %s4123_s23 = sld [smem:[#allocation32_spill]] }
  0x4d   :  { %s3021_s24 = scalar_lea.hbm %s4123_s23, 16 }
  0x4e   :  { %p3022_p10 = scmp.ne.s32.totalorder %s4123_s23, %s3021_s24  ;;  %p3025_p11 = scmp.lt.u32.totalorder %s3021_s24, %s4123_s23 }
  0x50   :  { %p3027_p12 = pnand %p3025_p11, %p3022_p10 }
  0x52   :  { %3030 = shalt.err (!%p3027_p12)
}
  0x53   :  { %s3172_s19 = smov [#allocation2]   ;;  %s4124_s21 = sld [smem:[#allocation33_spill]] }
  0x54   :  { %37 = dma.hbm_to_smem %s4123_s23, 16, %s3172_s19, [#allocation5]  }
  0x59   :  { %s3031_s22 = scalar_lea.hbm %s4124_s21, 16 }
  0x5a   :  { %p3032_p13 = scmp.ne.s32.totalorder %s4124_s21, %s3031_s22  ;;  %p3035_p0 = scmp.lt.u32.totalorder %s3031_s22, %s4124_s21 }
  0x5c   :  { %p3037_p1 = pnand %p3035_p0, %p3032_p13 }
  0x5e   :  { %3040 = shalt.err (!%p3037_p1)
}
  0x5f   :  { %s3173_s24 = smov [#allocation6]   ;;  %s3174_s23 = smov [#allocation8]  }
  0x60   :  { %45 = dma.hbm_to_smem %s4124_s21, 16, %s3173_s24, [#allocation7]  }
  0x61   :  { %s51_s0 = sshll.u32 %s3174_s23, 4  ;;  %s4125_s20 = sld [smem:[#allocation34_spill]]  ;;  %s52_s0 = int_to_ptr.vmem [resolvable:$true] %s51_s0 }
  0x67   :  { %s3041_s12 = scalar_lea.hbm %s4125_s20, 2304 }
  0x68   :  { %p3042_p2 = scmp.ne.s32.totalorder %s4125_s20, %s3041_s12  ;;  %p3045_p3 = scmp.lt.u32.totalorder %s3041_s12, %s4125_s20 }
  0x6a   :  { %p3047_p4 = pnand %p3045_p3, %p3042_p2 }
  0x6c   :  { %3050 = shalt.err (!%p3047_p4)
}
  0x6d   :  { %s3051_s2 = scalar_lea.vmem %s52_s0, 2304  ;;  %p3056_p6 = scmp.lt.s32.totalorder %s52_s0, %s52_s0 }
  0x6e   :  { %p3052_p5 = scmp.ne.s32.totalorder %s52_s0, %s3051_s2  ;;  %p3057_p7 = scmp.lt.s32.totalorder %s3051_s2, %s3051_s2 }
  0x70   :  { %p3058_p8 = por %p3057_p7, %p3056_p6 }
  0x72   :  { %p3059_p9 = pnand %p3058_p8, %p3052_p5 }
  0x74   :  { %3062 = shalt.err (!%p3059_p9)
}
  0x75   :  { %s3175_s21 = smov 256   ;;  %s3176_s26 = smov 16  }
  0x76   :  { %57 = dma.hbm_to_vmem [thread:$0]  %s4125_s20, 2304, %s52_s0, [#allocation3], %s3175_s21, %s3175_s21, %s3176_s26  }
  0x77   :  { %s3177_s29 = smov [#allocation11]   ;;  %s3178_s19 = smov [#allocation14]  }
  0x78   :  { %s76_s23 = sshll.u32 %s3177_s29, 4  ;;  %s99_s1 = sshll.u32 %s3178_s19, 4  ;;  %s77_s23 = int_to_ptr.vmem [resolvable:$true] %s76_s23  ;;  %s3361_s1 = int_to_ptr.vmem [resolvable:$true] %s99_s1 }
  0x79   :  { %s3063_s4 = scalar_lea.hbm %s4081_s5, 16 }
  0x7a   :  { %p3064_p10 = scmp.ne.s32.totalorder %s4081_s5, %s3063_s4  ;;  %p3067_p11 = scmp.lt.u32.totalorder %s3063_s4, %s4081_s5 }
  0x7c   :  { %p3069_p12 = pnand %p3067_p11, %p3064_p10 }
  0x7e   :  { %3072 = shalt.err (!%p3069_p12)
}
  0x7f   :  { %s3073_s0 = scalar_lea.vmem %s77_s23, 16  ;;  %s3077_s20 = scalar_lea.vmem %s77_s23, 32 }
  0x80   :  { %p3074_p13 = scmp.ne.s32.totalorder %s77_s23, %s3073_s0  ;;  %p3078_p0 = scmp.lt.s32.totalorder %s77_s23, %s77_s23 }
  0x81   :  { %p3079_p1 = scmp.lt.s32.totalorder %s3077_s20, %s3073_s0 }
  0x83   :  { %p3080_p2 = por %p3079_p1, %p3078_p0 }
  0x85   :  { %p3081_p3 = pnand %p3080_p2, %p3074_p13 }
  0x87   :  { %3084 = shalt.err (!%p3081_p3)
}
  0x88   :  { %79 = dma.hbm_to_vmem [thread:$0]  %s4081_s5, 16, %s77_s23, [#allocation10]  }
  0x89   :  { %s3085_s29 = scalar_lea.hbm %s4084_s8, 2048 }
  0x8a   :  { %p3086_p4 = scmp.ne.s32.totalorder %s4084_s8, %s3085_s29  ;;  %p3089_p5 = scmp.lt.u32.totalorder %s3085_s29, %s4084_s8 }
  0x8c   :  { %p3091_p6 = pnand %p3089_p5, %p3086_p4 }
  0x8e   :  { %3094 = shalt.err (!%p3091_p6)
}
  0x8f   :  { %s3095_s4 = scalar_lea.vmem %s3361_s1, 2048  ;;  %p3100_p8 = scmp.lt.s32.totalorder %s3361_s1, %s3361_s1 }
  0x90   :  { %p3096_p7 = scmp.ne.s32.totalorder %s3361_s1, %s3095_s4  ;;  %p3101_p9 = scmp.lt.s32.totalorder %s3095_s4, %s3095_s4 }
  0x92   :  { %p3102_p10 = por %p3101_p9, %p3100_p8 }
  0x94   :  { %p3103_p11 = pnand %p3102_p10, %p3096_p7 }
  0x96   :  { %3106 = shalt.err (!%p3103_p11)
}
  0x97   :  { %s4126_s5 = smov 64   ;;  %s3179_s22 = smov [#allocation17]  }
  0x98   :  { %105 = dma.hbm_to_vmem [thread:$0]  %s4084_s8, 2048, %s3361_s1, [#allocation13], %s4126_s5, %s4126_s5, %s3171_s30  }
  0x99   :  { %s131_s2 = sshll.u32 %s3179_s22, 4  ;;  %s3107_s21 = scalar_lea.hbm %s4090_s14, 2048  ;;  %s132_s2 = int_to_ptr.vmem [resolvable:$true] %s131_s2 }
  0x9a   :  { %p3108_p12 = scmp.ne.s32.totalorder %s4090_s14, %s3107_s21  ;;  %p3111_p13 = scmp.lt.u32.totalorder %s3107_s21, %s4090_s14 }
  0x9c   :  { %p3113_p0 = pnand %p3111_p13, %p3108_p12 }
  0x9e   :  { %3116 = shalt.err (!%p3113_p0)
}
  0x9f   :  { %s3117_s6 = scalar_lea.vmem %s132_s2, 2048  ;;  %p3122_p2 = scmp.lt.s32.totalorder %s132_s2, %s132_s2 }
  0xa0   :  { %p3118_p1 = scmp.ne.s32.totalorder %s132_s2, %s3117_s6  ;;  %p3123_p3 = scmp.lt.s32.totalorder %s3117_s6, %s3117_s6 }
  0xa2   :  { %p3124_p4 = por %p3123_p3, %p3122_p2 }
  0xa4   :  { %p3125_p5 = pnand %p3124_p4, %p3118_p1 }
  0xa6   :  { %3128 = shalt.err (!%p3125_p5)
}
  0xa7   :  { %137 = dma.hbm_to_vmem [thread:$0]  %s4090_s14, 2048, %s132_s2, [#allocation16], %s4126_s5, %s4126_s5, %s3171_s30  }
  0xa8   :  { %3151 = dma.done.wait [#allocation5], 16  }
  0xa9   :  { %3152 = vsyncadd [#allocation5], 4294967280 }
  0xaa   :  { %3153 = dma.done.wait [#allocation7], 16  }
  0xab   :  { %3154 = vsyncadd [#allocation7], 4294967280 }
  0xac   :  { %3155 = dma.done.wait [#allocation3], 2304  }
  0xad   :  { %3156 = vsyncadd [#allocation3], 4294964992 }
  0xae   :  { %3157 = dma.done.wait [#allocation10], 32  }
  0xaf   :  { %3158 = vsyncadd [#allocation10], 4294967264 }
  0xb0   :  { %3159 = dma.done.wait [#allocation13], 8192  }
  0xb1   :  { %3160 = vsyncadd [#allocation13], 4294959104 }
  0xb2   :  { %3161 = dma.done.wait [#allocation16], 4096  }
  0xb3   :  { %3162 = vsyncadd [#allocation16], 4294963200 }
  0xb4   :  { %171 = sfence }
  0xb5   :  { %s207_s19 = sld [smem:[#allocation2]]  ;;  %v3180_v0 = vmov 0.0   ;;  %v3413_v1 = vld [vmem:[#allocation8] sm:$0xff]  ;;  %v3415_v2 = vld [vmem:[#allocation8 + $0x8] sm:$0xff]  ;;  %v3419_v3 = vld [vmem:[#allocation8 + $0x10] sm:$0xff]  ;;  %s3456_s2 = sld [smem:[#allocation2 + $0x2]] }
  0xb6   :  { %s2319_s12 = sld [smem:[#allocation2 + $0x8]]  ;;  %2606 = vmatprep.subr.bf16.mxu1 %v3180_v0  ;;  %v3421_v4 = vld [vmem:[#allocation8 + $0x18] sm:$0xff]  ;;  %v3423_v5 = vld [vmem:[#allocation8 + $0x20] sm:$0xff]  ;;  %v3427_v6 = vld [vmem:[#allocation8 + $0x28] sm:$0xff]  ;;  %s3458_s0 = sld [smem:[#allocation2 + $0xa]]  ;;  %vm3182_vm0 = vmmov 0  }
  0xb7   :  { %s3411_s25 = sld [smem:[#allocation2 + $0x10]]  ;;  %v3429_v7 = vld [vmem:[#allocation8 + $0x30] sm:$0xff]  ;;  %v3431_v8 = vld [vmem:[#allocation8 + $0x38] sm:$0xff]  ;;  %v3439_v10 = vld [vmem:[#allocation8 + $0x40] sm:$0xff]  ;;  %s3465_s20 = sld [smem:[#allocation2 + $0x12]]  ;;  %2622 = vmatprep.mubr.msk.bf16.mxu1 %vm3182_vm0, %v3180_v0  ;;  %vm1134_vm1 = vcmask 1043456  }
  0xb8   :  { %s3417_s14 = sld [smem:[#allocation2 + $0x18]]  ;;  %v3441_v11 = vld [vmem:[#allocation8 + $0x48] sm:$0xff]  ;;  %v2809_v15 = vld [vmem:[#allocation12 + $0x4] ss:$12 sps:$4 sm:$0xff]   ;;  %v3449_v16 = vld [vmem:[#allocation8 + $0x50] sm:$0xff]  ;;  %s3467_s21 = sld [smem:[#allocation2 + $0x1a]] }
  0xb9   :  { %s3425_s30 = sld [smem:[#allocation2 + $0x20]]  ;;  %v3451_v17 = vld [vmem:[#allocation8 + $0x58] sm:$0xff]  ;;  %v2811_v21 = vld [vmem:[#allocation12] ss:$12 sps:$4 sm:$0xff]   ;;  %993 = vmatprep.subr.bf16.mxu0 %v2809_v15  ;;  %v3469_v26 = vld [vmem:[#allocation8 + $0x68] sm:$0xff]  ;;  %s3489_s26 = sld [smem:[#allocation2 + $0x22]] }
  0xba   :  { %s3433_s4 = sld [smem:[#allocation2 + $0x28]]  ;;  %v3460_v22 = vld [vmem:[#allocation8 + $0x60] sm:$0xff]  ;;  %v3471_v27 = vld [vmem:[#allocation8 + $0x70] sm:$0xff]  ;;  %994 = vmatpush1.bf16.msra.mxu0 %v2811_v21  ;;  %v3475_v32 = vld [vmem:[#allocation8 + $0x78] sm:$0xff]  ;;  %s3491_s24 = sld [smem:[#allocation2 + $0x2a]]  ;;  %vm1118_vm2 = vcmask 64512  }
  0xbb   :  { %v208_v9 = vstv %s207_s19  ;;  %s3435_s5 = sld [smem:[#allocation2 + $0x30]]  ;;  %v3477_v33 = vld [vmem:[#allocation8 + $0x80] sm:$0xff]  ;;  %v2812_v36 = vld [vmem:[#allocation12 + $0x8] ss:$12 sps:$4 sm:$0xff]   ;;  %v2815_v51 = vld [vmem:[#allocation12 + $0x18] ss:$12 sps:$4 sm:$0xff]   ;;  %v346_v60 = vstv %s3456_s2 }
  0xbc   :  { %s3437_s23 = sld [smem:[#allocation2 + $0x38]]  ;;  %v209_v12 = vmul.f32 %v208_v9, %v3413_v1  ;;  %v210_v13 = vmul.f32 %v208_v9, %v3415_v2  ;;  %v212_v14 = vstv %s2319_s12  ;;  %v3481_v37 = vld [vmem:[#allocation8 + $0x88] sm:$0xff]  ;;  %2607 = vmatpush3.bf16.msra.mxu1 %v2812_v36  ;;  %v2813_v46 = vld [vmem:[#allocation12 + $0x1c] ss:$12 sps:$4 sm:$0xff]   ;;  %s3502_s27 = sld [smem:[#allocation2 + $0x32]]  ;;  %v350_v61 = vstv %s3458_s0 }
  0xbd   :  { %s3445_s28 = sld [smem:[#allocation2 + $0x40]]  ;;  %v213_v18 = vmul.f32 %v212_v14, %v3419_v3  ;;  %v214_v19 = vmul.f32 %v212_v14, %v3421_v4  ;;  %v218_v20 = vstv %s3411_s25  ;;  %2608 = vmatprep.subr.bf16.mxu1 %v3180_v0  ;;  %995 = vmatprep.subr.bf16.mxu0 %v2813_v46  ;;  %s3504_s29 = sld [smem:[#allocation2 + $0x3a]]  ;;  %v356_v62 = vstv %s3465_s20  ;;  %v2816_v9 = vld [vmem:[#allocation12 + $0x20] ss:$12 sps:$4 sm:$0xff]  }
  0xbe   :  { %s3447_s22 = sld [smem:[#allocation6]]  ;;  %v219_v23 = vmul.f32 %v218_v20, %v3423_v5  ;;  %v220_v24 = vmul.f32 %v218_v20, %v3427_v6  ;;  %v224_v25 = vstv %s3417_s14  ;;  %996 = vmatpush1.bf16.msra.mxu0 %v2815_v51  ;;  %v362_v63 = vstv %s3467_s21  ;;  %s3512_s6 = sld [smem:[#allocation2 + $0x42]] }
  0xbf   :  { %v215_v28 = vadd.f32 %v213_v18, %v209_v12  ;;  %v216_v29 = vadd.f32 %v214_v19, %v210_v13  ;;  %v225_v30 = vmul.f32 %v224_v25, %v3429_v7  ;;  %v226_v31 = vmul.f32 %v224_v25, %v3431_v8  ;;  %s3518_s8 = sld [smem:[#allocation6 + $0x2]]  ;;  %s3520_s1 = sld [smem:[#allocation2 + $0x1]] }
  0xc0   :  { %v230_v34 = vstv %s3425_s30  ;;  %v236_v35 = vstv %s3433_s4  ;;  %v347_v14 = vmul.f32 %v346_v60, %v3413_v1  ;;  %v348_v15 = vmul.f32 %v346_v60, %v3415_v2  ;;  %2609 = vmatpush3.bf16.msra.mxu1 %v2816_v9  ;;  %s3524_s19 = sld [smem:[#allocation2 + $0x9]]  ;;  %s3551_s2 = sld [smem:[#allocation2 + $0x3]] }
  0xc1   :  { %v221_v38 = vadd.f32 %v219_v23, %v215_v28  ;;  %v222_v39 = vadd.f32 %v220_v24, %v216_v29  ;;  %v231_v40 = vmul.f32 %v230_v34, %v3439_v10  ;;  %v232_v41 = vmul.f32 %v230_v34, %v3441_v11  ;;  %s3526_s12 = sld [smem:[#allocation2 + $0x11]]  ;;  %2610 = vmatprep.subr.bf16.mxu1 %v3180_v0  ;;  %s3555_s0 = sld [smem:[#allocation2 + $0xb]] }
  0xc2   :  { %v237_v42 = vmul.f32 %v236_v35, %v3449_v16  ;;  %v238_v43 = vmul.f32 %v236_v35, %v3451_v17  ;;  %v242_v44 = vstv %s3435_s5  ;;  %v248_v45 = vstv %s3437_s23  ;;  %s3531_s25 = sld [smem:[#allocation2 + $0x19]]  ;;  %s3557_s20 = sld [smem:[#allocation2 + $0x13]] }
  0xc3   :  { %v227_v47 = vadd.f32 %v225_v30, %v221_v38  ;;  %v228_v48 = vadd.f32 %v226_v31, %v222_v39  ;;  %v243_v49 = vmul.f32 %v242_v44, %v3460_v22  ;;  %v244_v50 = vmul.f32 %v242_v44, %v3469_v26  ;;  %s3533_s14 = sld [smem:[#allocation2 + $0x21]]  ;;  %s3565_s21 = sld [smem:[#allocation2 + $0x1b]] }
  0xc4   :  { %v249_v52 = vmul.f32 %v248_v45, %v3471_v27  ;;  %v250_v53 = vmul.f32 %v248_v45, %v3475_v32  ;;  %v254_v54 = vstv %s3445_s28  ;;  %v260_v55 = vstv %s3447_s22  ;;  %s3537_s30 = sld [smem:[#allocation2 + $0x29]]  ;;  %s3577_s22 = sld [smem:[#allocation2 + $0x3b]] }
  0xc5   :  { %v233_v56 = vadd.f32 %v231_v40, %v227_v47  ;;  %v234_v57 = vadd.f32 %v232_v41, %v228_v48  ;;  %v255_v58 = vmul.f32 %v254_v54, %v3477_v33  ;;  %v256_v59 = vmul.f32 %v254_v54, %v3481_v37  ;;  %s3539_s4 = sld [smem:[#allocation2 + $0x31]]  ;;  %s3590_s18 = sld [smem:[#allocation2 + $0xc]] }
  0xc6   :  { %v351_v18 = vmul.f32 %v350_v61, %v3419_v3  ;;  %v352_v19 = vmul.f32 %v350_v61, %v3421_v4  ;;  %v357_v20 = vmul.f32 %v356_v62, %v3423_v5  ;;  %v358_v21 = vmul.f32 %v356_v62, %v3427_v6  ;;  %s3543_s5 = sld [smem:[#allocation2 + $0x39]]  ;;  %s3592_s17 = sld [smem:[#allocation2 + $0x14]] }
  0xc7   :  { %v239_v12 = vadd.f32 %v237_v42, %v233_v56  ;;  %v240_v13 = vadd.f32 %v238_v43, %v234_v57  ;;  %v363_v25 = vmul.f32 %v362_v63, %v3429_v7  ;;  %v364_v28 = vmul.f32 %v362_v63, %v3431_v8  ;;  %s3545_s23 = sld [smem:[#allocation2 + $0x41]]  ;;  %s3603_s16 = sld [smem:[#allocation2 + $0x2c]] }
  0xc8   :  { %v353_v29 = vadd.f32 %v351_v18, %v347_v14  ;;  %v354_v30 = vadd.f32 %v352_v19, %v348_v15  ;;  %v368_v31 = vstv %s3489_s26  ;;  %v374_v34 = vstv %s3491_s24  ;;  %s3549_s28 = sld [smem:[#allocation6 + $0x1]]  ;;  %s3567_s26 = sld [smem:[#allocation2 + $0x23]] }
  0xc9   :  { %v245_v23 = vadd.f32 %v243_v49, %v239_v12  ;;  %v246_v24 = vadd.f32 %v244_v50, %v240_v13  ;;  %v369_v38 = vmul.f32 %v368_v31, %v3439_v10  ;;  %v370_v39 = vmul.f32 %v368_v31, %v3441_v11  ;;  %s3571_s24 = sld [smem:[#allocation2 + $0x2b]]  ;;  %s3605_s15 = sld [smem:[#allocation2 + $0x34]] }
  0xca   :  { %v359_v40 = vadd.f32 %v357_v20, %v353_v29  ;;  %v360_v41 = vadd.f32 %v358_v21, %v354_v30  ;;  %v375_v42 = vmul.f32 %v374_v34, %v3449_v16  ;;  %v376_v43 = vmul.f32 %v374_v34, %v3451_v17  ;;  %s3610_s13 = sld [smem:[#allocation2 + $0x44]]  ;;  %s3620_s10 = sld [smem:[#allocation2 + $0xd]] }
  0xcb   :  { %v251_v35 = vadd.f32 %v249_v52, %v245_v23  ;;  %v252_v36 = vadd.f32 %v250_v53, %v246_v24  ;;  %v380_v46 = vstv %s3502_s27  ;;  %v386_v47 = vstv %s3504_s29  ;;  %s3573_s27 = sld [smem:[#allocation2 + $0x33]]  ;;  %s3615_s11 = sld [smem:[#allocation6 + $0x4]] }
  0xcc   :  { %v365_v48 = vadd.f32 %v363_v25, %v359_v40  ;;  %v366_v49 = vadd.f32 %v364_v28, %v360_v41  ;;  %v381_v50 = vmul.f32 %v380_v46, %v3460_v22  ;;  %v382_v51 = vmul.f32 %v380_v46, %v3469_v26  ;;  %s3579_s29 = sld [smem:[#allocation2 + $0x43]]  ;;  %s3622_s9 = sld [smem:[#allocation2 + $0x15]] }
  0xcd   :  { %v257_v44 = vadd.f32 %v255_v58, %v251_v35  ;;  %v258_v45 = vadd.f32 %v256_v59, %v252_v36  ;;  %v387_v54 = vmul.f32 %v386_v47, %v3471_v27  ;;  %v388_v56 = vmul.f32 %v386_v47, %v3475_v32  ;;  %s3632_s7 = sld [smem:[#allocation2 + $0x2d]] }
  0xce   :  { %v371_v57 = vadd.f32 %v369_v38, %v365_v48  ;;  %v372_v58 = vadd.f32 %v370_v39, %v366_v49  ;;  %v392_v59 = vstv %s3512_s6  ;;  %v398_v60 = vstv %s3518_s8  ;;  %s3583_s6 = sld [smem:[#allocation6 + $0x3]]  ;;  %s3585_s8 = sld [smem:[#allocation2 + $0x4]] }
  0xcf   :  { %v261_v52 = vadd.f32 %v260_v55, %v257_v44  ;;  %v262_v53 = vadd.f32 %v260_v55, %v258_v45  ;;  %v393_v62 = vmul.f32 %v392_v59, %v3477_v33  ;;  %v394_v63 = vmul.f32 %v392_v59, %v3481_v37  ;;  %s3634_s3 = sld [smem:[#allocation2 + $0x35]] }
  0xd0   :  { %v377_v9 = vadd.f32 %v375_v42, %v371_v57  ;;  %v378_v12 = vadd.f32 %v376_v43, %v372_v58  ;;  %v277_v13 = vstv %s3520_s1  ;;  %v281_v14 = vstv %s3524_s19  ;;  %s3596_s1 = sld [smem:[#allocation2 + $0x1c]] }
  0xd1   :  { %v263_v61 = vmax.f32 %v261_v52, 0.0  ;;  %v264_v55 = vmax.f32 %v262_v53, 0.0  ;;  %v278_v18 = vmul.f32 %v277_v13, %v3413_v1  ;;  %v279_v19 = vmul.f32 %v277_v13, %v3415_v2  ;;  %s3598_s19 = sld [smem:[#allocation2 + $0x24]] }
  0xd2   :  { %v282_v20 = vmul.f32 %v281_v14, %v3419_v3  ;;  %v383_v21 = vadd.f32 %v381_v50, %v377_v9  ;;  %v384_v23 = vadd.f32 %v382_v51, %v378_v12  ;;  %v283_v24 = vmul.f32 %v281_v14, %v3421_v4  ;;  %4127 = sst [smem:[#allocation26_spill]] %s3622_s9  ;;  %s3639_s9 = sld [smem:[#allocation2 + $0x3d]] }
  0xd3   :  { %v265_v15 = vadd.f32 %v264_v55, %v263_v61  ;;  %v287_v25 = vstv %s3526_s12  ;;  %v293_v31 = vstv %s3531_s25  ;;  %s3608_s12 = sld [smem:[#allocation2 + $0x3c]]  ;;  %v299_v41 = vstv %s3533_s14  ;;  %s3617_s25 = sld [smem:[#allocation2 + $0x5]] }
  0xd4   :  { %v284_v28 = vadd.f32 %v282_v20, %v278_v18  ;;  %v288_v29 = vmul.f32 %v287_v25, %v3423_v5  ;;  %v289_v30 = vmul.f32 %v287_v25, %v3427_v6  ;;  %v389_v34 = vadd.f32 %v387_v54, %v383_v21  ;;  %s3627_s14 = sld [smem:[#allocation2 + $0x1d]] }
  0xd5   :  { %266 = vadd.xlane.f32.xlu0 %v265_v15  ;;  %v390_v35 = vadd.f32 %v388_v56, %v384_v23  ;;  %v285_v36 = vadd.f32 %v283_v24, %v279_v19  ;;  %v294_v38 = vmul.f32 %v293_v31, %v3429_v7  ;;  %v295_v40 = vmul.f32 %v293_v31, %v3431_v8  ;;  %4129 = sst [smem:[#allocation28_spill]] %s3634_s3  ;;  %s3646_s3 = sld [smem:[#allocation2 + $0x6]] }
  0xd6   :  { %v290_v39 = vadd.f32 %v288_v29, %v284_v28  ;;  %v305_v42 = vstv %s3537_s30  ;;  %v395_v43 = vadd.f32 %v393_v62, %v389_v34  ;;  %v300_v46 = vmul.f32 %v299_v41, %v3439_v10  ;;  %s3629_s30 = sld [smem:[#allocation2 + $0x25]] }
  0xd7   :  { %v396_v44 = vadd.f32 %v394_v63, %v390_v35  ;;  %v291_v45 = vadd.f32 %v289_v30, %v285_v36  ;;  %v301_v48 = vmul.f32 %v299_v41, %v3441_v11  ;;  %v306_v49 = vmul.f32 %v305_v42, %v3449_v16 }
  0xd8   :  { %v296_v47 = vadd.f32 %v294_v38, %v290_v39  ;;  %v307_v50 = vmul.f32 %v305_v42, %v3451_v17  ;;  %v399_v51 = vadd.f32 %v398_v60, %v395_v43  ;;  %v311_v54 = vstv %s3539_s4  ;;  %4130 = sst [smem:[#allocation29_spill]] %s3639_s9  ;;  %s3644_s4 = sld [smem:[#allocation6 + $0x5]] }
  0xd9   :  { %v400_v52 = vadd.f32 %v398_v60, %v396_v44  ;;  %v297_v53 = vadd.f32 %v295_v40, %v291_v45  ;;  %v312_v57 = vmul.f32 %v311_v54, %v3460_v22  ;;  %v313_v58 = vmul.f32 %v311_v54, %v3469_v26  ;;  %s3659_s9 = sld [smem:[#allocation2 + $0x26]] }
  0xda   :  { %4128 = sst [smem:[#allocation27_spill]] %s3627_s14  ;;  %v302_v56 = vadd.f32 %v300_v46, %v296_v47  ;;  %v317_v59 = vstv %s3543_s5  ;;  %s3641_s14 = sld [smem:[#allocation2 + $0x45]]  ;;  %v401_v61 = vmax.f32 %v399_v51, 0.0  ;;  %v323_v12 = vstv %s3545_s23 }
  0xdb   :  { %v402_v60 = vmax.f32 %v400_v52, 0.0  ;;  %v303_v55 = vadd.f32 %v301_v48, %v297_v53  ;;  %v318_v62 = vmul.f32 %v317_v59, %v3471_v27  ;;  %v319_v9 = vmul.f32 %v317_v59, %v3475_v32  ;;  %s3651_s5 = sld [smem:[#allocation2 + $0xe]] }
  0xdc   :  { %v308_v63 = vadd.f32 %v306_v49, %v302_v56  ;;  %v329_v13 = vstv %s3549_s28  ;;  %v324_v18 = vmul.f32 %v323_v12, %v3477_v33  ;;  %v325_v19 = vmul.f32 %v323_v12, %v3481_v37  ;;  %s3664_s23 = sld [smem:[#allocation2 + $0x2e]] }
  0xdd   :  { %v403_v14 = vadd.f32 %v402_v60, %v401_v61  ;;  %v309_v15 = vadd.f32 %v307_v50, %v303_v55  ;;  %v415_v21 = vstv %s3551_s2  ;;  %v419_v23 = vstv %s3555_s0  ;;  %s3666_s28 = sld [smem:[#allocation2 + $0x36]]  ;;  %s3721_s0 = sld [smem:[#allocation2 + $0x7]] }
  0xde   :  { %4132 = sst [smem:[#allocation31_spill]] %s3644_s4  ;;  %s3657_s4 = sld [smem:[#allocation2 + $0x1e]]  ;;  %v314_v20 = vadd.f32 %v312_v57, %v308_v63  ;;  %v425_v24 = vstv %s3557_s20  ;;  %v416_v28 = vmul.f32 %v415_v21, %v3413_v1  ;;  %v417_v29 = vmul.f32 %v415_v21, %v3415_v2  ;;  %v2819_v63 = vld [vmem:[#allocation12 + $0x30] ss:$12 sps:$4 sm:$0xff]  }
  0xdf   :  { %404 = vadd.xlane.f32.xlu1 %v403_v14  ;;  %v315_v25 = vadd.f32 %v313_v58, %v309_v15  ;;  %v420_v30 = vmul.f32 %v419_v23, %v3419_v3  ;;  %v421_v34 = vmul.f32 %v419_v23, %v3421_v4  ;;  %v426_v35 = vmul.f32 %v425_v24, %v3423_v5  ;;  %s3688_s2 = sld [smem:[#allocation2 + $0x3e]]  ;;  %s3730_s20 = sld [smem:[#allocation2 + $0xf]] }
  0xe0   :  { %4131 = sst [smem:[#allocation30_spill]] %s3641_s14  ;;  %s3653_s14 = sld [smem:[#allocation2 + $0x16]]  ;;  %v320_v31 = vadd.f32 %v318_v62, %v314_v20  ;;  %v427_v36 = vmul.f32 %v425_v24, %v3427_v6  ;;  %v431_v40 = vstv %s3565_s21  ;;  %v437_v41 = vstv %s3567_s26  ;;  %v2817_v62 = vld [vmem:[#allocation12 + $0x34] ss:$12 sps:$4 sm:$0xff]  }
  0xe1   :  { %v321_v38 = vadd.f32 %v319_v9, %v315_v25  ;;  %v422_v39 = vadd.f32 %v420_v30, %v416_v28  ;;  %v423_v43 = vadd.f32 %v421_v34, %v417_v29  ;;  %v432_v44 = vmul.f32 %v431_v40, %v3429_v7  ;;  %997 = vmatprep.subr.bf16.mxu0 %v2817_v62  ;;  %s4136_s21 = sld [smem:[#allocation29_spill]]  ;;  %s4137_s26 = sld [smem:[#allocation30_spill]] }
  0xe2   :  { %v326_v42 = vadd.f32 %v324_v18, %v320_v31  ;;  %v433_v45 = vmul.f32 %v431_v40, %v3431_v8  ;;  %v438_v48 = vmul.f32 %v437_v41, %v3439_v10  ;;  %v439_v49 = vmul.f32 %v437_v41, %v3441_v11  ;;  %998 = vmatpush1.bf16.msra.mxu0 %v2819_v63 }
  0xe3   :  { %v327_v46 = vadd.f32 %v325_v19, %v321_v38  ;;  %v428_v47 = vadd.f32 %v426_v35, %v422_v39  ;;  %v429_v51 = vadd.f32 %v427_v36, %v423_v43  ;;  %v443_v52 = vstv %s3571_s24  ;;  %s3756_s24 = sld [smem:[#allocation2 + $0x27]] }
  0xe4   :  { %v330_v50 = vadd.f32 %v329_v13, %v326_v42  ;;  %v449_v53 = vstv %s3573_s27  ;;  %v444_v57 = vmul.f32 %v443_v52, %v3449_v16  ;;  %v445_v58 = vmul.f32 %v443_v52, %v3451_v17  ;;  %s3835_s27 = sld [smem:[#allocation2 + $0x3f]] }
  0xe5   :  { %v331_v54 = vadd.f32 %v329_v13, %v327_v46  ;;  %v434_v56 = vadd.f32 %v432_v44, %v428_v47  ;;  %v435_v61 = vadd.f32 %v433_v45, %v429_v51  ;;  %v450_v60 = vmul.f32 %v449_v53, %v3460_v22  ;;  %v2820_v13 = vld [vmem:[#allocation12 + $0x38] ss:$12 sps:$4 sm:$0xff]  }
  0xe6   :  { %v332_v59 = vmax.f32 %v330_v50, 0.0  ;;  %v451_v55 = vmul.f32 %v449_v53, %v3469_v26  ;;  %v455_v14 = vstv %s3577_s22  ;;  %v461_v15 = vstv %s3579_s29  ;;  %2611 = vmatpush3.bf16.msra.mxu1 %v2820_v13  ;;  %s3841_s22 = sld [smem:[#allocation2 + $0x47]] }
  0xe7   :  { %v333_v9 = vmax.f32 %v331_v54, 0.0  ;;  %v440_v12 = vadd.f32 %v438_v48, %v434_v56  ;;  %v441_v18 = vadd.f32 %v439_v49, %v435_v61  ;;  %v456_v19 = vmul.f32 %v455_v14, %v3471_v27  ;;  %2612 = vmatprep.subr.bf16.mxu1 %v3180_v0  ;;  %s2403_s29 = sld [smem:[#allocation6 + $0x7]] }
  0xe8   :  { %v457_v20 = vmul.f32 %v455_v14, %v3475_v32  ;;  %v462_v21 = vmul.f32 %v461_v15, %v3477_v33  ;;  %v463_v25 = vmul.f32 %v461_v15, %v3481_v37  ;;  %v467_v28 = vstv %s3583_s6  ;;  %s4144_s6 = sld [smem:[#allocation40_spill]] }
  0xe9   :  { %v334_v23 = vadd.f32 %v333_v9, %v332_v59  ;;  %v446_v24 = vadd.f32 %v444_v57, %v440_v12  ;;  %v447_v29 = vadd.f32 %v445_v58, %v441_v18  ;;  %v484_v30 = vstv %s3585_s8 }
  0xea   :  { %v488_v31 = vstv %s3590_s18  ;;  %v494_v34 = vstv %s3592_s17  ;;  %v485_v36 = vmul.f32 %v484_v30, %v3413_v1  ;;  %v486_v38 = vmul.f32 %v484_v30, %v3415_v2  ;;  %s3711_s17 = sld [smem:[#allocation2 + $0x46]] }
  0xeb   :  { %335 = vadd.xlane.f32.xlu0 %v334_v23  ;;  %v452_v35 = vadd.f32 %v450_v60, %v446_v24  ;;  %v489_v39 = vmul.f32 %v488_v31, %v3419_v3  ;;  %v453_v40 = vadd.f32 %v451_v55, %v447_v29  ;;  %v490_v41 = vmul.f32 %v488_v31, %v3421_v4  ;;  %s3717_s18 = sld [smem:[#allocation6 + $0x6]] }
  0xec   :  { %v495_v42 = vmul.f32 %v494_v34, %v3423_v5  ;;  %v496_v43 = vmul.f32 %v494_v34, %v3427_v6  ;;  %v500_v46 = vstv %s3596_s1  ;;  %v506_v47 = vstv %s3598_s19  ;;  %s4139_s1 = sld [smem:[#allocation35_spill]]  ;;  %s4145_s19 = sld [smem:[#allocation41_spill]] }
  0xed   :  { %v458_v44 = vadd.f32 %v456_v19, %v452_v35  ;;  %v491_v45 = vadd.f32 %v489_v39, %v485_v36  ;;  %v459_v48 = vadd.f32 %v457_v20, %v453_v40  ;;  %v492_v49 = vadd.f32 %v490_v41, %v486_v38 }
  0xee   :  { %v501_v50 = vmul.f32 %v500_v46, %v3429_v7  ;;  %v502_v51 = vmul.f32 %v500_v46, %v3431_v8  ;;  %v507_v54 = vmul.f32 %v506_v47, %v3439_v10  ;;  %v508_v56 = vmul.f32 %v506_v47, %v3441_v11 }
  0xef   :  { %v464_v52 = vadd.f32 %v462_v21, %v458_v44  ;;  %v497_v53 = vadd.f32 %v495_v42, %v491_v45  ;;  %v465_v57 = vadd.f32 %v463_v25, %v459_v48  ;;  %v498_v58 = vadd.f32 %v496_v43, %v492_v49 }
  0xf0   :  { %v512_v59 = vstv %s3603_s16  ;;  %v518_v61 = vstv %s3605_s15  ;;  %v524_v19 = vstv %s3608_s12  ;;  %v530_v20 = vstv %s3610_s13  ;;  %s4133_s15 = sld [smem:[#allocation26_spill]]  ;;  %s4134_s16 = sld [smem:[#allocation27_spill]] }
  0xf1   :  { %v468_v60 = vadd.f32 %v467_v28, %v464_v52  ;;  %v503_v55 = vadd.f32 %v501_v50, %v497_v53  ;;  %v513_v62 = vmul.f32 %v512_v59, %v3449_v16  ;;  %v514_v63 = vmul.f32 %v512_v59, %v3451_v17  ;;  %s3734_s13 = sld [smem:[#allocation2 + $0x17]] }
  0xf2   :  { %v469_v9 = vadd.f32 %v467_v28, %v465_v57  ;;  %v504_v12 = vadd.f32 %v502_v51, %v498_v58  ;;  %v519_v14 = vmul.f32 %v518_v61, %v3460_v22  ;;  %v520_v15 = vmul.f32 %v518_v61, %v3469_v26 }
  0xf3   :  { %v470_v13 = vmax.f32 %v468_v60, 0.0  ;;  %v509_v18 = vadd.f32 %v507_v54, %v503_v55  ;;  %v525_v24 = vmul.f32 %v524_v19, %v3471_v27  ;;  %v526_v25 = vmul.f32 %v524_v19, %v3475_v32  ;;  %v2821_v60 = vld [vmem:[#allocation12 + $0x4c] ss:$12 sps:$4 sm:$0xff]   ;;  %v2824_v55 = vld [vmem:[#allocation12 + $0x50] ss:$12 sps:$4 sm:$0xff]  }
  0xf4   :  { %v471_v21 = vmax.f32 %v469_v9, 0.0  ;;  %v510_v23 = vadd.f32 %v508_v56, %v504_v12  ;;  %v531_v29 = vmul.f32 %v530_v20, %v3477_v33  ;;  %v532_v30 = vmul.f32 %v530_v20, %v3481_v37  ;;  %999 = vmatprep.subr.bf16.mxu0 %v2821_v60  ;;  %2613 = vmatpush3.bf16.msra.mxu1 %v2824_v55 }
  0xf5   :  { %v515_v28 = vadd.f32 %v513_v62, %v509_v18  ;;  %v536_v31 = vstv %s3615_s11  ;;  %v553_v36 = vstv %s3617_s25  ;;  %v557_v38 = vstv %s3620_s10  ;;  %s3744_s10 = sld [smem:[#allocation2 + $0x1f]]  ;;  %s4135_s11 = sld [smem:[#allocation28_spill]]  ;;  %2614 = vmatprep.subr.bf16.mxu1 %v3180_v0 }
  0xf6   :  { %v472_v34 = vadd.f32 %v471_v21, %v470_v13  ;;  %v516_v35 = vadd.f32 %v514_v63, %v510_v23  ;;  %v554_v40 = vmul.f32 %v553_v36, %v3413_v1  ;;  %v555_v41 = vmul.f32 %v553_v36, %v3415_v2 }
  0xf7   :  { %v521_v39 = vadd.f32 %v519_v14, %v515_v28  ;;  %v558_v42 = vmul.f32 %v557_v38, %v3419_v3  ;;  %v559_v44 = vmul.f32 %v557_v38, %v3421_v4  ;;  %v563_v45 = vstv %s4133_s15 }
  0xf8   :  { %473 = vadd.xlane.f32.xlu1 %v472_v34  ;;  %v522_v43 = vadd.f32 %v520_v15, %v516_v35  ;;  %v569_v46 = vstv %s4134_s16  ;;  %v564_v49 = vmul.f32 %v563_v45, %v3423_v5  ;;  %v565_v50 = vmul.f32 %v563_v45, %v3427_v6  ;;  %v3775_v35 = vld [vmem:[#allocation8 + $0x10] sm:$0xff] }
  0xf9   :  { %v527_v47 = vadd.f32 %v525_v24, %v521_v39  ;;  %v560_v48 = vadd.f32 %v558_v42, %v554_v40  ;;  %v561_v2 = vadd.f32 %v559_v44, %v555_v41  ;;  %v570_v3 = vmul.f32 %v569_v46, %v3429_v7  ;;  %v3782_v40 = vld [vmem:[#allocation8 + $0x20] sm:$0xff]  ;;  %v3785_v42 = vld [vmem:[#allocation8 + $0x28] sm:$0xff] }
  0xfa   :  { %v528_v1 = vadd.f32 %v526_v25, %v522_v43  ;;  %v571_v51 = vmul.f32 %v569_v46, %v3431_v8  ;;  %v575_v4 = vstv %s3629_s30  ;;  %v581_v54 = vstv %s3632_s7  ;;  %v2823_v8 = vld [vmem:[#allocation12 + $0x48] ss:$12 sps:$4 sm:$0xff]   ;;  %s4138_s7 = sld [smem:[#allocation31_spill]] }
  0xfb   :  { %v533_v52 = vadd.f32 %v531_v29, %v527_v47  ;;  %v566_v53 = vadd.f32 %v564_v49, %v560_v48  ;;  %v567_v57 = vadd.f32 %v565_v50, %v561_v2  ;;  %v576_v5 = vmul.f32 %v575_v4, %v3439_v10  ;;  %1000 = vmatpush1.bf16.msra.mxu0 %v2823_v8  ;;  %v3768_v29 = vld [vmem:[#allocation8] sm:$0xff]  ;;  %v3789_v48 = vld [vmem:[#allocation8 + $0x30] sm:$0xff] }
  0xfc   :  { %v534_v56 = vadd.f32 %v532_v30, %v528_v1  ;;  %v577_v6 = vmul.f32 %v575_v4, %v3441_v11  ;;  %v582_v61 = vmul.f32 %v581_v54, %v3449_v16  ;;  %v583_v7 = vmul.f32 %v581_v54, %v3451_v17  ;;  %v3792_v1 = vld [vmem:[#allocation8 + $0x38] sm:$0xff]  ;;  %v3797_v54 = vld [vmem:[#allocation8 + $0x40] sm:$0xff] }
  0xfd   :  { %v537_v58 = vadd.f32 %v536_v31, %v533_v52  ;;  %v572_v59 = vadd.f32 %v570_v3, %v566_v53  ;;  %v573_v63 = vadd.f32 %v571_v51, %v567_v57  ;;  %v587_v9 = vstv %s4135_s11 }
  0xfe   :  { %v538_v62 = vadd.f32 %v536_v31, %v534_v56  ;;  %v593_v12 = vstv %s4136_s21  ;;  %v588_v14 = vmul.f32 %v587_v9, %v3460_v22  ;;  %v589_v16 = vmul.f32 %v587_v9, %v3469_v26  ;;  %v2827_v9 = vld [vmem:[#allocation12 + $0x60] ss:$12 sps:$4 sm:$0xff]   ;;  %s4141_s21 = sld [smem:[#allocation37_spill]] }
  0xff   :  { %v539_v10 = vmax.f32 %v537_v58, 0.0  ;;  %v578_v11 = vadd.f32 %v576_v5, %v572_v59  ;;  %v579_v15 = vadd.f32 %v577_v6, %v573_v63  ;;  %v594_v13 = vmul.f32 %v593_v12, %v3471_v27  ;;  %v3800_v5 = vld [vmem:[#allocation8 + $0x48] sm:$0xff]  ;;  %v3803_v58 = vld [vmem:[#allocation8 + $0x50] sm:$0xff]  ;;  %v2825_v63 = vld [vmem:[#allocation12 + $0x64] ss:$12 sps:$4 sm:$0xff]  }
 0x100   :  { %v540_v17 = vmax.f32 %v538_v62, 0.0  ;;  %v595_v18 = vmul.f32 %v593_v12, %v3475_v32  ;;  %v599_v20 = vstv %s4137_s26  ;;  %v605_v21 = vstv %s4138_s7  ;;  %v3771_v32 = vld [vmem:[#allocation8 + $0x8] sm:$0xff]  ;;  %1001 = vmatprep.subr.bf16.mxu0 %v2825_v63 }
 0x101   :  { %v584_v19 = vadd.f32 %v582_v61, %v578_v11  ;;  %v622_v23 = vstv %s3646_s3  ;;  %v585_v22 = vadd.f32 %v583_v7, %v579_v15  ;;  %v600_v26 = vmul.f32 %v599_v20, %v3477_v33  ;;  %v3778_v33 = vld [vmem:[#allocation8 + $0x18] sm:$0xff]  ;;  %v3810_v11 = vld [vmem:[#allocation8 + $0x60] sm:$0xff]  ;;  %s3814_s3 = sld [smem:[#allocation2 + $0x2f]]  ;;  %1002 = vmatpush1.bf16.msra.mxu0 %v2827_v9 }
 0x102   :  { %v541_v24 = vadd.f32 %v540_v17, %v539_v10  ;;  %v601_v25 = vmul.f32 %v599_v20, %v3481_v37  ;;  %v623_v27 = vmul.f32 %v3768_v29, %v622_v23  ;;  %v624_v30 = vmul.f32 %v3771_v32, %v622_v23  ;;  %v3806_v61 = vld [vmem:[#allocation8 + $0x58] sm:$0xff]  ;;  %v3819_v20 = vld [vmem:[#allocation8 + $0x70] sm:$0xff] }
 0x103   :  { %v590_v28 = vadd.f32 %v588_v14, %v584_v19  ;;  %v626_v31 = vstv %s3651_s5  ;;  %v591_v34 = vadd.f32 %v589_v16, %v585_v22  ;;  %v632_v38 = vstv %s3653_s14  ;;  %v2828_v12 = vld [vmem:[#allocation12 + $0x68] ss:$12 sps:$4 sm:$0xff]   ;;  %s4146_s14 = sld [smem:[#allocation42_spill]]  ;;  %s4147_s5 = sld [smem:[#allocation43_spill]] }
 0x104   :  { %542 = vadd.xlane.f32.xlu0 %v541_v24  ;;  %v627_v36 = vmul.f32 %v3775_v35, %v626_v31  ;;  %v628_v37 = vmul.f32 %v3778_v33, %v626_v31  ;;  %v633_v41 = vmul.f32 %v3782_v40, %v632_v38  ;;  %v634_v43 = vmul.f32 %v3785_v42, %v632_v38  ;;  %v3822_v23 = vld [vmem:[#allocation8 + $0x78] sm:$0xff] }
 0x105   :  { %v596_v39 = vadd.f32 %v594_v13, %v590_v28  ;;  %v638_v44 = vstv %s3657_s4  ;;  %v597_v45 = vadd.f32 %v595_v18, %v591_v34  ;;  %v644_v3 = vstv %s3659_s9  ;;  %v3816_v18 = vld [vmem:[#allocation8 + $0x68] sm:$0xff]  ;;  %2615 = vmatpush3.bf16.msra.mxu1 %v2828_v12  ;;  %s3828_s9 = sld [smem:[#allocation2 + $0x37]] }
 0x106   :  { %v629_v46 = vadd.f32 %v627_v36, %v623_v27  ;;  %v630_v47 = vadd.f32 %v628_v37, %v624_v30  ;;  %v639_v49 = vmul.f32 %v3789_v48, %v638_v44  ;;  %v640_v2 = vmul.f32 %v3792_v1, %v638_v44  ;;  %2616 = vmatprep.subr.bf16.mxu1 %v3180_v0  ;;  %v2953_v30 = vld [vmem:[#allocation8 + $0x80] sm:$0xff]  ;;  %v2954_v34 = vld [vmem:[#allocation8 + $0x88] sm:$0xff] }
 0x107   :  { %v602_v50 = vadd.f32 %v600_v26, %v596_v39  ;;  %v650_v51 = vstv %s3664_s23  ;;  %v603_v52 = vadd.f32 %v601_v25, %v597_v45  ;;  %v645_v56 = vmul.f32 %v3797_v54, %v644_v3 }
 0x108   :  { %v635_v53 = vadd.f32 %v633_v41, %v629_v46  ;;  %v636_v4 = vadd.f32 %v634_v43, %v630_v47  ;;  %v646_v6 = vmul.f32 %v3800_v5, %v644_v3  ;;  %v651_v59 = vmul.f32 %v3803_v58, %v650_v51 }
 0x109   :  { %v606_v57 = vadd.f32 %v605_v21, %v602_v50  ;;  %v652_v7 = vmul.f32 %v3806_v61, %v650_v51  ;;  %v607_v60 = vadd.f32 %v605_v21, %v603_v52  ;;  %v656_v62 = vstv %s3666_s28 }
 0x10a   :  { %v641_v8 = vadd.f32 %v639_v49, %v635_v53  ;;  %v642_v55 = vadd.f32 %v640_v2, %v636_v4  ;;  %v657_v14 = vmul.f32 %v3810_v11, %v656_v62  ;;  %v662_v16 = vstv %s3688_s2 }
 0x10b   :  { %v608_v10 = vmax.f32 %v606_v57, 0.0  ;;  %v609_v17 = vmax.f32 %v607_v60, 0.0  ;;  %v658_v19 = vmul.f32 %v3816_v18, %v656_v62  ;;  %v663_v21 = vmul.f32 %v3819_v20, %v662_v16 }
 0x10c   :  { %v647_v15 = vadd.f32 %v645_v56, %v641_v8  ;;  %v648_v13 = vadd.f32 %v646_v6, %v642_v55  ;;  %v664_v24 = vmul.f32 %v3822_v23, %v662_v16  ;;  %v668_v22 = vstv %s3711_s17 }
 0x10d   :  { %v691_v26 = vstv %s3721_s0  ;;  %v610_v25 = vadd.f32 %v609_v17, %v608_v10  ;;  %v669_v31 = vmul.f32 %v2953_v30, %v668_v22  ;;  %v670_v36 = vmul.f32 %v2954_v34, %v668_v22 }
 0x10e   :  { %v653_v28 = vadd.f32 %v651_v59, %v647_v15  ;;  %v654_v27 = vadd.f32 %v652_v7, %v648_v13  ;;  %v692_v37 = vmul.f32 %v3768_v29, %v691_v26  ;;  %v693_v38 = vmul.f32 %v3771_v32, %v691_v26 }
 0x10f   :  { %v695_v39 = vstv %s3730_s20  ;;  %611 = vadd.xlane.f32.xlu1 %v610_v25  ;;  %v674_v46 = vstv %s3717_s18  ;;  %v701_v47 = vstv %s3734_s13  ;;  %v707_v49 = vstv %s3744_s10  ;;  %s4140_s13 = sld [smem:[#allocation36_spill]] }
 0x110   :  { %v659_v41 = vadd.f32 %v657_v14, %v653_v28  ;;  %v660_v43 = vadd.f32 %v658_v19, %v654_v27  ;;  %v696_v44 = vmul.f32 %v3775_v35, %v695_v39  ;;  %v697_v45 = vmul.f32 %v3778_v33, %v695_v39  ;;  %v2829_v27 = vld [vmem:[#allocation12 + $0x7c] ss:$12 sps:$4 sm:$0xff]   ;;  %v2836_v39 = vld [vmem:[#allocation12 + $0x98] ss:$12 sps:$4 sm:$0xff]  }
 0x111   :  { %v713_v50 = vstv %s3756_s24  ;;  %v702_v51 = vmul.f32 %v3782_v40, %v701_v47  ;;  %v703_v35 = vmul.f32 %v3785_v42, %v701_v47  ;;  %v708_v33 = vmul.f32 %v3789_v48, %v707_v49  ;;  %1003 = vmatprep.subr.bf16.mxu0 %v2829_v27  ;;  %s4142_s24 = sld [smem:[#allocation38_spill]] }
 0x112   :  { %v665_v2 = vadd.f32 %v663_v21, %v659_v41  ;;  %v666_v3 = vadd.f32 %v664_v24, %v660_v43  ;;  %v698_v29 = vadd.f32 %v696_v44, %v692_v37  ;;  %v699_v32 = vadd.f32 %v697_v45, %v693_v38  ;;  %v2837_v41 = vld [vmem:[#allocation12 + $0xac] ss:$12 sps:$4 sm:$0xff]   ;;  %v2839_v43 = vld [vmem:[#allocation12 + $0xa8] ss:$12 sps:$4 sm:$0xff]   ;;  %v2840_v44 = vld [vmem:[#allocation12 + $0xb0] ss:$12 sps:$4 sm:$0xff]  }
 0x113   :  { %v709_v52 = vmul.f32 %v3792_v1, %v707_v49  ;;  %v719_v56 = vstv %s3814_s3  ;;  %v714_v59 = vmul.f32 %v3797_v54, %v713_v50  ;;  %v715_v7 = vmul.f32 %v3800_v5, %v713_v50  ;;  %v2327_v50 = vld [vmem:[%s4139_s1] ss:$0 sm:$0xff]  ;;  %s3183_s3 = smov [#allocation18]  }
 0x114   :  { %v671_v53 = vadd.f32 %v669_v31, %v665_v2  ;;  %v672_v4 = vadd.f32 %v670_v36, %v666_v3  ;;  %v704_v57 = vadd.f32 %v702_v51, %v698_v29  ;;  %v705_v6 = vadd.f32 %v703_v35, %v699_v32  ;;  %v2832_v31 = vld [vmem:[#allocation12 + $0x80] ss:$12 sps:$4 sm:$0xff]   ;;  %v2338_v29 = vld [vmem:[%s4139_s1 + $0x1] ss:$0 sm:$0xff]  ;;  %v2318_v51 = vld [vmem:[#allocation9] ss:$0 sm:$0xff] }
 0x115   :  { %v725_v40 = vstv %s3828_s9  ;;  %v720_v48 = vmul.f32 %v3803_v58, %v719_v56  ;;  %v721_v1 = vmul.f32 %v3806_v61, %v719_v56  ;;  %v731_v9 = vstv %s3835_s27  ;;  %2617 = vmatpush3.bf16.msra.mxu1 %v2832_v31  ;;  %s4143_s27 = sld [smem:[#allocation39_spill]]  ;;  %s2304_s9 = sshll.u32 %s3183_s3, 4  ;;  %s2305_s9 = int_to_ptr.vmem [resolvable:$true] %s2304_s9 }
 0x116   :  { %v675_v60 = vadd.f32 %v674_v46, %v671_v53  ;;  %v676_v8 = vadd.f32 %v674_v46, %v672_v4  ;;  %v710_v55 = vadd.f32 %v708_v33, %v704_v57  ;;  %v711_v42 = vadd.f32 %v709_v52, %v705_v6  ;;  %2618 = vmatprep.subr.bf16.mxu1 %v3180_v0  ;;  %v2349_v4 = vld [vmem:[%s4139_s1 + $0x2] ss:$0 sm:$0xff]  ;;  %v2360_v6 = vld [vmem:[%s4139_s1 + $0x3] ss:$0 sm:$0xff]  ;;  %p3134_p7 = scmp.lt.s32.totalorder %s2305_s9, %s2305_s9 }
 0x117   :  { %v726_v54 = vmul.f32 %v3810_v11, %v725_v40  ;;  %v727_v5 = vmul.f32 %v3816_v18, %v725_v40  ;;  %v737_v16 = vstv %s3841_s22  ;;  %v732_v13 = vmul.f32 %v3819_v20, %v731_v9  ;;  %v2831_v18 = vld [vmem:[#allocation12 + $0x78] ss:$12 sps:$4 sm:$0xff]  }
 0x118   :  { %v677_v62 = vmax.f32 %v675_v60, 0.0  ;;  %v678_v63 = vmax.f32 %v676_v8, 0.0  ;;  %v716_v12 = vadd.f32 %v714_v59, %v710_v55  ;;  %v717_v10 = vadd.f32 %v715_v7, %v711_v42  ;;  %1004 = vmatpush1.bf16.msra.mxu0 %v2831_v18  ;;  %v2371_v55 = vld [vmem:[%s4139_s1 + $0x4] ss:$0 sm:$0xff] }
 0x119   :  { %v733_v58 = vmul.f32 %v3822_v23, %v731_v9  ;;  %v738_v21 = vmul.f32 %v2953_v30, %v737_v16  ;;  %v739_v24 = vmul.f32 %v2954_v34, %v737_v16  ;;  %v743_v25 = vstv %s2403_s29  ;;  %v2833_v30 = vld [vmem:[#allocation12 + $0x94] ss:$12 sps:$4 sm:$0xff]   ;;  %v2835_v34 = vld [vmem:[#allocation12 + $0x90] ss:$12 sps:$4 sm:$0xff]   ;;  %2619 = vmatpush3.bf16.msra.mxu1 %v2836_v39 }
 0x11a   :  { %v679_v14 = vadd.f32 %v678_v63, %v677_v62  ;;  %v722_v17 = vadd.f32 %v720_v48, %v716_v12  ;;  %v723_v15 = vadd.f32 %v721_v1, %v717_v10  ;;  %1005 = vmatprep.subr.bf16.mxu0 %v2833_v30  ;;  %2620 = vmatprep.subr.bf16.mxu1 %v3180_v0  ;;  %v3181_v45 = vmov 0   ;;  %v2382_v63 = vld [vmem:[%s4139_s1 + $0x5] ss:$0 sm:$0xff] }
 0x11b   :  { %1025 = vmatprep.mubr.bf16.mxu0 %v3181_v45 }
 0x11c   :  { %680 = vadd.xlane.f32.xlu0 %v679_v14  ;;  %v728_v61 = vadd.f32 %v726_v54, %v722_v17  ;;  %v729_v19 = vadd.f32 %v727_v5, %v723_v15  ;;  %1006 = vmatpush1.bf16.msra.mxu0 %v2835_v34  ;;  %v2393_v5 = vld [vmem:[%s4139_s1 + $0x6] ss:$0 sm:$0xff]  ;;  %v2404_v17 = vld [vmem:[%s4139_s1 + $0x7] ss:$0 sm:$0xff] }
 0x11d   :  { %1007 = vmatprep.subr.bf16.mxu0 %v2837_v41  ;;  %2621 = vmatpush3.bf16.msra.mxu1 %v2840_v44 }
 0x11e   :  { %v734_v22 = vadd.f32 %v732_v13, %v728_v61  ;;  %v735_v26 = vadd.f32 %v733_v58, %v729_v19  ;;  %2658 = vmatprep.subr.bf16.mxu1 %v3180_v0 }
 0x120   :  { %v740_v28 = vadd.f32 %v738_v21, %v734_v22  ;;  %v741_v11 = vadd.f32 %v739_v24, %v735_v26  ;;  %1008 = vmatpush1.bf16.msra.mxu0 %v2839_v43  ;;  %v850_v24 = vlaneseq }
 0x121   :  { %2626 = vmatprep.subr.bf16.mxu0 %v3180_v0 }
 0x122   :  { %v744_v36 = vadd.f32 %v743_v25, %v740_v28  ;;  %v745_v37 = vadd.f32 %v743_v25, %v741_v11  ;;  %v3898_v22 = vshrl.u32 %v850_v24, 7  ;;  %v792_v25 = vld [vmem:[%s4140_s13] sm:$0x7] }
 0x123   :  { %v2849_v24 = vld [vmem:[#allocation15] sm:$0xff]  }
 0x124   :  { %v746_v20 = vmax.f32 %v744_v36, 0.0  ;;  %v747_v38 = vmax.f32 %v745_v37, 0.0  ;;  %v856_v26 = vsub.s32 1, %v3898_v22  ;;  %v860_v28 = vsub.s32 2, %v3898_v22 }
 0x125   :  { %v852_v27 = vsub.s32 0, %v3898_v22 }
 0x126   :  { %v748_v23 = vadd.f32 %v747_v38, %v746_v20  ;;  %v857_v11 = vrot.slane %v792_v25, %v856_v26  ;;  %v861_v36 = vrot.slane %v792_v25, %v860_v28 }
 0x127   :  { %v853_v34 = vrot.slane %v792_v25, %v852_v27  ;;  %v2850_v25 = vld [vmem:[#allocation15 + $0x8] sm:$0xff]  }
 0x128   :  { %749 = vadd.xlane.f32.xlu1 %v748_v23 }
 0x162   :  { %v267_v46 = vpop.xlane.xlu0 %266 }
 0x163   :  { %v268_v49 = vmul.f32 0.00390625, %v267_v46 }
 0x165   :  { %v274_v32 = vmul.f32 %v2327_v50, %v268_v49 }
 0x167   :  { %v275_v52 = vadd.f32 %v2318_v51, %v274_v32 }
 0x16c   :  { %v405_v2 = vpop.xlane.xlu1 %404 }
 0x16d   :  { %v406_v53 = vmul.f32 0.00390625, %v405_v2 }
 0x16f   :  { %v412_v7 = vmul.f32 %v2349_v4, %v406_v53 }
 0x178   :  { %v336_v47 = vpop.xlane.xlu0 %335 }
 0x179   :  { %v337_v3 = vmul.f32 0.00390625, %v336_v47 }
 0x17b   :  { %v343_v35 = vmul.f32 %v2338_v29, %v337_v3 }
 0x17d   :  { %v344_v56 = vadd.f32 %v343_v35, %v275_v52 }
 0x17f   :  { %v413_v60 = vadd.f32 %v412_v7, %v344_v56  ;;  %v2841_v7 = vld [vmem:[#allocation14] sm:$0xff]  }
 0x185   :  { %v474_v33 = vpop.xlane.xlu1 %473 }
 0x186   :  { %v475_v57 = vmul.f32 0.00390625, %v474_v33 }
 0x188   :  { %v481_v8 = vmul.f32 %v2360_v6, %v475_v57 }
 0x18a   :  { %v482_v48 = vadd.f32 %v481_v8, %v413_v60  ;;  %v2842_v8 = vld [vmem:[#allocation14 + $0x8] sm:$0xff]  }
 0x191   :  { %v543_v59 = vpop.xlane.xlu0 %542 }
 0x192   :  { %v544_v40 = vmul.f32 0.00390625, %v543_v59 }
 0x194   :  { %v550_v1 = vmul.f32 %v2371_v55, %v544_v40  ;;  %v2843_v40 = vld [vmem:[#allocation14 + $0x10] sm:$0xff]   ;;  %v2844_v55 = vld [vmem:[#allocation14 + $0x18] sm:$0xff]  }
 0x196   :  { %v551_v12 = vadd.f32 %v550_v1, %v482_v48  ;;  %v2846_v48 = vld [vmem:[#allocation14 + $0x28] sm:$0xff]   ;;  %v2847_v1 = vld [vmem:[#allocation14 + $0x30] sm:$0xff]  }
 0x19c   :  { %v612_v42 = vpop.xlane.xlu1 %611 }
 0x19d   :  { %v613_v62 = vmul.f32 0.00390625, %v612_v42  ;;  %v2845_v42 = vld [vmem:[#allocation14 + $0x20] sm:$0xff]  }
 0x19f   :  { %v619_v10 = vmul.f32 %v2382_v63, %v613_v62  ;;  %v2848_v62 = vld [vmem:[#allocation14 + $0x38] sm:$0xff]  }
 0x1a1   :  { %v620_v14 = vadd.f32 %v619_v10, %v551_v12 }
 0x1a9   :  { %v681_v9 = vpop.xlane.xlu0 %680 }
 0x1aa   :  { %v682_v54 = vmul.f32 0.00390625, %v681_v9 }
 0x1ac   :  { %v688_v16 = vmul.f32 %v2393_v5, %v682_v54  ;;  %v2430_v5 = vld [vmem:[%s4141_s21] ss:$0 sm:$0xff] }
 0x1ae   :  { %v689_v13 = vadd.f32 %v688_v16, %v620_v14 }
 0x1b5   :  { %v750_v15 = vpop.xlane.xlu1 %749 }
 0x1b6   :  { %v751_v58 = vmul.f32 0.00390625, %v750_v15 }
 0x1b8   :  { %v757_v61 = vmul.f32 %v2404_v17, %v751_v58 }
 0x1ba   :  { %v3890_v19 = vadd.f32 %v757_v61, %v689_v13  ;;  %v3935_v13 = vld [vmem:[#allocation11] ss:$0 sm:$0xff] }
 0x1bc   :  { %v848_v21 = vpack.c.bf16 %v3890_v19, %v3890_v19 }
 0x1be   :  { %1026 = vmatmul.mubr.bf16.vlgmr.msra.gmra.mrb[0].mxu0 %v848_v21  ;;  %2623 = vmatmul.mubr.bf16.vlgmr.msra.gmra.mrb[0].mxu1 %v848_v21 }
 0x1bf   :  { %2628 = vmatprep.mubr.msk.bf16.mxu0 %vm3182_vm0, %v3180_v0  ;;  %2674 = vmatprep.mubr.msk.bf16.mxu1 %vm3182_vm0, %v3180_v0 }
 0x1c0   :  { %2659 = vmatpush3.bf16.msra.mxu1 %v2849_v24 }
 0x1c1   :  { %2660 = vmatprep.subr.bf16.mxu1 %v3180_v0 }
 0x1c4   :  { %2661 = vmatpush3.bf16.msra.mxu1 %v2850_v25 }
 0x1c5   :  { %2662 = vmatprep.subr.bf16.mxu1 %v3180_v0 }
 0x291   :  { %v1027_v18 = vpop.f32.mrb[0].mxu0  ;;  %v1068_v31 = vpop.f32.mrb[0].mxu1 }
 0x292   :  { %v1029_v37 = vpop.f32.mrb[1].mxu0  ;;  %v2624_v20 = vpop.f32.mrb[1].mxu1  ;;  %v1069_v44 = vadd.f32 %v1068_v31, %v861_v36  ;;  %v1028_v46 = vadd.f32 %v1027_v18, %v853_v34  ;;  %v2856_v34 = vld [vmem:[#allocation15 + $0x38] sm:$0xff]  }
 0x293   :  { %v1030_v38 = vadd.f32 %v1029_v37, %v857_v11  ;;  %v1031_v23 = vpop.f32.mrb[2].mxu0  ;;  %v1071_v30 = vpop.f32.mrb[2].mxu1  ;;  %v2852_v20 = vld [vmem:[#allocation15 + $0x18] sm:$0xff]  }
 0x294   :  { %v1032_v39 = vpop.f32.mrb[3].mxu0  ;;  %v2625_v41 = vpop.f32.mrb[3].mxu1  ;;  %v1076_v47 = vpack.c.bf16 %v1069_v44, %v1069_v44  ;;  %v1074_v49 = vpack.c.bf16 %v1028_v46, %v1028_v46  ;;  %v2854_v23 = vld [vmem:[#allocation15 + $0x28] sm:$0xff]   ;;  %v2855_v30 = vld [vmem:[#allocation15 + $0x30] sm:$0xff]   ;;  %v2860_v44 = vld [vmem:[#allocation17 + $0x18] sm:$0xff]  }
 0x295   :  { %v1075_v43 = vpack.c.bf16 %v1030_v38, %v1030_v38  ;;  %v2853_v38 = vld [vmem:[#allocation15 + $0x20] sm:$0xff]   ;;  %v2858_v41 = vld [vmem:[#allocation17 + $0x8] sm:$0xff]  }
 0x296   :  { %v1136_v50 = vsel %vm1134_vm1, %v1076_v47, 0  ;;  %v2857_v39 = vld [vmem:[#allocation17] sm:$0xff]   ;;  %v2862_v47 = vld [vmem:[#allocation17 + $0x28] sm:$0xff]  }
 0x297   :  { %2627 = vmatpush3.bf16.xpose.msra.mxu0 %v1075_v43  ;;  %v2859_v43 = vld [vmem:[#allocation17 + $0x10] sm:$0xff]   ;;  %v2861_v46 = vld [vmem:[#allocation17 + $0x20] sm:$0xff]  }
 0x298   :  { %2632 = vmatprep.subr.bf16.mxu0 %v3180_v0 }
 0x29e   :  { %2629 = vmatmul.mubr.bf16.vlgmr.msra.gmra.mrb[4].mxu0 %v1074_v49 }
 0x29f   :  { %2633 = vmatpush3.bf16.msra.mxu0 %v1136_v50  ;;  %2634 = vmatprep.mubr.msk.bf16.mxu0 %vm3182_vm0, %v3180_v0 }
 0x2a0   :  { %2638 = vmatprep.subr.bf16.mxu0 %v3180_v0 }
 0x371   :  { %v1111_v2 = vpop.f32.mrb[4].mxu0 }
 0x372   :  { %v1117_v3 = vmul.f32 0.17677669, %v1111_v2  ;;  %v2630_v29 = vpop.f32.mrb[5].mxu0 }
 0x373   :  { %v1114_v32 = vpop.f32.mrb[6].mxu0  ;;  %v2440_v29 = vld [vmem:[%s4142_s24] ss:$0 sm:$0xff] }
 0x374   :  { %v2631_v51 = vpop.f32.mrb[7].mxu0  ;;  %v1119_v35 = vsel %vm1118_vm2, %v1117_v3, -inf }
 0x375   :  { %1120 = vmax.xlane.f32.xlu0 %v1119_v35  ;;  %v2441_v51 = vld [vmem:[%s4143_s27] ss:$0 sm:$0xff] }
 0x402   :  { %v1121_v33 = vpop.xlane.xlu0 %1120 }
 0x403   :  { %v1122_v52 = vsub.f32 %v1117_v3, %v1121_v33 }
 0x405   :  { %v1123_v53 = vmul.f32 1.442695, %v1122_v52 }
 0x407   :  { %2921 = vpow2.f32 %v1123_v53  ;;  %v2863_v53 = vld [vmem:[#allocation17 + $0x30] sm:$0xff]  }
 0x411   :  { %v2922_v4 = vpop.eup %2921 }
 0x412   :  { %v1125_v56 = vsel %vm1118_vm2, %v2922_v4, 0.0 }
 0x413   :  { %1126 = vadd.xlane.f32.xlu1 %v1125_v56  ;;  %v2442_v56 = vld [vmem:[%s4144_s6] ss:$0 sm:$0xff] }
 0x4a0   :  { %v1127_v57 = vpop.xlane.xlu1 %1126 }
 0x4a1   :  { %2923 = vrcp.f32 %v1127_v57 }
 0x4ab   :  { %v2924_v6 = vpop.eup %2923 }
 0x4ac   :  { %v1129_v59 = vmul.f32 %v2924_v6, %v2922_v4  ;;  %v2864_v4 = vld [vmem:[#allocation17 + $0x38] sm:$0xff]  }
 0x4ae   :  { %v1130_v60 = vpack.c.bf16 %v1129_v59, %v1129_v59 }
 0x4b0   :  { %2635 = vmatmul.mubr.msk.bf16.vlgmr.msra.gmra.mrb[8].mxu0 %vm1118_vm2, %v1130_v60 }
 0x4b1   :  { %2639 = vmatpush3.bf16.msra.mxu0 %v2841_v7  ;;  %2654 = vmatprep.mubr.msk.bf16.mxu0 %vm3182_vm0, %v3180_v0 }
 0x4b2   :  { %2640 = vmatprep.subr.bf16.mxu0 %v3180_v0 }
 0x4b5   :  { %2641 = vmatpush3.bf16.msra.mxu0 %v2842_v8 }
 0x4b6   :  { %2642 = vmatprep.subr.bf16.mxu0 %v3180_v0 }
 0x4b9   :  { %2643 = vmatpush3.bf16.msra.mxu0 %v2843_v40 }
 0x4ba   :  { %2644 = vmatprep.subr.bf16.mxu0 %v3180_v0 }
 0x4bd   :  { %2645 = vmatpush3.bf16.msra.mxu0 %v2844_v55 }
 0x4be   :  { %2646 = vmatprep.subr.bf16.mxu0 %v3180_v0 }
 0x4c1   :  { %2647 = vmatpush3.bf16.msra.mxu0 %v2845_v42 }
 0x4c2   :  { %2648 = vmatprep.subr.bf16.mxu0 %v3180_v0 }
 0x4c5   :  { %2649 = vmatpush3.bf16.msra.mxu0 %v2846_v48 }
 0x4c6   :  { %2650 = vmatprep.subr.bf16.mxu0 %v3180_v0 }
 0x4c9   :  { %2651 = vmatpush3.bf16.msra.mxu0 %v2847_v1 }
 0x4ca   :  { %2652 = vmatprep.subr.bf16.mxu0 %v3180_v0 }
 0x4cd   :  { %2653 = vmatpush3.bf16.msra.mxu0 %v2848_v62 }
 0x4ce   :  { %2678 = vmatprep.subr.bf16.mxu0 %v3180_v0 }
 0x583   :  { %v1172_v63 = vpop.f32.mrb[8].mxu0 }
 0x584   :  { %v1178_v9 = vpack.c.bf16 %v1172_v63, %v1172_v63  ;;  %v2636_v12 = vpop.f32.mrb[9].mxu0 }
 0x585   :  { %v1175_v10 = vpop.f32.mrb[10].mxu0  ;;  %v2865_v12 = vld [vmem:[#allocation12 + $0xc0] ss:$12 sps:$4 sm:$0xff]  }
 0x586   :  { %v2637_v54 = vpop.f32.mrb[11].mxu0  ;;  %2655 = vmatmul.mubr.bf16.vlgmr.msra.gmra.mrb[12].mxu0 %v1178_v9  ;;  %v2867_v10 = vld [vmem:[#allocation12 + $0xc4] ss:$12 sps:$4 sm:$0xff]  }
 0x587   :  { %2694 = vmatprep.mubr.msk.bf16.mxu0 %vm3182_vm0, %v3180_v0  ;;  %2679 = vmatpush3.bf16.msra.mxu0 %v2857_v39  ;;  %v2868_v54 = vld [vmem:[#allocation12 + $0xc8] ss:$12 sps:$4 sm:$0xff]   ;;  %v2889_v39 = vld [vmem:[#allocation12 + $0x150] ss:$12 sps:$4 sm:$0xff]  }
 0x588   :  { %2680 = vmatprep.subr.bf16.mxu0 %v3180_v0 }
 0x58b   :  { %2681 = vmatpush3.bf16.msra.mxu0 %v2858_v41  ;;  %v2892_v41 = vld [vmem:[#allocation12 + $0x158] ss:$12 sps:$4 sm:$0xff]  }
 0x58c   :  { %2682 = vmatprep.subr.bf16.mxu0 %v3180_v0 }
 0x58f   :  { %2683 = vmatpush3.bf16.msra.mxu0 %v2859_v43  ;;  %v2895_v43 = vld [vmem:[#allocation12 + $0x16c] ss:$12 sps:$4 sm:$0xff]  }
 0x590   :  { %2684 = vmatprep.subr.bf16.mxu0 %v3180_v0 }
 0x593   :  { %2685 = vmatpush3.bf16.msra.mxu0 %v2860_v44  ;;  %v2893_v44 = vld [vmem:[#allocation12 + $0x168] ss:$12 sps:$4 sm:$0xff]  }
 0x594   :  { %2686 = vmatprep.subr.bf16.mxu0 %v3180_v0 }
 0x597   :  { %2687 = vmatpush3.bf16.msra.mxu0 %v2861_v46  ;;  %v2896_v46 = vld [vmem:[#allocation12 + $0x170] ss:$12 sps:$4 sm:$0xff]  }
 0x598   :  { %2688 = vmatprep.subr.bf16.mxu0 %v3180_v0 }
 0x59b   :  { %2689 = vmatpush3.bf16.msra.mxu0 %v2862_v47 }
 0x59c   :  { %2690 = vmatprep.subr.bf16.mxu0 %v3180_v0 }
 0x59f   :  { %2691 = vmatpush3.bf16.msra.mxu0 %v2863_v53 }
 0x5a0   :  { %2692 = vmatprep.subr.bf16.mxu0 %v3180_v0 }
 0x5a3   :  { %2693 = vmatpush3.bf16.msra.mxu0 %v2864_v4 }
 0x5a4   :  { %2698 = vmatprep.subr.bf16.mxu0 %v3180_v0 }
 0x659   :  { %v1267_v14 = vpop.f32.mrb[12].mxu0 }
 0x65a   :  { %v1268_v16 = vadd.f32 %v2430_v5, %v1267_v14  ;;  %v2656_v17 = vpop.f32.mrb[13].mxu0  ;;  %v2871_v5 = vld [vmem:[#allocation12 + $0xdc] ss:$12 sps:$4 sm:$0xff]   ;;  %v2872_v14 = vld [vmem:[#allocation12 + $0xe0] ss:$12 sps:$4 sm:$0xff]  }
 0x65b   :  { %v1270_v15 = vpop.f32.mrb[14].mxu0  ;;  %v2875_v17 = vld [vmem:[#allocation12 + $0xf4] ss:$12 sps:$4 sm:$0xff]  }
 0x65c   :  { %v1273_v58 = vadd.f32 %v1268_v16, %v3890_v19  ;;  %v2657_v61 = vpop.f32.mrb[15].mxu0  ;;  %v2851_v19 = vld [vmem:[#allocation15 + $0x10] sm:$0xff]   ;;  %v2869_v16 = vld [vmem:[#allocation12 + $0xd8] ss:$12 sps:$4 sm:$0xff]  }
 0x65d   :  { %2663 = vmatpush3.bf16.msra.mxu1 %v2851_v19  ;;  %v2873_v15 = vld [vmem:[#allocation12 + $0xf0] ss:$12 sps:$4 sm:$0xff]   ;;  %v2881_v19 = vld [vmem:[#allocation12 + $0x120] ss:$12 sps:$4 sm:$0xff]  }
 0x65e   :  { %v1280_v21 = vmul.f32 %v3935_v13, %v1273_v58  ;;  %2664 = vmatprep.subr.bf16.mxu1 %v3180_v0 }
 0x660   :  { %1281 = vadd.xlane.f32.xlu0 %v1280_v21 }
 0x661   :  { %2665 = vmatpush3.bf16.msra.mxu1 %v2852_v20  ;;  %v2884_v20 = vld [vmem:[#allocation12 + $0x128] ss:$12 sps:$4 sm:$0xff]  }
 0x662   :  { %2666 = vmatprep.subr.bf16.mxu1 %v3180_v0 }
 0x665   :  { %2667 = vmatpush3.bf16.msra.mxu1 %v2853_v38  ;;  %v2887_v38 = vld [vmem:[#allocation12 + $0x13c] ss:$12 sps:$4 sm:$0xff]  }
 0x666   :  { %2668 = vmatprep.subr.bf16.mxu1 %v3180_v0 }
 0x669   :  { %2669 = vmatpush3.bf16.msra.mxu1 %v2854_v23  ;;  %v2885_v23 = vld [vmem:[#allocation12 + $0x138] ss:$12 sps:$4 sm:$0xff]  }
 0x66a   :  { %2670 = vmatprep.subr.bf16.mxu1 %v3180_v0 }
 0x66d   :  { %2671 = vmatpush3.bf16.msra.mxu1 %v2855_v30  ;;  %v2888_v30 = vld [vmem:[#allocation12 + $0x140] ss:$12 sps:$4 sm:$0xff]  }
 0x66e   :  { %2672 = vmatprep.subr.bf16.mxu1 %v3180_v0 }
 0x671   :  { %2673 = vmatpush3.bf16.msra.mxu1 %v2856_v34  ;;  %v2891_v34 = vld [vmem:[#allocation12 + $0x154] ss:$12 sps:$4 sm:$0xff]  }
 0x672   :  { %1772 = vmatprep.subr.bf16.mxu1 %v2867_v10 }
 0x6ed   :  { %v1282_v11 = vpop.xlane.xlu0 %1281 }
 0x6ee   :  { %v1284_v18 = vmul.f32 0.03125, %v1282_v11  ;;  %v2876_v11 = vld [vmem:[#allocation12 + $0xf8] ss:$12 sps:$4 sm:$0xff]  }
 0x6f0   :  { %v1285_v31 = vsub.f32 %v1273_v58, %v1284_v18  ;;  %v2879_v18 = vld [vmem:[#allocation12 + $0x10c] ss:$12 sps:$4 sm:$0xff]  }
 0x6f2   :  { %v1286_v36 = vmul.f32 %v3935_v13, %v1285_v31 }
 0x6f4   :  { %v1287_v37 = vmul.f32 %v1286_v36, %v1286_v36  ;;  %v2880_v36 = vld [vmem:[#allocation12 + $0x110] ss:$12 sps:$4 sm:$0xff]  }
 0x6f6   :  { %1288 = vadd.xlane.f32.xlu1 %v1287_v37  ;;  %v2883_v37 = vld [vmem:[#allocation12 + $0x124] ss:$12 sps:$4 sm:$0xff]  }
 0x783   :  { %v1289_v49 = vpop.xlane.xlu1 %1288 }
 0x784   :  { %v1290_v50 = vmul.f32 0.03125, %v1289_v49 }
 0x786   :  { %v1291_v2 = vadd.f32 1e-12, %v1290_v50 }
 0x788   :  { %2925 = vrsqrt.f32 %v1291_v2 }
 0x792   :  { %v2926_v3 = vpop.eup %2925 }
 0x793   :  { %v1293_v32 = vmul.f32 %v2926_v3, %v1285_v31  ;;  %v2877_v31 = vld [vmem:[#allocation12 + $0x108] ss:$12 sps:$4 sm:$0xff]   ;;  %v2460_v3 = vld [vmem:[%s4146_s14] ss:$0 sm:$0xff] }
 0x795   :  { %v1300_v35 = vmul.f32 %v2440_v29, %v1293_v32  ;;  %v2461_v32 = vld [vmem:[%s4147_s5] ss:$0 sm:$0xff] }
 0x797   :  { %v1307_v33 = vadd.f32 %v2441_v51, %v1300_v35 }
 0x799   :  { %v1308_v52 = vpack.c.bf16 %v1307_v33, %v1307_v33 }
 0x79b   :  { %2675 = vmatmul.mubr.bf16.vlgmr.msra.gmra.mrb[4].mxu1 %v1308_v52  ;;  %v2462_v52 = vld [vmem:[%s4140_s13 + $0x3] sm:$0x7] }
 0x79c   :  { %1804 = vmatprep.mubr.bf16.mxu1 %v3181_v45  ;;  %v2451_v45 = vld [vmem:[%s4145_s19] ss:$0 sm:$0xff]  ;;  %1773 = vmatpush1.bf16.msra.mxu1 %v2865_v12  ;;  %v1636_v53 = vrot.slane %v2462_v52, %v856_v26 }
 0x79d   :  { %1774 = vmatprep.subr.bf16.mxu1 %v2871_v5 }
 0x7a0   :  { %1775 = vmatpush1.bf16.msra.mxu1 %v2869_v16 }
 0x7a1   :  { %1776 = vmatprep.subr.bf16.mxu1 %v2875_v17 }
 0x7a4   :  { %1777 = vmatpush1.bf16.msra.mxu1 %v2873_v15 }
 0x7a5   :  { %1778 = vmatprep.subr.bf16.mxu1 %v2879_v18  ;;  %v2900_v18 = vld [vmem:[#allocation14 + $0x58] sm:$0xff]  }
 0x7a8   :  { %1779 = vmatpush1.bf16.msra.mxu1 %v2877_v31  ;;  %v2901_v31 = vld [vmem:[#allocation14 + $0x60] sm:$0xff]  }
 0x7a9   :  { %1780 = vmatprep.subr.bf16.mxu1 %v2883_v37  ;;  %v2903_v37 = vld [vmem:[#allocation14 + $0x70] sm:$0xff]  }
 0x7ac   :  { %1781 = vmatpush1.bf16.msra.mxu1 %v2881_v19  ;;  %v2904_v19 = vld [vmem:[#allocation14 + $0x78] sm:$0xff]  }
 0x7ad   :  { %1782 = vmatprep.subr.bf16.mxu1 %v2887_v38 }
 0x7b0   :  { %1783 = vmatpush1.bf16.msra.mxu1 %v2885_v23 }
 0x7b1   :  { %1784 = vmatprep.subr.bf16.mxu1 %v2891_v34 }
 0x7b4   :  { %1785 = vmatpush1.bf16.msra.mxu1 %v2889_v39  ;;  %v2495_v39 = vld [vmem:[%s4141_s21 + $0x1] ss:$0 sm:$0xff] }
 0x7b5   :  { %1786 = vmatprep.subr.bf16.mxu1 %v2895_v43 }
 0x7b8   :  { %1787 = vmatpush1.bf16.msra.mxu1 %v2893_v44 }
 0x7b9   :  { %2718 = vmatprep.subr.bf16.mxu1 %v3180_v0 }
 0x86e   :  { %v1397_v57 = vpop.f32.mrb[4].mxu1 }
 0x86f   :  { %v1398_v6 = vadd.f32 %v2442_v56, %v1397_v57  ;;  %v2676_v59 = vpop.f32.mrb[5].mxu1  ;;  %v1640_v57 = vrot.slane %v2462_v52, %v860_v28 }
 0x870   :  { %v1400_v7 = vpop.f32.mrb[6].mxu1 }
 0x871   :  { %v1403_v60 = vmax.f32 %v1398_v6, 0.0  ;;  %v2677_v8 = vpop.f32.mrb[7].mxu1 }
 0x873   :  { %v1404_v40 = vpack.c.bf16 %v1403_v60, %v1403_v60 }
 0x875   :  { %2695 = vmatmul.mubr.bf16.vlgmr.msra.gmra.mrb[16].mxu0 %v1404_v40  ;;  %v1632_v40 = vrot.slane %v2462_v52, %v852_v27 }
 0x876   :  { %2714 = vmatprep.mubr.msk.bf16.mxu0 %vm3182_vm0, %v3180_v0  ;;  %2699 = vmatpush3.bf16.msra.mxu0 %v2868_v54 }
 0x877   :  { %2700 = vmatprep.subr.bf16.mxu0 %v3180_v0 }
 0x87a   :  { %2701 = vmatpush3.bf16.msra.mxu0 %v2872_v14 }
 0x87b   :  { %2702 = vmatprep.subr.bf16.mxu0 %v3180_v0 }
 0x87e   :  { %2703 = vmatpush3.bf16.msra.mxu0 %v2876_v11  ;;  %v2899_v11 = vld [vmem:[#allocation14 + $0x50] sm:$0xff]  }
 0x87f   :  { %2704 = vmatprep.subr.bf16.mxu0 %v3180_v0 }
 0x882   :  { %2705 = vmatpush3.bf16.msra.mxu0 %v2880_v36  ;;  %v2902_v36 = vld [vmem:[#allocation14 + $0x68] sm:$0xff]  }
 0x883   :  { %2706 = vmatprep.subr.bf16.mxu0 %v3180_v0 }
 0x886   :  { %2707 = vmatpush3.bf16.msra.mxu0 %v2884_v20 }
 0x887   :  { %2708 = vmatprep.subr.bf16.mxu0 %v3180_v0 }
 0x88a   :  { %2709 = vmatpush3.bf16.msra.mxu0 %v2888_v30 }
 0x88b   :  { %2710 = vmatprep.subr.bf16.mxu0 %v3180_v0 }
 0x88e   :  { %2711 = vmatpush3.bf16.msra.mxu0 %v2892_v41 }
 0x88f   :  { %2712 = vmatprep.subr.bf16.mxu0 %v3180_v0 }
 0x892   :  { %2713 = vmatpush3.bf16.msra.mxu0 %v2896_v46 }
 0x893   :  { %2750 = vmatprep.subr.bf16.mxu0 %v3180_v0 }
 0x948   :  { %v1493_v55 = vpop.f32.mrb[16].mxu0 }
 0x949   :  { %v1494_v42 = vadd.f32 %v2451_v45, %v1493_v55  ;;  %v2696_v48 = vpop.f32.mrb[17].mxu0 }
 0x94a   :  { %v1496_v1 = vpop.f32.mrb[18].mxu0 }
 0x94b   :  { %v1499_v62 = vadd.f32 %v1494_v42, %v1307_v33  ;;  %v2697_v63 = vpop.f32.mrb[19].mxu0 }
 0x94d   :  { %v1500_v9 = vmul.f32 %v3935_v13, %v1499_v62 }
 0x94f   :  { %1501 = vadd.xlane.f32.xlu0 %v1500_v9 }
 0x9dc   :  { %v1502_v58 = vpop.xlane.xlu0 %1501 }
 0x9dd   :  { %v1503_v61 = vmul.f32 0.03125, %v1502_v58 }
 0x9df   :  { %v1504_v21 = vsub.f32 %v1499_v62, %v1503_v61 }
 0x9e1   :  { %v1505_v24 = vmul.f32 %v3935_v13, %v1504_v21 }
 0x9e3   :  { %v1506_v25 = vmul.f32 %v1505_v24, %v1505_v24 }
 0x9e5   :  { %1507 = vadd.xlane.f32.xlu1 %v1506_v25  ;;  %v2898_v25 = vld [vmem:[#allocation14 + $0x48] sm:$0xff]  }
 0xa72   :  { %v1508_v47 = vpop.xlane.xlu1 %1507 }
 0xa73   :  { %v1509_v49 = vmul.f32 0.03125, %v1508_v47 }
 0xa75   :  { %v1510_v50 = vadd.f32 1e-12, %v1509_v49 }
 0xa77   :  { %2927 = vrsqrt.f32 %v1510_v50 }
 0xa81   :  { %v2928_v2 = vpop.eup %2927 }
 0xa82   :  { %v1512_v29 = vmul.f32 %v2928_v2, %v1504_v21  ;;  %v2897_v21 = vld [vmem:[#allocation14 + $0x40] sm:$0xff]  }
 0xa83   :  { %v2905_v2 = vld [vmem:[#allocation15 + $0x40] sm:$0xff]  }
 0xa84   :  { %v1519_v51 = vmul.f32 %v2460_v3, %v1512_v29  ;;  %v2906_v3 = vld [vmem:[#allocation15 + $0x48] sm:$0xff]  }
 0xa86   :  { %v3987_v35 = vadd.f32 %v2461_v32, %v1519_v51 }
 0xa88   :  { %v1627_v33 = vpack.c.bf16 %v3987_v35, %v3987_v35 }
 0xa8a   :  { %1805 = vmatmul.mubr.bf16.vlgmr.msra.gmra.mrb[8].mxu1 %v1627_v33  ;;  %2715 = vmatmul.mubr.bf16.vlgmr.msra.gmra.mrb[20].mxu0 %v1627_v33 }
 0xa8b   :  { %2720 = vmatprep.mubr.msk.bf16.mxu1 %vm3182_vm0, %v3180_v0  ;;  %2766 = vmatprep.mubr.msk.bf16.mxu0 %vm3182_vm0, %v3180_v0 }
 0xa8c   :  { %2751 = vmatpush3.bf16.msra.mxu0 %v2905_v2 }
 0xa8d   :  { %2752 = vmatprep.subr.bf16.mxu0 %v3180_v0 }
 0xa90   :  { %2753 = vmatpush3.bf16.msra.mxu0 %v2906_v3 }
 0xa91   :  { %2754 = vmatprep.subr.bf16.mxu0 %v3180_v0 }
 0xb5d   :  { %v1806_v4 = vpop.f32.mrb[8].mxu1  ;;  %v1847_v56 = vpop.f32.mrb[20].mxu0 }
 0xb5e   :  { %v1808_v6 = vpop.f32.mrb[9].mxu1  ;;  %v2716_v59 = vpop.f32.mrb[21].mxu0  ;;  %v1848_v48 = vadd.f32 %v1847_v56, %v1640_v57  ;;  %v1807_v1 = vadd.f32 %v1806_v4, %v1632_v40  ;;  %v2909_v4 = vld [vmem:[#allocation15 + $0x60] sm:$0xff]   ;;  %v2910_v56 = vld [vmem:[#allocation15 + $0x68] sm:$0xff]   ;;  %v2911_v57 = vld [vmem:[#allocation15 + $0x70] sm:$0xff]  }
 0xb5f   :  { %v1809_v7 = vadd.f32 %v1808_v6, %v1636_v53  ;;  %v1810_v60 = vpop.f32.mrb[10].mxu1  ;;  %v1850_v8 = vpop.f32.mrb[22].mxu0  ;;  %v2908_v53 = vld [vmem:[#allocation15 + $0x58] sm:$0xff]   ;;  %v2913_v59 = vld [vmem:[#allocation17 + $0x40] sm:$0xff]  }
 0xb60   :  { %v1811_v45 = vpop.f32.mrb[11].mxu1  ;;  %v2717_v55 = vpop.f32.mrb[23].mxu0  ;;  %v1855_v26 = vpack.c.bf16 %v1848_v48, %v1848_v48  ;;  %v1853_v62 = vpack.c.bf16 %v1807_v1, %v1807_v1  ;;  %v2912_v6 = vld [vmem:[#allocation15 + $0x78] sm:$0xff]   ;;  %v2915_v60 = vld [vmem:[#allocation17 + $0x50] sm:$0xff]   ;;  %v2917_v40 = vld [vmem:[#allocation17 + $0x60] sm:$0xff]  }
 0xb61   :  { %v1854_v42 = vpack.c.bf16 %v1809_v7, %v1809_v7  ;;  %v2914_v7 = vld [vmem:[#allocation17 + $0x48] sm:$0xff]   ;;  %v2916_v8 = vld [vmem:[#allocation17 + $0x58] sm:$0xff]  }
 0xb62   :  { %v1913_v28 = vsel %vm1134_vm1, %v1855_v26, 0  ;;  %v2918_v45 = vld [vmem:[#allocation17 + $0x68] sm:$0xff]   ;;  %v2504_v26 = vld [vmem:[%s4142_s24 + $0x1] ss:$0 sm:$0xff] }
 0xb63   :  { %2719 = vmatpush3.bf16.xpose.msra.mxu1 %v1854_v42 }
 0xb64   :  { %2724 = vmatprep.subr.bf16.mxu1 %v3180_v0 }
 0xb6a   :  { %2721 = vmatmul.mubr.bf16.vlgmr.msra.gmra.mrb[12].mxu1 %v1853_v62 }
 0xb6b   :  { %2725 = vmatpush3.bf16.msra.mxu1 %v1913_v28  ;;  %2726 = vmatprep.mubr.msk.bf16.mxu1 %vm3182_vm0, %v3180_v0  ;;  %v2505_v28 = vld [vmem:[%s4143_s27 + $0x1] ss:$0 sm:$0xff]  ;;  %s3129_s27 = scalar_lea.vmem %s2305_s9, 128 }
 0xb6c   :  { %2730 = vmatprep.subr.bf16.mxu1 %v3180_v0  ;;  %p3130_p6 = scmp.ne.s32.totalorder %s2305_s9, %s3129_s27  ;;  %p3135_p8 = scmp.lt.s32.totalorder %s3129_s27, %s3129_s27 }
 0xb6e   :  { %p3136_p9 = por %p3135_p8, %p3134_p7 }
 0xb70   :  { %p3137_p10 = pnand %p3136_p9, %p3130_p6 }
 0xc3d   :  { %v1890_v22 = vpop.f32.mrb[12].mxu1 }
 0xc3e   :  { %v1896_v27 = vmul.f32 0.17677669, %v1890_v22  ;;  %v2722_v63 = vpop.f32.mrb[13].mxu1 }
 0xc3f   :  { %v1893_v9 = vpop.f32.mrb[14].mxu1 }
 0xc40   :  { %v2723_v12 = vpop.f32.mrb[15].mxu1  ;;  %v1897_v10 = vsel %vm1118_vm2, %v1896_v27, -inf  ;;  %v2919_v9 = vld [vmem:[#allocation17 + $0x70] sm:$0xff]  }
 0xc41   :  { %1898 = vmax.xlane.f32.xlu0 %v1897_v10  ;;  %v2920_v12 = vld [vmem:[#allocation17 + $0x78] sm:$0xff]   ;;  %v2506_v10 = vld [vmem:[%s4144_s6 + $0x1] ss:$0 sm:$0xff] }
 0xcce   :  { %v1899_v54 = vpop.xlane.xlu0 %1898 }
 0xccf   :  { %v1900_v5 = vsub.f32 %v1896_v27, %v1899_v54 }
 0xcd1   :  { %v1901_v14 = vmul.f32 1.442695, %v1900_v5 }
 0xcd3   :  { %2929 = vpow2.f32 %v1901_v14 }
 0xcdd   :  { %v2930_v16 = vpop.eup %2929 }
 0xcde   :  { %v1903_v17 = vsel %vm1118_vm2, %v2930_v16, 0.0 }
 0xcdf   :  { %1904 = vadd.xlane.f32.xlu1 %v1903_v17 }
 0xd6c   :  { %v1905_v15 = vpop.xlane.xlu1 %1904 }
 0xd6d   :  { %2931 = vrcp.f32 %v1905_v15 }
 0xd77   :  { %v2932_v58 = vpop.eup %2931 }
 0xd78   :  { %v1907_v61 = vmul.f32 %v2932_v58, %v2930_v16 }
 0xd7a   :  { %v1908_v24 = vpack.c.bf16 %v1907_v61, %v1907_v61  ;;  %v2515_v61 = vld [vmem:[%s4145_s19 + $0x1] ss:$0 sm:$0xff] }
 0xd7c   :  { %2727 = vmatmul.mubr.msk.bf16.vlgmr.msra.gmra.mrb[16].mxu1 %vm1118_vm2, %v1908_v24 }
 0xd7d   :  { %2731 = vmatpush3.bf16.msra.mxu1 %v2897_v21  ;;  %2746 = vmatprep.mubr.msk.bf16.mxu1 %vm3182_vm0, %v3180_v0 }
 0xd7e   :  { %2732 = vmatprep.subr.bf16.mxu1 %v3180_v0 }
 0xd81   :  { %2733 = vmatpush3.bf16.msra.mxu1 %v2898_v25 }
 0xd82   :  { %2734 = vmatprep.subr.bf16.mxu1 %v3180_v0 }
 0xd85   :  { %2735 = vmatpush3.bf16.msra.mxu1 %v2899_v11 }
 0xd86   :  { %2736 = vmatprep.subr.bf16.mxu1 %v3180_v0 }
 0xd89   :  { %2737 = vmatpush3.bf16.msra.mxu1 %v2900_v18 }
 0xd8a   :  { %2738 = vmatprep.subr.bf16.mxu1 %v3180_v0 }
 0xd8d   :  { %2739 = vmatpush3.bf16.msra.mxu1 %v2901_v31 }
 0xd8e   :  { %2740 = vmatprep.subr.bf16.mxu1 %v3180_v0 }
 0xd91   :  { %2741 = vmatpush3.bf16.msra.mxu1 %v2902_v36 }
 0xd92   :  { %2742 = vmatprep.subr.bf16.mxu1 %v3180_v0 }
 0xd95   :  { %2743 = vmatpush3.bf16.msra.mxu1 %v2903_v37 }
 0xd96   :  { %2744 = vmatprep.subr.bf16.mxu1 %v3180_v0 }
 0xd99   :  { %2745 = vmatpush3.bf16.msra.mxu1 %v2904_v19 }
 0xd9a   :  { %2770 = vmatprep.subr.bf16.mxu1 %v3180_v0 }
 0xe4f   :  { %v1949_v20 = vpop.f32.mrb[16].mxu1 }
 0xe50   :  { %v1955_v38 = vpack.c.bf16 %v1949_v20, %v1949_v20  ;;  %v2728_v23 = vpop.f32.mrb[17].mxu1 }
 0xe51   :  { %v1952_v30 = vpop.f32.mrb[18].mxu1 }
 0xe52   :  { %v2729_v34 = vpop.f32.mrb[19].mxu1  ;;  %2747 = vmatmul.mubr.bf16.vlgmr.msra.gmra.mrb[20].mxu1 %v1955_v38 }
 0xe53   :  { %2786 = vmatprep.mubr.msk.bf16.mxu1 %vm3182_vm0, %v3180_v0  ;;  %2771 = vmatpush3.bf16.msra.mxu1 %v2913_v59 }
 0xe54   :  { %2772 = vmatprep.subr.bf16.mxu1 %v3180_v0 }
 0xe57   :  { %2773 = vmatpush3.bf16.msra.mxu1 %v2914_v7 }
 0xe58   :  { %2774 = vmatprep.subr.bf16.mxu1 %v3180_v0 }
 0xe5b   :  { %2775 = vmatpush3.bf16.msra.mxu1 %v2915_v60 }
 0xe5c   :  { %2776 = vmatprep.subr.bf16.mxu1 %v3180_v0 }
 0xe5f   :  { %2777 = vmatpush3.bf16.msra.mxu1 %v2916_v8 }
 0xe60   :  { %2778 = vmatprep.subr.bf16.mxu1 %v3180_v0 }
 0xe63   :  { %2779 = vmatpush3.bf16.msra.mxu1 %v2917_v40 }
 0xe64   :  { %2780 = vmatprep.subr.bf16.mxu1 %v3180_v0 }
 0xe67   :  { %2781 = vmatpush3.bf16.msra.mxu1 %v2918_v45 }
 0xe68   :  { %2782 = vmatprep.subr.bf16.mxu1 %v3180_v0 }
 0xe6b   :  { %2783 = vmatpush3.bf16.msra.mxu1 %v2919_v9 }
 0xe6c   :  { %2784 = vmatprep.subr.bf16.mxu1 %v3180_v0 }
 0xe6f   :  { %2785 = vmatpush3.bf16.msra.mxu1 %v2920_v12 }
 0xf25   :  { %v2044_v41 = vpop.f32.mrb[20].mxu1 }
 0xf26   :  { %v2045_v43 = vadd.f32 %v2495_v39, %v2044_v41  ;;  %v2748_v44 = vpop.f32.mrb[21].mxu1  ;;  %v2524_v41 = vld [vmem:[%s4146_s14 + $0x1] ss:$0 sm:$0xff] }
 0xf27   :  { %v2047_v46 = vpop.f32.mrb[22].mxu1  ;;  %v2525_v44 = vld [vmem:[%s4147_s5 + $0x1] ss:$0 sm:$0xff] }
 0xf28   :  { %v2050_v47 = vadd.f32 %v2045_v43, %v3987_v35  ;;  %v2749_v49 = vpop.f32.mrb[23].mxu1  ;;  %v2907_v35 = vld [vmem:[#allocation15 + $0x50] sm:$0xff]  }
 0xf29   :  { %2755 = vmatpush3.bf16.msra.mxu0 %v2907_v35 }
 0xf2a   :  { %v2051_v50 = vmul.f32 %v3935_v13, %v2050_v47  ;;  %2756 = vmatprep.subr.bf16.mxu0 %v3180_v0 }
 0xf2c   :  { %2052 = vadd.xlane.f32.xlu0 %v2051_v50 }
 0xf2d   :  { %2757 = vmatpush3.bf16.msra.mxu0 %v2908_v53 }
 0xf2e   :  { %2758 = vmatprep.subr.bf16.mxu0 %v3180_v0 }
 0xf31   :  { %2759 = vmatpush3.bf16.msra.mxu0 %v2909_v4 }
 0xf32   :  { %2760 = vmatprep.subr.bf16.mxu0 %v3180_v0 }
 0xf35   :  { %2761 = vmatpush3.bf16.msra.mxu0 %v2910_v56 }
 0xf36   :  { %2762 = vmatprep.subr.bf16.mxu0 %v3180_v0 }
 0xf39   :  { %2763 = vmatpush3.bf16.msra.mxu0 %v2911_v57 }
 0xf3a   :  { %2764 = vmatprep.subr.bf16.mxu0 %v3180_v0 }
 0xf3d   :  { %2765 = vmatpush3.bf16.msra.mxu0 %v2912_v6 }
 0xfb9   :  { %v2053_v29 = vpop.xlane.xlu0 %2052 }
 0xfba   :  { %v2054_v32 = vmul.f32 0.03125, %v2053_v29 }
 0xfbc   :  { %v2055_v51 = vsub.f32 %v2050_v47, %v2054_v32 }
 0xfbe   :  { %v2056_v33 = vmul.f32 %v3935_v13, %v2055_v51 }
 0xfc0   :  { %v2057_v52 = vmul.f32 %v2056_v33, %v2056_v33 }
 0xfc2   :  { %2058 = vadd.xlane.f32.xlu1 %v2057_v52 }
0x104f   :  { %v2059_v55 = vpop.xlane.xlu1 %2058 }
0x1050   :  { %v2060_v42 = vmul.f32 0.03125, %v2059_v55 }
0x1052   :  { %v2061_v48 = vadd.f32 1e-12, %v2060_v42 }
0x1054   :  { %2933 = vrsqrt.f32 %v2061_v48 }
0x105e   :  { %v2934_v1 = vpop.eup %2933 }
0x105f   :  { %v2063_v62 = vmul.f32 %v2934_v1, %v2055_v51 }
0x1061   :  { %v2070_v22 = vmul.f32 %v2504_v26, %v2063_v62 }
0x1063   :  { %v2077_v27 = vadd.f32 %v2505_v28, %v2070_v22 }
0x1065   :  { %v2078_v63 = vpack.c.bf16 %v2077_v27, %v2077_v27 }
0x1067   :  { %2767 = vmatmul.mubr.bf16.vlgmr.msra.gmra.mrb[24].mxu0 %v2078_v63 }
0x113a   :  { %v2167_v54 = vpop.f32.mrb[24].mxu0 }
0x113b   :  { %v2168_v5 = vadd.f32 %v2506_v10, %v2167_v54  ;;  %v2768_v14 = vpop.f32.mrb[25].mxu0 }
0x113c   :  { %v2170_v16 = vpop.f32.mrb[26].mxu0 }
0x113d   :  { %v2173_v17 = vmax.f32 %v2168_v5, 0.0  ;;  %v2769_v15 = vpop.f32.mrb[27].mxu0 }
0x113f   :  { %v2174_v58 = vpack.c.bf16 %v2173_v17, %v2173_v17 }
0x1141   :  { %2787 = vmatmul.mubr.bf16.vlgmr.msra.gmra.mrb[24].mxu1 %v2174_v58 }
0x1214   :  { %v2263_v21 = vpop.f32.mrb[24].mxu1 }
0x1215   :  { %v2264_v0 = vadd.f32 %v2515_v61, %v2263_v21  ;;  %v2788_v24 = vpop.f32.mrb[25].mxu1 }
0x1216   :  { %v2266_v25 = vpop.f32.mrb[26].mxu1 }
0x1217   :  { %v2269_v11 = vadd.f32 %v2264_v0, %v2077_v27  ;;  %v2789_v18 = vpop.f32.mrb[27].mxu1 }
0x1219   :  { %v2270_v31 = vmul.f32 %v3935_v13, %v2269_v11 }
0x121b   :  { %2271 = vadd.xlane.f32.xlu0 %v2270_v31 }
0x12a8   :  { %v2272_v36 = vpop.xlane.xlu0 %2271 }
0x12a9   :  { %v2273_v37 = vmul.f32 0.03125, %v2272_v36 }
0x12ab   :  { %v2274_v19 = vsub.f32 %v2269_v11, %v2273_v37 }
0x12ad   :  { %v2275_v20 = vmul.f32 %v3935_v13, %v2274_v19 }
0x12af   :  { %v2276_v38 = vmul.f32 %v2275_v20, %v2275_v20 }
0x12b1   :  { %2277 = vadd.xlane.f32.xlu1 %v2276_v38 }
0x133e   :  { %v2278_v23 = vpop.xlane.xlu1 %2277 }
0x133f   :  { %v2279_v30 = vmul.f32 0.03125, %v2278_v23 }
0x1341   :  { %v2280_v34 = vadd.f32 1e-12, %v2279_v30 }
0x1343   :  { %2935 = vrsqrt.f32 %v2280_v34 }
0x134d   :  { %v2936_v39 = vpop.eup %2935 }
0x134e   :  { %v2282_v43 = vmul.f32 %v2936_v39, %v2274_v19 }
0x1350   :  { %v2289_v46 = vmul.f32 %v2524_v41, %v2282_v43 }
0x1352   :  { %v2296_v13 = vadd.f32 %v2525_v44, %v2289_v46 }
0x1354   :  { %2297 = vst [vmem:[#allocation18] sm:$0xff] %v2296_v13 }
0x1355   :  { %3140 = shalt.err (!%p3137_p10)
}
0x1356   :  { %s4148_s6 = sld [smem:[#allocation44_spill]] }
0x135c   :  { %s3141_s8 = scalar_lea.hbm %s4148_s6, 128 }
0x135d   :  { %p3142_p11 = scmp.ne.s32.totalorder %s4148_s6, %s3141_s8  ;;  %p3145_p12 = scmp.lt.u32.totalorder %s3141_s8, %s4148_s6 }
0x135f   :  { %p3147_p13 = pnand %p3145_p12, %p3142_p11 }
0x1361   :  { %3150 = shalt.err (!%p3147_p13)
}
0x1362   :  { %2307 = dma.vmem_to_hbm [thread:$0]  %s2305_s9, 128, %s4148_s6, [#allocation4]  }
0x1363   :  { %3163 = dma.done.wait [#allocation4], 128  }
0x1364   :  { %3164 = vsyncadd [#allocation4], 4294967168 }
0x1365   :  { %2311 = vsyncpa [#allocation3], 1 }
0x1366   :  { %2312 = vsyncpa [#allocation10], 1 }
0x1367   :  { %2313 = vsyncpa [#allocation13], 1 }
0x1368   :  { %2314 = vsyncpa [#allocation16], 1 }
0x1369   :  { %2315 = vsyncpa [#allocation4], 1 }
0x136a   :  { %2316 = vsyncpa [#allocation5], 1 }
0x136b   :  { %2317 = vsyncpa [#allocation7], 1 }

</bundles_post_ra>
